<compile_context>
chip_gen: v7x
topology: tpu7x:2x2x1
jax: 0.10.0
libtpu: 0.0.40
codegen_flags: <defaults>
</compile_context>

<pallas_src>
import functools

import jax
import jax.numpy as jnp
from jax.experimental import pallas as pl
from jax.experimental.pallas import tpu as pltpu

BN_EPS = 1e-5  # cfg.BN.EPS default in pycls


def _round_up(x, m):
    return (x + m - 1) // m * m


def _pad_to(a, axis, size):
    pad = size - a.shape[axis]
    if pad <= 0:
        return a
    widths = [(0, 0)] * a.ndim
    widths[axis] = (0, pad)
    return jnp.pad(a, widths)


# ---------------------------------------------------------------------------
# Fused kernel: 1x1+BN+ReLU -> strided 3x3 (block-diag grouped)+BN+ReLU -> 1x1+BN
# One grid step processes one image (all channels lane-padded to 128).
# ---------------------------------------------------------------------------
def _bottleneck_kernel(x_ref, m_ref, wa_ref, wb_ref, wc_ref,
                       sa_ref, ba_ref, sb_ref, bb_ref, sc_ref, bc_ref,
                       o_ref, *, stride):
    s = stride
    _, Hq, Wq, cin = x_ref.shape
    cb = wb_ref.shape[-1]
    _, Ho, Wo, cout = o_ref.shape

    # ---- stage a: 1x1 conv + BN + ReLU on each stride-parity plane of the
    #      halo-padded input; then zero the halo pixels (conv-b's zero padding
    #      applies to the *stage-a output*, so relu(ba) on pad pixels must be
    #      masked back to exactly 0).
    planes = []
    for p in range(s * s):
        xm = x_ref[p].reshape(Hq * Wq, cin)                         # bf16
        ya = jnp.dot(xm, wa_ref[...], preferred_element_type=jnp.float32)
        ya = jnp.maximum(ya * sa_ref[...] + ba_ref[...], 0.0)
        ya = ya * m_ref[p]                                          # zero halo
        planes.append(ya.astype(jnp.bfloat16).reshape(Hq, Wq, cb))

    # ---- stage b: 3x3 grouped conv (dense block-diagonal weight, exact),
    #      computed directly at the output stride: tap (kh, kw) is a contiguous
    #      static slice of parity plane (kh % s, kw % s) -> 9 full-width MXU
    #      matmuls over exactly Ho*Wo pixels.
    acc = jnp.zeros((Ho * Wo, cb), jnp.float32)
    for kh in range(3):
        for kw in range(3):
            plane = planes[(kh % s) * s + (kw % s)]
            patch = plane[kh // s:kh // s + Ho, kw // s:kw // s + Wo, :]
            acc = acc + jnp.dot(patch.reshape(Ho * Wo, cb), wb_ref[kh, kw],
                                preferred_element_type=jnp.float32)
    yb = jnp.maximum(acc * sb_ref[...] + bb_ref[...], 0.0).astype(jnp.bfloat16)

    # ---- stage c: 1x1 conv + BN (final_bn -> no ReLU), f32 output.
    yc = jnp.dot(yb, wc_ref[...], preferred_element_type=jnp.float32)
    yc = yc * sc_ref[...] + bc_ref[...]
    o_ref[0] = yc.reshape(Ho, Wo, cout).astype(o_ref.dtype)


# ---------------------------------------------------------------------------
# Wrapper: NCHW in/out (PyTorch layout), NHWC + lane-padded channels inside.
# ---------------------------------------------------------------------------
@functools.partial(jax.jit, static_argnames=("stride",))
def bottleneck_transform(x_nchw, p, *, stride):
    N, cin, H, W = x_nchw.shape
    w_b = p["wa"].shape[1]
    w_out = p["wc"].shape[1]
    s = stride

    cin_p = _round_up(cin, 128)
    cb_p = _round_up(w_b, 128)
    cout_p = _round_up(w_out, 128)

    Ho = (H - 1) // s + 1
    Wo = (W - 1) // s + 1
    eh = (-(H + 2)) % s                      # extra pad so padded dims divide s
    ew = (-(W + 2)) % s
    Hp, Wp = H + 2 + eh, W + 2 + ew
    Hq, Wq = Hp // s, Wp // s

    # NCHW -> NHWC (channels on lanes), bf16, halo pad, stride-parity split:
    # xq[n*s*s + ph*s + pw, hq, wq, :] == xpad[n, hq*s + ph, wq*s + pw, :]
    x = jnp.transpose(x_nchw, (0, 2, 3, 1)).astype(jnp.bfloat16)
    x = _pad_to(x, 3, cin_p)
    x = jnp.pad(x, ((0, 0), (1, 1 + eh), (1, 1 + ew), (0, 0)))
    x = x.reshape(N, Hq, s, Wq, s, cin_p)
    x = jnp.transpose(x, (0, 2, 4, 1, 3, 5)).reshape(N * s * s, Hq, Wq, cin_p)

    # Halo mask in the same parity layout (1.0 on interior pixels, 0.0 on pad).
    r = jnp.arange(Hp)[:, None]
    c = jnp.arange(Wp)[None, :]
    mask = ((r >= 1) & (r <= H) & (c >= 1) & (c <= W)).astype(jnp.float32)
    mask = mask.reshape(Hq, s, Wq, s).transpose(1, 3, 0, 2).reshape(s * s, Hq * Wq, 1)

    # Lane-pad weights / folded-BN params (zero padding is exact).
    wa = _pad_to(_pad_to(p["wa"], 0, cin_p), 1, cb_p)
    wb = _pad_to(_pad_to(p["wb_dense"], 2, cb_p), 3, cb_p)
    wc = _pad_to(_pad_to(p["wc"], 0, cb_p), 1, cout_p)
    sa = _pad_to(p["sa"], 0, cb_p).reshape(1, cb_p)
    ba = _pad_to(p["ba"], 0, cb_p).reshape(1, cb_p)
    sb = _pad_to(p["sb"], 0, cb_p).reshape(1, cb_p)
    bb = _pad_to(p["bb"], 0, cb_p).reshape(1, cb_p)
    sc = _pad_to(p["sc"], 0, cout_p).reshape(1, cout_p)
    bc = _pad_to(p["bc"], 0, cout_p).reshape(1, cout_p)

    kernel = functools.partial(_bottleneck_kernel, stride=s)
    out = pl.pallas_call(
        kernel,
        out_shape=jax.ShapeDtypeStruct((N, Ho, Wo, cout_p), jnp.float32),
        grid=(N,),
        in_specs=[
            pl.BlockSpec((s * s, Hq, Wq, cin_p), lambda n: (n, 0, 0, 0)),
            pl.BlockSpec((s * s, Hq * Wq, 1), lambda n: (0, 0, 0)),
            pl.BlockSpec((cin_p, cb_p), lambda n: (0, 0)),
            pl.BlockSpec((3, 3, cb_p, cb_p), lambda n: (0, 0, 0, 0)),
            pl.BlockSpec((cb_p, cout_p), lambda n: (0, 0)),
            pl.BlockSpec((1, cb_p), lambda n: (0, 0)),
            pl.BlockSpec((1, cb_p), lambda n: (0, 0)),
            pl.BlockSpec((1, cb_p), lambda n: (0, 0)),
            pl.BlockSpec((1, cb_p), lambda n: (0, 0)),
            pl.BlockSpec((1, cout_p), lambda n: (0, 0)),
            pl.BlockSpec((1, cout_p), lambda n: (0, 0)),
        ],
        out_specs=pl.BlockSpec((1, Ho, Wo, cout_p), lambda n: (n, 0, 0, 0)),
        compiler_params=pltpu.CompilerParams(dimension_semantics=("parallel",)),
    )(x, mask, wa, wb, wc, sa, ba, sb, bb, sc, bc)

    out = out[..., :w_out]                       # strip channel lane-padding
    return jnp.transpose(out, (0, 3, 1, 2))      # NHWC -> NCHW


# ---------------------------------------------------------------------------
# Deterministic parameter construction (shapes match the nn.Module __init__).
# Weights are bf16 (the same rounded values feed both kernel and reference).
# ---------------------------------------------------------------------------
def make_params(key, w_in, w_out, bot_mul, num_gs):
    w_b = int(round(w_out * bot_mul))
    assert w_b % num_gs == 0
    cg = w_b // num_gs
    ks = jax.random.split(key, 15)

    wa_pt = (jax.random.normal(ks[0], (w_b, w_in, 1, 1), jnp.float32) * 0.2).astype(jnp.bfloat16)
    wb_pt = (jax.random.normal(ks[1], (w_b, cg, 3, 3), jnp.float32) * 0.2).astype(jnp.bfloat16)
    wc_pt = (jax.random.normal(ks[2], (w_out, w_b, 1, 1), jnp.float32) * 0.2).astype(jnp.bfloat16)

    def bn_fold(kg, kb, km, kv, c):
        gamma = jax.random.uniform(kg, (c,), jnp.float32, 0.5, 1.5)
        beta = jax.random.normal(kb, (c,), jnp.float32) * 0.1
        mean = jax.random.normal(km, (c,), jnp.float32) * 0.1
        var = jax.random.uniform(kv, (c,), jnp.float32, 0.5, 1.5)
        scale = gamma / jnp.sqrt(var + BN_EPS)
        bias = beta - mean * scale
        return scale, bias

    sa, ba = bn_fold(ks[3], ks[4], ks[5], ks[6], w_b)
    sb, bb = bn_fold(ks[7], ks[8], ks[9], ks[10], w_b)
    sc, bc = bn_fold(ks[11], ks[12], ks[13], ks[14], w_out)

    # 1x1 conv weights -> (Cin, Cout) matmul weights (bf16)
    wa = jnp.transpose(wa_pt[:, :, 0, 0], (1, 0))
    wc = jnp.transpose(wc_pt[:, :, 0, 0], (1, 0))

    # grouped 3x3 weight -> dense block-diagonal (3, 3, w_b, w_b) (exact)
    wb_dense = jnp.zeros((3, 3, w_b, w_b), jnp.bfloat16)
    for g in range(num_gs):
        blk = jnp.transpose(wb_pt[g * cg:(g + 1) * cg], (2, 3, 1, 0))
        wb_dense = wb_dense.at[:, :, g * cg:(g + 1) * cg, g * cg:(g + 1) * cg].set(blk)

    # HWIO weights (same bf16 values, f32 container) for the pure-JAX reference
    wa_hwio = jnp.transpose(wa_pt, (2, 3, 1, 0)).astype(jnp.float32)
    wb_hwio = jnp.transpose(wb_pt, (2, 3, 1, 0)).astype(jnp.float32)
    wc_hwio = jnp.transpose(wc_pt, (2, 3, 1, 0)).astype(jnp.float32)

    return dict(wa=wa, wc=wc, wb_dense=wb_dense,
                sa=sa, ba=ba, sb=sb, bb=bb, sc=sc, bc=bc,
                wa_hwio=wa_hwio, wb_hwio=wb_hwio, wc_hwio=wc_hwio)


def ref_forward(x_nchw, p, stride, num_gs):
    """XLA reference with matching bf16 rounding of operands/intermediates."""
    dn = ("NHWC", "HWIO", "NHWC")
    hi = jax.lax.Precision.HIGHEST
    rt = lambda a: a.astype(jnp.bfloat16).astype(jnp.float32)
    x = rt(jnp.transpose(x_nchw, (0, 2, 3, 1)))
    y = jax.lax.conv_general_dilated(x, p["wa_hwio"], (1, 1), "VALID",
                                     dimension_numbers=dn, precision=hi)
    y = rt(jnp.maximum(y * p["sa"] + p["ba"], 0.0))
    y = jax.lax.conv_general_dilated(y, p["wb_hwio"], (stride, stride), ((1, 1), (1, 1)),
                                     feature_group_count=num_gs,
                                     dimension_numbers=dn, precision=hi)
    y = rt(jnp.maximum(y * p["sb"] + p["bb"], 0.0))
    y = jax.lax.conv_general_dilated(y, p["wc_hwio"], (1, 1), "VALID",
                                     dimension_numbers=dn, precision=hi)
    y = y * p["sc"] + p["bc"]
    return jnp.transpose(y, (0, 3, 1, 2))


if __name__ == "__main__":
    key = jax.random.PRNGKey(0)
    kx, kp = jax.random.split(key)

    # BottleneckTransform(w_in=8, w_out=16, stride=2, bot_mul=0.5, num_gs=2) -> w_b = 8
    N, w_in, w_out, H, W = 2, 8, 16, 16, 16
    stride, bot_mul, num_gs = 2, 0.5, 2

    x = jax.random.normal(kx, (N, w_in, H, W), jnp.float32)  # NCHW like PyTorch
    params = make_params(kp, w_in, w_out, bot_mul, num_gs)

    out = bottleneck_transform(x, params, stride=stride)
    out = jax.block_until_ready(out)

    Ho, Wo = (H - 1) // stride + 1, (W - 1) // stride + 1
    assert out.shape == (N, w_out, Ho, Wo), out.shape

    ref = ref_forward(x, params, stride, num_gs)
    max_err = float(jnp.max(jnp.abs(out - ref)))
    assert max_err < 2e-2, f"max abs err {max_err}"

    print("KERNEL_OK")
</pallas_src>

<mosaic_0001>
module attributes {stable_mosaic.version = 11 : i64} {
  func.func @_bottleneck_kernel(%arg0: i32, %arg1: memref<4x9x9x128xbf16, #tpu.memory_space<vmem>>, %arg2: memref<4x81x1xf32, #tpu.memory_space<vmem>>, %arg3: memref<128x128xbf16, #tpu.memory_space<vmem>>, %arg4: memref<3x3x128x128xbf16, #tpu.memory_space<vmem>>, %arg5: memref<128x128xbf16, #tpu.memory_space<vmem>>, %arg6: memref<1x128xf32, #tpu.memory_space<vmem>>, %arg7: memref<1x128xf32, #tpu.memory_space<vmem>>, %arg8: memref<1x128xf32, #tpu.memory_space<vmem>>, %arg9: memref<1x128xf32, #tpu.memory_space<vmem>>, %arg10: memref<1x128xf32, #tpu.memory_space<vmem>>, %arg11: memref<1x128xf32, #tpu.memory_space<vmem>>, %arg12: memref<1x8x8x128xf32, #tpu.memory_space<vmem>>) attributes {dimension_semantics = [#tpu.dimension_semantics<parallel>], iteration_bounds = array<i64: 2>, scalar_prefetch = 0 : i64, scratch_operands = 0 : i64, tpu.core_type = #tpu.core_type<tc>, window_params = [{transform_indices = @transform_0, window_bounds = array<i64: 4, 9, 9, 128>}, {pipeline_mode = #tpu.pipeline_mode<synchronous>, transform_indices = @transform_1, window_bounds = array<i64: 4, 81, 1>}, {pipeline_mode = #tpu.pipeline_mode<synchronous>, transform_indices = @transform_2, window_bounds = array<i64: 128, 128>}, {pipeline_mode = #tpu.pipeline_mode<synchronous>, transform_indices = @transform_3, window_bounds = array<i64: 3, 3, 128, 128>}, {pipeline_mode = #tpu.pipeline_mode<synchronous>, transform_indices = @transform_4, window_bounds = array<i64: 128, 128>}, {pipeline_mode = #tpu.pipeline_mode<synchronous>, transform_indices = @transform_5, window_bounds = array<i64: 1, 128>}, {pipeline_mode = #tpu.pipeline_mode<synchronous>, transform_indices = @transform_6, window_bounds = array<i64: 1, 128>}, {pipeline_mode = #tpu.pipeline_mode<synchronous>, transform_indices = @transform_7, window_bounds = array<i64: 1, 128>}, {pipeline_mode = #tpu.pipeline_mode<synchronous>, transform_indices = @transform_8, window_bounds = array<i64: 1, 128>}, {pipeline_mode = #tpu.pipeline_mode<synchronous>, transform_indices = @transform_9, window_bounds = array<i64: 1, 128>}, {pipeline_mode = #tpu.pipeline_mode<synchronous>, transform_indices = @transform_10, window_bounds = array<i64: 1, 128>}, {transform_indices = @transform_11, window_bounds = array<i64: 1, 8, 8, 128>}]} {
    %c0 = arith.constant 0 : index
    %c0_0 = arith.constant 0 : index
    %c0_1 = arith.constant 0 : index
    %c0_2 = arith.constant 0 : index
    %0 = vector.load %arg1[%c0, %c0_0, %c0_1, %c0_2] : memref<4x9x9x128xbf16, #tpu.memory_space<vmem>>, vector<1x9x9x128xbf16>
    %1 = vector.shape_cast %0 : vector<1x9x9x128xbf16> to vector<9x9x128xbf16>
    %2 = vector.shape_cast %1 : vector<9x9x128xbf16> to vector<81x128xbf16>
    %c0_3 = arith.constant 0 : index
    %c0_4 = arith.constant 0 : index
    %3 = vector.load %arg3[%c0_3, %c0_4] : memref<128x128xbf16, #tpu.memory_space<vmem>>, vector<128x128xbf16>
    %cst = arith.constant dense<0.000000e+00> : vector<81x128xf32>
    %4 = tpu.matmul %2, %3, %cst {dimension_numbers = #tpu.dot_dimension_numbers<[1], [0], [0], [1], [0, 0, 1, 1], [], []>} : vector<81x128xbf16>, vector<128x128xbf16>, vector<81x128xf32> -> vector<81x128xf32>
    %c0_5 = arith.constant 0 : index
    %c0_6 = arith.constant 0 : index
    %5 = vector.load %arg6[%c0_5, %c0_6] : memref<1x128xf32, #tpu.memory_space<vmem>>, vector<1x128xf32>
    %6 = vector.broadcast %5 : vector<1x128xf32> to vector<81x128xf32>
    %7 = arith.mulf %4, %6 : vector<81x128xf32>
    %c0_7 = arith.constant 0 : index
    %c0_8 = arith.constant 0 : index
    %8 = vector.load %arg7[%c0_7, %c0_8] : memref<1x128xf32, #tpu.memory_space<vmem>>, vector<1x128xf32>
    %9 = vector.broadcast %8 : vector<1x128xf32> to vector<81x128xf32>
    %10 = arith.addf %7, %9 : vector<81x128xf32>
    %cst_9 = arith.constant 0.000000e+00 : f32
    %11 = vector.broadcast %cst_9 : f32 to vector<81x128xf32>
    %12 = arith.maximumf %10, %11 : vector<81x128xf32>
    %c0_10 = arith.constant 0 : index
    %c0_11 = arith.constant 0 : index
    %c0_12 = arith.constant 0 : index
    %13 = vector.load %arg2[%c0_10, %c0_11, %c0_12] : memref<4x81x1xf32, #tpu.memory_space<vmem>>, vector<1x81x1xf32>
    %14 = vector.shape_cast %13 : vector<1x81x1xf32> to vector<81x1xf32>
    %15 = vector.broadcast %14 : vector<81x1xf32> to vector<81x128xf32>
    %16 = arith.mulf %12, %15 : vector<81x128xf32>
    %17 = arith.truncf %16 : vector<81x128xf32> to vector<81x128xbf16>
    %18 = vector.shape_cast %17 : vector<81x128xbf16> to vector<9x9x128xbf16>
    %c1 = arith.constant 1 : index
    %c0_13 = arith.constant 0 : index
    %c0_14 = arith.constant 0 : index
    %c0_15 = arith.constant 0 : index
    %19 = vector.load %arg1[%c1, %c0_13, %c0_14, %c0_15] : memref<4x9x9x128xbf16, #tpu.memory_space<vmem>>, vector<1x9x9x128xbf16>
    %20 = vector.shape_cast %19 : vector<1x9x9x128xbf16> to vector<9x9x128xbf16>
    %21 = vector.shape_cast %20 : vector<9x9x128xbf16> to vector<81x128xbf16>
    %c0_16 = arith.constant 0 : index
    %c0_17 = arith.constant 0 : index
    %22 = vector.load %arg3[%c0_16, %c0_17] : memref<128x128xbf16, #tpu.memory_space<vmem>>, vector<128x128xbf16>
    %cst_18 = arith.constant dense<0.000000e+00> : vector<81x128xf32>
    %23 = tpu.matmul %21, %22, %cst_18 {dimension_numbers = #tpu.dot_dimension_numbers<[1], [0], [0], [1], [0, 0, 1, 1], [], []>} : vector<81x128xbf16>, vector<128x128xbf16>, vector<81x128xf32> -> vector<81x128xf32>
    %c0_19 = arith.constant 0 : index
    %c0_20 = arith.constant 0 : index
    %24 = vector.load %arg6[%c0_19, %c0_20] : memref<1x128xf32, #tpu.memory_space<vmem>>, vector<1x128xf32>
    %25 = vector.broadcast %24 : vector<1x128xf32> to vector<81x128xf32>
    %26 = arith.mulf %23, %25 : vector<81x128xf32>
    %c0_21 = arith.constant 0 : index
    %c0_22 = arith.constant 0 : index
    %27 = vector.load %arg7[%c0_21, %c0_22] : memref<1x128xf32, #tpu.memory_space<vmem>>, vector<1x128xf32>
    %28 = vector.broadcast %27 : vector<1x128xf32> to vector<81x128xf32>
    %29 = arith.addf %26, %28 : vector<81x128xf32>
    %cst_23 = arith.constant 0.000000e+00 : f32
    %30 = vector.broadcast %cst_23 : f32 to vector<81x128xf32>
    %31 = arith.maximumf %29, %30 : vector<81x128xf32>
    %c1_24 = arith.constant 1 : index
    %c0_25 = arith.constant 0 : index
    %c0_26 = arith.constant 0 : index
    %32 = vector.load %arg2[%c1_24, %c0_25, %c0_26] : memref<4x81x1xf32, #tpu.memory_space<vmem>>, vector<1x81x1xf32>
    %33 = vector.shape_cast %32 : vector<1x81x1xf32> to vector<81x1xf32>
    %34 = vector.broadcast %33 : vector<81x1xf32> to vector<81x128xf32>
    %35 = arith.mulf %31, %34 : vector<81x128xf32>
    %36 = arith.truncf %35 : vector<81x128xf32> to vector<81x128xbf16>
    %37 = vector.shape_cast %36 : vector<81x128xbf16> to vector<9x9x128xbf16>
    %c2 = arith.constant 2 : index
    %c0_27 = arith.constant 0 : index
    %c0_28 = arith.constant 0 : index
    %c0_29 = arith.constant 0 : index
    %38 = vector.load %arg1[%c2, %c0_27, %c0_28, %c0_29] : memref<4x9x9x128xbf16, #tpu.memory_space<vmem>>, vector<1x9x9x128xbf16>
    %39 = vector.shape_cast %38 : vector<1x9x9x128xbf16> to vector<9x9x128xbf16>
    %40 = vector.shape_cast %39 : vector<9x9x128xbf16> to vector<81x128xbf16>
    %c0_30 = arith.constant 0 : index
    %c0_31 = arith.constant 0 : index
    %41 = vector.load %arg3[%c0_30, %c0_31] : memref<128x128xbf16, #tpu.memory_space<vmem>>, vector<128x128xbf16>
    %cst_32 = arith.constant dense<0.000000e+00> : vector<81x128xf32>
    %42 = tpu.matmul %40, %41, %cst_32 {dimension_numbers = #tpu.dot_dimension_numbers<[1], [0], [0], [1], [0, 0, 1, 1], [], []>} : vector<81x128xbf16>, vector<128x128xbf16>, vector<81x128xf32> -> vector<81x128xf32>
    %c0_33 = arith.constant 0 : index
    %c0_34 = arith.constant 0 : index
    %43 = vector.load %arg6[%c0_33, %c0_34] : memref<1x128xf32, #tpu.memory_space<vmem>>, vector<1x128xf32>
    %44 = vector.broadcast %43 : vector<1x128xf32> to vector<81x128xf32>
    %45 = arith.mulf %42, %44 : vector<81x128xf32>
    %c0_35 = arith.constant 0 : index
    %c0_36 = arith.constant 0 : index
    %46 = vector.load %arg7[%c0_35, %c0_36] : memref<1x128xf32, #tpu.memory_space<vmem>>, vector<1x128xf32>
    %47 = vector.broadcast %46 : vector<1x128xf32> to vector<81x128xf32>
    %48 = arith.addf %45, %47 : vector<81x128xf32>
    %cst_37 = arith.constant 0.000000e+00 : f32
    %49 = vector.broadcast %cst_37 : f32 to vector<81x128xf32>
    %50 = arith.maximumf %48, %49 : vector<81x128xf32>
    %c2_38 = arith.constant 2 : index
    %c0_39 = arith.constant 0 : index
    %c0_40 = arith.constant 0 : index
    %51 = vector.load %arg2[%c2_38, %c0_39, %c0_40] : memref<4x81x1xf32, #tpu.memory_space<vmem>>, vector<1x81x1xf32>
    %52 = vector.shape_cast %51 : vector<1x81x1xf32> to vector<81x1xf32>
    %53 = vector.broadcast %52 : vector<81x1xf32> to vector<81x128xf32>
    %54 = arith.mulf %50, %53 : vector<81x128xf32>
    %55 = arith.truncf %54 : vector<81x128xf32> to vector<81x128xbf16>
    %56 = vector.shape_cast %55 : vector<81x128xbf16> to vector<9x9x128xbf16>
    %c3 = arith.constant 3 : index
    %c0_41 = arith.constant 0 : index
    %c0_42 = arith.constant 0 : index
    %c0_43 = arith.constant 0 : index
    %57 = vector.load %arg1[%c3, %c0_41, %c0_42, %c0_43] : memref<4x9x9x128xbf16, #tpu.memory_space<vmem>>, vector<1x9x9x128xbf16>
    %58 = vector.shape_cast %57 : vector<1x9x9x128xbf16> to vector<9x9x128xbf16>
    %59 = vector.shape_cast %58 : vector<9x9x128xbf16> to vector<81x128xbf16>
    %c0_44 = arith.constant 0 : index
    %c0_45 = arith.constant 0 : index
    %60 = vector.load %arg3[%c0_44, %c0_45] : memref<128x128xbf16, #tpu.memory_space<vmem>>, vector<128x128xbf16>
    %cst_46 = arith.constant dense<0.000000e+00> : vector<81x128xf32>
    %61 = tpu.matmul %59, %60, %cst_46 {dimension_numbers = #tpu.dot_dimension_numbers<[1], [0], [0], [1], [0, 0, 1, 1], [], []>} : vector<81x128xbf16>, vector<128x128xbf16>, vector<81x128xf32> -> vector<81x128xf32>
    %c0_47 = arith.constant 0 : index
    %c0_48 = arith.constant 0 : index
    %62 = vector.load %arg6[%c0_47, %c0_48] : memref<1x128xf32, #tpu.memory_space<vmem>>, vector<1x128xf32>
    %63 = vector.broadcast %62 : vector<1x128xf32> to vector<81x128xf32>
    %64 = arith.mulf %61, %63 : vector<81x128xf32>
    %c0_49 = arith.constant 0 : index
    %c0_50 = arith.constant 0 : index
    %65 = vector.load %arg7[%c0_49, %c0_50] : memref<1x128xf32, #tpu.memory_space<vmem>>, vector<1x128xf32>
    %66 = vector.broadcast %65 : vector<1x128xf32> to vector<81x128xf32>
    %67 = arith.addf %64, %66 : vector<81x128xf32>
    %cst_51 = arith.constant 0.000000e+00 : f32
    %68 = vector.broadcast %cst_51 : f32 to vector<81x128xf32>
    %69 = arith.maximumf %67, %68 : vector<81x128xf32>
    %c3_52 = arith.constant 3 : index
    %c0_53 = arith.constant 0 : index
    %c0_54 = arith.constant 0 : index
    %70 = vector.load %arg2[%c3_52, %c0_53, %c0_54] : memref<4x81x1xf32, #tpu.memory_space<vmem>>, vector<1x81x1xf32>
    %71 = vector.shape_cast %70 : vector<1x81x1xf32> to vector<81x1xf32>
    %72 = vector.broadcast %71 : vector<81x1xf32> to vector<81x128xf32>
    %73 = arith.mulf %69, %72 : vector<81x128xf32>
    %74 = arith.truncf %73 : vector<81x128xf32> to vector<81x128xbf16>
    %75 = vector.shape_cast %74 : vector<81x128xbf16> to vector<9x9x128xbf16>
    %cst_55 = arith.constant 0.000000e+00 : f32
    %76 = vector.broadcast %cst_55 : f32 to vector<64x128xf32>
    %77 = vector.extract_strided_slice %18 {offsets = [0, 0, 0], sizes = [8, 8, 128], strides = [1, 1, 1]} : vector<9x9x128xbf16> to vector<8x8x128xbf16>
    %78 = vector.shape_cast %77 : vector<8x8x128xbf16> to vector<64x128xbf16>
    %c0_56 = arith.constant 0 : index
    %c0_57 = arith.constant 0 : index
    %c0_58 = arith.constant 0 : index
    %c0_59 = arith.constant 0 : index
    %79 = vector.load %arg4[%c0_56, %c0_57, %c0_58, %c0_59] : memref<3x3x128x128xbf16, #tpu.memory_space<vmem>>, vector<1x1x128x128xbf16>
    %80 = vector.shape_cast %79 : vector<1x1x128x128xbf16> to vector<128x128xbf16>
    %cst_60 = arith.constant dense<0.000000e+00> : vector<64x128xf32>
    %81 = tpu.matmul %78, %80, %cst_60 {dimension_numbers = #tpu.dot_dimension_numbers<[1], [0], [0], [1], [0, 0, 1, 1], [], []>} : vector<64x128xbf16>, vector<128x128xbf16>, vector<64x128xf32> -> vector<64x128xf32>
    %82 = arith.addf %76, %81 : vector<64x128xf32>
    %83 = vector.extract_strided_slice %37 {offsets = [0, 0, 0], sizes = [8, 8, 128], strides = [1, 1, 1]} : vector<9x9x128xbf16> to vector<8x8x128xbf16>
    %84 = vector.shape_cast %83 : vector<8x8x128xbf16> to vector<64x128xbf16>
    %c0_61 = arith.constant 0 : index
    %c1_62 = arith.constant 1 : index
    %c0_63 = arith.constant 0 : index
    %c0_64 = arith.constant 0 : index
    %85 = vector.load %arg4[%c0_61, %c1_62, %c0_63, %c0_64] : memref<3x3x128x128xbf16, #tpu.memory_space<vmem>>, vector<1x1x128x128xbf16>
    %86 = vector.shape_cast %85 : vector<1x1x128x128xbf16> to vector<128x128xbf16>
    %cst_65 = arith.constant dense<0.000000e+00> : vector<64x128xf32>
    %87 = tpu.matmul %84, %86, %cst_65 {dimension_numbers = #tpu.dot_dimension_numbers<[1], [0], [0], [1], [0, 0, 1, 1], [], []>} : vector<64x128xbf16>, vector<128x128xbf16>, vector<64x128xf32> -> vector<64x128xf32>
    %88 = arith.addf %82, %87 : vector<64x128xf32>
    %89 = vector.extract_strided_slice %18 {offsets = [0, 1, 0], sizes = [8, 8, 128], strides = [1, 1, 1]} : vector<9x9x128xbf16> to vector<8x8x128xbf16>
    %90 = vector.shape_cast %89 : vector<8x8x128xbf16> to vector<64x128xbf16>
    %c0_66 = arith.constant 0 : index
    %c2_67 = arith.constant 2 : index
    %c0_68 = arith.constant 0 : index
    %c0_69 = arith.constant 0 : index
    %91 = vector.load %arg4[%c0_66, %c2_67, %c0_68, %c0_69] : memref<3x3x128x128xbf16, #tpu.memory_space<vmem>>, vector<1x1x128x128xbf16>
    %92 = vector.shape_cast %91 : vector<1x1x128x128xbf16> to vector<128x128xbf16>
    %cst_70 = arith.constant dense<0.000000e+00> : vector<64x128xf32>
    %93 = tpu.matmul %90, %92, %cst_70 {dimension_numbers = #tpu.dot_dimension_numbers<[1], [0], [0], [1], [0, 0, 1, 1], [], []>} : vector<64x128xbf16>, vector<128x128xbf16>, vector<64x128xf32> -> vector<64x128xf32>
    %94 = arith.addf %88, %93 : vector<64x128xf32>
    %95 = vector.extract_strided_slice %56 {offsets = [0, 0, 0], sizes = [8, 8, 128], strides = [1, 1, 1]} : vector<9x9x128xbf16> to vector<8x8x128xbf16>
    %96 = vector.shape_cast %95 : vector<8x8x128xbf16> to vector<64x128xbf16>
    %c1_71 = arith.constant 1 : index
    %c0_72 = arith.constant 0 : index
    %c0_73 = arith.constant 0 : index
    %c0_74 = arith.constant 0 : index
    %97 = vector.load %arg4[%c1_71, %c0_72, %c0_73, %c0_74] : memref<3x3x128x128xbf16, #tpu.memory_space<vmem>>, vector<1x1x128x128xbf16>
    %98 = vector.shape_cast %97 : vector<1x1x128x128xbf16> to vector<128x128xbf16>
    %cst_75 = arith.constant dense<0.000000e+00> : vector<64x128xf32>
    %99 = tpu.matmul %96, %98, %cst_75 {dimension_numbers = #tpu.dot_dimension_numbers<[1], [0], [0], [1], [0, 0, 1, 1], [], []>} : vector<64x128xbf16>, vector<128x128xbf16>, vector<64x128xf32> -> vector<64x128xf32>
    %100 = arith.addf %94, %99 : vector<64x128xf32>
    %101 = vector.extract_strided_slice %75 {offsets = [0, 0, 0], sizes = [8, 8, 128], strides = [1, 1, 1]} : vector<9x9x128xbf16> to vector<8x8x128xbf16>
    %102 = vector.shape_cast %101 : vector<8x8x128xbf16> to vector<64x128xbf16>
    %c1_76 = arith.constant 1 : index
    %c1_77 = arith.constant 1 : index
    %c0_78 = arith.constant 0 : index
    %c0_79 = arith.constant 0 : index
    %103 = vector.load %arg4[%c1_76, %c1_77, %c0_78, %c0_79] : memref<3x3x128x128xbf16, #tpu.memory_space<vmem>>, vector<1x1x128x128xbf16>
    %104 = vector.shape_cast %103 : vector<1x1x128x128xbf16> to vector<128x128xbf16>
    %cst_80 = arith.constant dense<0.000000e+00> : vector<64x128xf32>
    %105 = tpu.matmul %102, %104, %cst_80 {dimension_numbers = #tpu.dot_dimension_numbers<[1], [0], [0], [1], [0, 0, 1, 1], [], []>} : vector<64x128xbf16>, vector<128x128xbf16>, vector<64x128xf32> -> vector<64x128xf32>
    %106 = arith.addf %100, %105 : vector<64x128xf32>
    %107 = vector.extract_strided_slice %56 {offsets = [0, 1, 0], sizes = [8, 8, 128], strides = [1, 1, 1]} : vector<9x9x128xbf16> to vector<8x8x128xbf16>
    %108 = vector.shape_cast %107 : vector<8x8x128xbf16> to vector<64x128xbf16>
    %c1_81 = arith.constant 1 : index
    %c2_82 = arith.constant 2 : index
    %c0_83 = arith.constant 0 : index
    %c0_84 = arith.constant 0 : index
    %109 = vector.load %arg4[%c1_81, %c2_82, %c0_83, %c0_84] : memref<3x3x128x128xbf16, #tpu.memory_space<vmem>>, vector<1x1x128x128xbf16>
    %110 = vector.shape_cast %109 : vector<1x1x128x128xbf16> to vector<128x128xbf16>
    %cst_85 = arith.constant dense<0.000000e+00> : vector<64x128xf32>
    %111 = tpu.matmul %108, %110, %cst_85 {dimension_numbers = #tpu.dot_dimension_numbers<[1], [0], [0], [1], [0, 0, 1, 1], [], []>} : vector<64x128xbf16>, vector<128x128xbf16>, vector<64x128xf32> -> vector<64x128xf32>
    %112 = arith.addf %106, %111 : vector<64x128xf32>
    %113 = vector.extract_strided_slice %18 {offsets = [1, 0, 0], sizes = [8, 8, 128], strides = [1, 1, 1]} : vector<9x9x128xbf16> to vector<8x8x128xbf16>
    %114 = vector.shape_cast %113 : vector<8x8x128xbf16> to vector<64x128xbf16>
    %c2_86 = arith.constant 2 : index
    %c0_87 = arith.constant 0 : index
    %c0_88 = arith.constant 0 : index
    %c0_89 = arith.constant 0 : index
    %115 = vector.load %arg4[%c2_86, %c0_87, %c0_88, %c0_89] : memref<3x3x128x128xbf16, #tpu.memory_space<vmem>>, vector<1x1x128x128xbf16>
    %116 = vector.shape_cast %115 : vector<1x1x128x128xbf16> to vector<128x128xbf16>
    %cst_90 = arith.constant dense<0.000000e+00> : vector<64x128xf32>
    %117 = tpu.matmul %114, %116, %cst_90 {dimension_numbers = #tpu.dot_dimension_numbers<[1], [0], [0], [1], [0, 0, 1, 1], [], []>} : vector<64x128xbf16>, vector<128x128xbf16>, vector<64x128xf32> -> vector<64x128xf32>
    %118 = arith.addf %112, %117 : vector<64x128xf32>
    %119 = vector.extract_strided_slice %37 {offsets = [1, 0, 0], sizes = [8, 8, 128], strides = [1, 1, 1]} : vector<9x9x128xbf16> to vector<8x8x128xbf16>
    %120 = vector.shape_cast %119 : vector<8x8x128xbf16> to vector<64x128xbf16>
    %c2_91 = arith.constant 2 : index
    %c1_92 = arith.constant 1 : index
    %c0_93 = arith.constant 0 : index
    %c0_94 = arith.constant 0 : index
    %121 = vector.load %arg4[%c2_91, %c1_92, %c0_93, %c0_94] : memref<3x3x128x128xbf16, #tpu.memory_space<vmem>>, vector<1x1x128x128xbf16>
    %122 = vector.shape_cast %121 : vector<1x1x128x128xbf16> to vector<128x128xbf16>
    %cst_95 = arith.constant dense<0.000000e+00> : vector<64x128xf32>
    %123 = tpu.matmul %120, %122, %cst_95 {dimension_numbers = #tpu.dot_dimension_numbers<[1], [0], [0], [1], [0, 0, 1, 1], [], []>} : vector<64x128xbf16>, vector<128x128xbf16>, vector<64x128xf32> -> vector<64x128xf32>
    %124 = arith.addf %118, %123 : vector<64x128xf32>
    %125 = vector.extract_strided_slice %18 {offsets = [1, 1, 0], sizes = [8, 8, 128], strides = [1, 1, 1]} : vector<9x9x128xbf16> to vector<8x8x128xbf16>
    %126 = vector.shape_cast %125 : vector<8x8x128xbf16> to vector<64x128xbf16>
    %c2_96 = arith.constant 2 : index
    %c2_97 = arith.constant 2 : index
    %c0_98 = arith.constant 0 : index
    %c0_99 = arith.constant 0 : index
    %127 = vector.load %arg4[%c2_96, %c2_97, %c0_98, %c0_99] : memref<3x3x128x128xbf16, #tpu.memory_space<vmem>>, vector<1x1x128x128xbf16>
    %128 = vector.shape_cast %127 : vector<1x1x128x128xbf16> to vector<128x128xbf16>
    %cst_100 = arith.constant dense<0.000000e+00> : vector<64x128xf32>
    %129 = tpu.matmul %126, %128, %cst_100 {dimension_numbers = #tpu.dot_dimension_numbers<[1], [0], [0], [1], [0, 0, 1, 1], [], []>} : vector<64x128xbf16>, vector<128x128xbf16>, vector<64x128xf32> -> vector<64x128xf32>
    %130 = arith.addf %124, %129 : vector<64x128xf32>
    %c0_101 = arith.constant 0 : index
    %c0_102 = arith.constant 0 : index
    %131 = vector.load %arg8[%c0_101, %c0_102] : memref<1x128xf32, #tpu.memory_space<vmem>>, vector<1x128xf32>
    %132 = vector.broadcast %131 : vector<1x128xf32> to vector<64x128xf32>
    %133 = arith.mulf %130, %132 : vector<64x128xf32>
    %c0_103 = arith.constant 0 : index
    %c0_104 = arith.constant 0 : index
    %134 = vector.load %arg9[%c0_103, %c0_104] : memref<1x128xf32, #tpu.memory_space<vmem>>, vector<1x128xf32>
    %135 = vector.broadcast %134 : vector<1x128xf32> to vector<64x128xf32>
    %136 = arith.addf %133, %135 : vector<64x128xf32>
    %cst_105 = arith.constant 0.000000e+00 : f32
    %137 = vector.broadcast %cst_105 : f32 to vector<64x128xf32>
    %138 = arith.maximumf %136, %137 : vector<64x128xf32>
    %139 = arith.truncf %138 : vector<64x128xf32> to vector<64x128xbf16>
    %c0_106 = arith.constant 0 : index
    %c0_107 = arith.constant 0 : index
    %140 = vector.load %arg5[%c0_106, %c0_107] : memref<128x128xbf16, #tpu.memory_space<vmem>>, vector<128x128xbf16>
    %cst_108 = arith.constant dense<0.000000e+00> : vector<64x128xf32>
    %141 = tpu.matmul %139, %140, %cst_108 {dimension_numbers = #tpu.dot_dimension_numbers<[1], [0], [0], [1], [0, 0, 1, 1], [], []>} : vector<64x128xbf16>, vector<128x128xbf16>, vector<64x128xf32> -> vector<64x128xf32>
    %c0_109 = arith.constant 0 : index
    %c0_110 = arith.constant 0 : index
    %142 = vector.load %arg10[%c0_109, %c0_110] : memref<1x128xf32, #tpu.memory_space<vmem>>, vector<1x128xf32>
    %143 = vector.broadcast %142 : vector<1x128xf32> to vector<64x128xf32>
    %144 = arith.mulf %141, %143 : vector<64x128xf32>
    %c0_111 = arith.constant 0 : index
    %c0_112 = arith.constant 0 : index
    %145 = vector.load %arg11[%c0_111, %c0_112] : memref<1x128xf32, #tpu.memory_space<vmem>>, vector<1x128xf32>
    %146 = vector.broadcast %145 : vector<1x128xf32> to vector<64x128xf32>
    %147 = arith.addf %144, %146 : vector<64x128xf32>
    %148 = vector.shape_cast %147 : vector<64x128xf32> to vector<8x8x128xf32>
    %c0_113 = arith.constant 0 : index
    %c0_114 = arith.constant 0 : index
    %c0_115 = arith.constant 0 : index
    %c0_116 = arith.constant 0 : index
    %149 = vector.load %arg12[%c0_113, %c0_114, %c0_115, %c0_116] : memref<1x8x8x128xf32, #tpu.memory_space<vmem>>, vector<1x8x8x128xf32>
    %150 = vector.shape_cast %149 : vector<1x8x8x128xf32> to vector<8x8x128xf32>
    %151 = vector.shape_cast %148 : vector<8x8x128xf32> to vector<1x8x8x128xf32>
    tpu.vector_store %arg12[%c0_113, %c0_114, %c0_115, %c0_116], %151 {strides = array<i32>} : memref<1x8x8x128xf32, #tpu.memory_space<vmem>>, vector<1x8x8x128xf32>,
    return
  }
  func.func @transform_0(%arg0: i32) -> (i32, i32, i32, i32) {
    %c0_i32 = arith.constant 0 : i32
    %c0_i32_0 = arith.constant 0 : i32
    %c0_i32_1 = arith.constant 0 : i32
    %c0_i32_2 = arith.constant 0 : i32
    return %arg0, %c0_i32, %c0_i32_0, %c0_i32_1 : i32, i32, i32, i32
  }
  func.func @transform_1(%arg0: i32) -> (i32, i32, i32) {
    %c0_i32 = arith.constant 0 : i32
    %c0_i32_0 = arith.constant 0 : i32
    %c0_i32_1 = arith.constant 0 : i32
    %c0_i32_2 = arith.constant 0 : i32
    return %c0_i32, %c0_i32_0, %c0_i32_1 : i32, i32, i32
  }
  func.func @transform_2(%arg0: i32) -> (i32, i32) {
    %c0_i32 = arith.constant 0 : i32
    %c0_i32_0 = arith.constant 0 : i32
    %c0_i32_1 = arith.constant 0 : i32
    return %c0_i32, %c0_i32_0 : i32, i32
  }
  func.func @transform_3(%arg0: i32) -> (i32, i32, i32, i32) {
    %c0_i32 = arith.constant 0 : i32
    %c0_i32_0 = arith.constant 0 : i32
    %c0_i32_1 = arith.constant 0 : i32
    %c0_i32_2 = arith.constant 0 : i32
    %c0_i32_3 = arith.constant 0 : i32
    return %c0_i32, %c0_i32_0, %c0_i32_1, %c0_i32_2 : i32, i32, i32, i32
  }
  func.func @transform_4(%arg0: i32) -> (i32, i32) {
    %c0_i32 = arith.constant 0 : i32
    %c0_i32_0 = arith.constant 0 : i32
    %c0_i32_1 = arith.constant 0 : i32
    return %c0_i32, %c0_i32_0 : i32, i32
  }
  func.func @transform_5(%arg0: i32) -> (i32, i32) {
    %c0_i32 = arith.constant 0 : i32
    %c0_i32_0 = arith.constant 0 : i32
    %c0_i32_1 = arith.constant 0 : i32
    return %c0_i32, %c0_i32_0 : i32, i32
  }
  func.func @transform_6(%arg0: i32) -> (i32, i32) {
    %c0_i32 = arith.constant 0 : i32
    %c0_i32_0 = arith.constant 0 : i32
    %c0_i32_1 = arith.constant 0 : i32
    return %c0_i32, %c0_i32_0 : i32, i32
  }
  func.func @transform_7(%arg0: i32) -> (i32, i32) {
    %c0_i32 = arith.constant 0 : i32
    %c0_i32_0 = arith.constant 0 : i32
    %c0_i32_1 = arith.constant 0 : i32
    return %c0_i32, %c0_i32_0 : i32, i32
  }
  func.func @transform_8(%arg0: i32) -> (i32, i32) {
    %c0_i32 = arith.constant 0 : i32
    %c0_i32_0 = arith.constant 0 : i32
    %c0_i32_1 = arith.constant 0 : i32
    return %c0_i32, %c0_i32_0 : i32, i32
  }
  func.func @transform_9(%arg0: i32) -> (i32, i32) {
    %c0_i32 = arith.constant 0 : i32
    %c0_i32_0 = arith.constant 0 : i32
    %c0_i32_1 = arith.constant 0 : i32
    return %c0_i32, %c0_i32_0 : i32, i32
  }
  func.func @transform_10(%arg0: i32) -> (i32, i32) {
    %c0_i32 = arith.constant 0 : i32
    %c0_i32_0 = arith.constant 0 : i32
    %c0_i32_1 = arith.constant 0 : i32
    return %c0_i32, %c0_i32_0 : i32, i32
  }
  func.func @transform_11(%arg0: i32) -> (i32, i32, i32, i32) {
    %c0_i32 = arith.constant 0 : i32
    %c0_i32_0 = arith.constant 0 : i32
    %c0_i32_1 = arith.constant 0 : i32
    %c0_i32_2 = arith.constant 0 : i32
    return %arg0, %c0_i32, %c0_i32_0, %c0_i32_1 : i32, i32, i32, i32
  }
}

</mosaic_0001>

<bundles_post_ra>
// kernel: bottleneck_transform.1
= control target key start
LH: loop header
LB: loop body
LE: loop exit
PB: predicated region body
PF: predicated region fallthrough
CT: control target
= control target key end

     0   :  { %s9934_s17 = smov 0   ;;  %s12179_s0 = inlined_call_operand.vmem [shape: bf16[8,9,9,128], index: 0, kind: input, shape index: {}]   ;;  %s12180_s1 = inlined_call_operand.vmem [shape: f32[4,81,1], index: 1, kind: input, shape index: {}]   ;;  %s12181_s2 = inlined_call_operand.vmem [shape: bf16[128,128], index: 2, kind: input, shape index: {}]   ;;  %s12182_s3 = inlined_call_operand.vmem [shape: bf16[3,3,128,128], index: 3, kind: input, shape index: {}]   ;;  %s12183_s4 = inlined_call_operand.vmem [shape: bf16[128,128], index: 4, kind: input, shape index: {}]   ;;  %s12184_s5 = inlined_call_operand.vmem [shape: f32[1,128], index: 5, kind: input, shape index: {}]   ;;  %s12185_s6 = inlined_call_operand.vmem [shape: f32[1,128], index: 6, kind: input, shape index: {}]   ;;  %s12186_s7 = inlined_call_operand.vmem [shape: f32[1,128], index: 7, kind: input, shape index: {}]   ;;  %s12187_s8 = inlined_call_operand.vmem [shape: f32[1,128], index: 8, kind: input, shape index: {}]   ;;  %s12188_s9 = inlined_call_operand.vmem [shape: f32[1,128], index: 9, kind: input, shape index: {}]   ;;  %s12189_s10 = inlined_call_operand.vmem [shape: f32[1,128], index: 10, kind: input, shape index: {}]   ;;  %s12190_s11 = inlined_call_operand.vmem [shape: f32[2,8,8,128], index: 11, kind: output, shape index: {}]  }
   0x1 LB: > { %s9940_s18 = sadd.s32 4294967295, %s9870_s17   ;;  %p8547_p0 = scmp.ge.s32.totalorder %s9870_s17, 1  ;;  %s9870_s17 = sphi %s9934_s17, %s21_s17  }
   0x2   : > { %p339_p1 = scmp.lt.s32.totalorder %s9870_s17, 3 }
   0x4   : > { %p340_p2 = pnand %p8547_p0, %p339_p1 }
   0x6   : > { %343 = sbr.rel (%p340_p2) target bundleno = 1058 (0x422), region = 64 }
   0xd   : > { %v9947_v0 = vld [vmem:[%s12181_s2] sm:$0xff]   ;;  %s8548_s21 = sshll.u32 %s9940_s18, 2  ;;  %v9953_v1 = vld [vmem:[%s12181_s2 + $0x8] sm:$0xff]   ;;  %v9961_v2 = vld [vmem:[%s12181_s2 + $0x10] sm:$0xff]   ;;  %v440_v3 = vlaneseq  ;;  %v9872_v4 = vmov 0   ;;  %p387_p4 = scmp.lt.s32.totalorder %s9940_s18, 1 }
   0xe   : > { %p381_p3 = scmp.lt.s32.totalorder %s8548_s21, 7  ;;  %9336 = vmatprep.subr.bf16.mxu1 %v9947_v0  ;;  %9763 = vset.pattern.permute.xlu0 %v9872_v4  ;;  %v9967_v5 = vld [vmem:[%s12181_s2 + $0x18] sm:$0xff]   ;;  %v9873_v7 = vmov 1966171168   ;;  %v1349_v10 = vld [vmem:[%s12180_s1] sm:$0xff]  ;;  %v1350_v15 = vld [vmem:[%s12180_s1 + $0x8] sm:$0xff] }
   0xf   : > { %9337 = vmatpush3.bf16.msra.mxu1 %v9947_v0  ;;  %9764 = vset.pattern.permute.xlu1 %v9872_v4  ;;  %v438_v8 = vunpack.c.l.s4 %v9873_v7  ;;  %v441_v9 = vshrl.u32 %v440_v3, 7  ;;  %v1351_v16 = vld [vmem:[%s12180_s1 + $0x10] sm:$0xff]  ;;  %v9992_v17 = vld [vmem:[%s12181_s2 + $0x20] sm:$0xff]   ;;  %v1352_v23 = vld [vmem:[%s12180_s1 + $0x18] sm:$0xff]  ;;  %s12475_s18 = smov (!%p387_p4, %s9940_s18), 1 }
  0x10   : > { %s12473_s21 = smov (!%p381_p3, %s8548_s21), 7  ;;  %9338 = vmatprep.subr.bf16.mxu1 %v9953_v1  ;;  %1362 = vperm.xlu0 %9763, %v1349_v10   ;;  %v1353_v28 = vld [vmem:[%s12180_s1 + $0x20] sm:$0xff]  ;;  %v10013_v29 = vld [vmem:[%s12181_s2 + $0x28] sm:$0xff]   ;;  %v1355_v50 = vld [vmem:[%s12180_s1 + $0x30] sm:$0xff] }
  0x11   : > { %s9752_s26 = smul.u32 72, %s12473_s21  ;;  %v439_v14 = vunpack.c.0.s8 %v438_v8  ;;  %1372 = vperm.xlu1 %9764, %v1351_v16   ;;  %v1354_v44 = vld [vmem:[%s12180_s1 + $0x28] sm:$0xff]  ;;  %v10036_v51 = vld [vmem:[%s12181_s2 + $0x30] sm:$0xff]   ;;  %v10044_v60 = vld [vmem:[%s12181_s2 + $0x38] sm:$0xff]  }
  0x12   : > { %v1357_v4 = vld [vmem:[%s12180_s1 + $0x40] sm:$0xff] }
  0x13   : > { %9339 = vmatpush3.bf16.msra.mxu1 %v9953_v1  ;;  %s9972_s12 = scalar_lea.vmem %s12179_s0, %s9752_s26  ;;  %v9995_v20 = vsub.s32 %v439_v14, %v441_v9 }
  0x14   : > { %9340 = vmatprep.subr.bf16.mxu1 %v9961_v2  ;;  %v8552_v6 = vld.sshfl [vmem:[%s9972_s12] sm:$0x33 pattern:$0x75316420]  ;;  %1367 = vperm.xlu0 %9763, %v1350_v15  }
  0x15   : > { %v8554_v11 = vld.sshfl [vmem:[%s9972_s12 + $0x8] sm:$0x33 pattern:$0x75316420]  ;;  %v436_v13 = vcombine.high %v8552_v6, %v8552_v6  ;;  %v443_v24 = vrot.slane %v8552_v6, %v9995_v20  ;;  %1377 = vperm.xlu1 %9764, %v1352_v23   ;;  %v1356_v6 = vld [vmem:[%s12180_s1 + $0x38] sm:$0xff] }
  0x16   : > { %v8553_v12 = vld.sshfl [vmem:[%s9972_s12 + $0x4] sm:$0x1 pattern:$0x75316420]  ;;  %v474_v18 = vcombine.high %v8554_v11, %v8554_v11  ;;  %v481_v27 = vrot.slane %v8554_v11, %v9995_v20 }
  0x17   : > { %9341 = vmatpush3.bf16.msra.mxu1 %v9961_v2  ;;  %v8556_v19 = vld.sshfl [vmem:[%s9972_s12 + $0x10] sm:$0x33 pattern:$0x75316420]  ;;  %v450_v25 = vrot.slane %v436_v13, %v9995_v20  ;;  %v466_v26 = vrot.slane %v8553_v12, %v9995_v20 }
  0x18   : > { %9342 = vmatprep.subr.bf16.mxu1 %v9967_v5  ;;  %v8555_v21 = vld.sshfl [vmem:[%s9972_s12 + $0xc] sm:$0x1 pattern:$0x75316420]  ;;  %v512_v22 = vcombine.high %v8556_v19, %v8556_v19  ;;  %v488_v30 = vrot.slane %v474_v18, %v9995_v20  ;;  %v519_v32 = vrot.slane %v8556_v19, %v9995_v20  ;;  %v489_v34 = vcombine.high %v481_v27, %v481_v27 }
  0x19   : > { %v504_v31 = vrot.slane %v8555_v21, %v9995_v20  ;;  %v781_v35 = vunpack.i.h.s16 %v481_v27  ;;  %v8570_v36 = vpack.i.b16 %v481_v27, %v466_v26  ;;  %v909_v37 = vcombine.low %v443_v24, %v450_v25  ;;  %v8557_v38 = vld.sshfl [vmem:[%s9972_s12 + $0x14] sm:$0x1 pattern:$0x75316420]  ;;  %1382 = vperm.xlu0 %9763, %v1353_v28   ;;  %1387 = vperm.xlu1 %9764, %v1354_v44   ;;  %v1358_v28 = vld [vmem:[%s12180_s1 + $0x48] sm:$0xff] }
  0x1a   : > { %v526_v33 = vrot.slane %v512_v22, %v9995_v20  ;;  %v490_v39 = vcombine.high %v488_v30, %v488_v30  ;;  %v783_v40 = vunpack.i.h.s16 %v488_v30  ;;  %v8590_v41 = vcombine.high %v443_v24, %v450_v25  ;;  %v8558_v42 = vld.sshfl [vmem:[%s9972_s12 + $0x18] sm:$0x33 pattern:$0x75316420] }
  0x1b   : > { %9343 = vmatpush3.bf16.msra.mxu1 %v9967_v5  ;;  %v527_v43 = vcombine.high %v519_v32, %v519_v32  ;;  %v785_v45 = vunpack.i.h.s16 %v489_v34  ;;  %v8571_v46 = vpack.i.b16 %v488_v30, %v781_v35  ;;  %v919_v47 = vrot.slane %v909_v37, %v9995_v20  ;;  %v10027_v49 = vld.sshfl [vmem:[%s9972_s12 + $0x1c] sm:$0x1 pattern:$0x75316420] }
  0x1c   : > { %9344 = vmatprep.subr.bf16.mxu1 %v9992_v17  ;;  %v528_v48 = vcombine.high %v526_v33, %v526_v33  ;;  %v787_v52 = vunpack.i.h.s16 %v490_v39  ;;  %v8572_v53 = vpack.i.b16 %v489_v34, %v783_v40  ;;  %v926_v54 = vrot.slane %v8590_v41, %v9995_v20  ;;  %v8560_v11 = vld.sshfl [vmem:[%s9972_s12 + $0x20] sm:$0x33 pattern:$0x75316420]  ;;  %v8743_v34 = vld [vmem:[%s12180_s1 + $0xb8] sm:$0xff] }
  0x1d   : > { %v542_v55 = vrot.slane %v8557_v38, %v9995_v20  ;;  %v8573_v56 = vpack.i.b16 %v490_v39, %v785_v45  ;;  %v911_v57 = vcombine.low %v8570_v36, %v8571_v46  ;;  %v550_v58 = vcombine.high %v8558_v42, %v8558_v42  ;;  %1392 = vperm.xlu0 %9763, %v1355_v50   ;;  %v8561_v16 = vld.sshfl [vmem:[%s9972_s12 + $0x24] sm:$0x1 pattern:$0x75316420] }
  0x1e   : > { %v557_v59 = vrot.slane %v8558_v42, %v9995_v20  ;;  %v941_v61 = vcombine.low %v919_v47, %v926_v54  ;;  %v8574_v62 = vpack.i.b16 %v504_v31, %v787_v52  ;;  %v959_v63 = vcombine.low %v526_v33, %v527_v43  ;;  %v8562_v22 = vld.sshfl [vmem:[%s9972_s12 + $0x28] sm:$0x33 pattern:$0x75316420]  ;;  %1397 = vperm.xlu1 %9764, %v1356_v6   ;;  %v8744_v43 = vld [vmem:[%s12180_s1 + $0xc0] sm:$0xff] }
  0x1f   : > { %9345 = vmatpush3.bf16.msra.mxu1 %v9992_v17  ;;  %v580_v3 = vrot.slane %v10027_v49, %v9995_v20  ;;  %v912_v7 = vcombine.low %v8572_v53, %v8573_v56  ;;  %v933_v8 = vrot.slane %v911_v57, %v9995_v20  ;;  %v564_v9 = vrot.slane %v550_v58, %v9995_v20  ;;  %v8745_v49 = vld [vmem:[%s12180_s1 + $0xc8] sm:$0xff] }
  0x20   : > { %9346 = vmatprep.subr.bf16.mxu1 %v10013_v29  ;;  %v565_v10 = vcombine.high %v557_v59, %v557_v59  ;;  %v949_v12 = vrot.slane %v941_v61, %v9995_v20  ;;  %v799_v13 = vunpack.i.h.s16 %v557_v59  ;;  %v8575_v14 = vpack.i.b16 %v557_v59, %v542_v55  ;;  %v8564_v55 = vld.sshfl [vmem:[%s9972_s12 + $0x30] sm:$0x33 pattern:$0x75316420] }
  0x21   : > { %v958_v15 = vcombine.low %v8574_v62, %v519_v32  ;;  %v940_v18 = vrot.slane %v912_v7, %v9995_v20  ;;  %v801_v19 = vunpack.i.h.s16 %v564_v9  ;;  %v975_v21 = vrot.slane %v959_v63, %v9995_v20  ;;  %1402 = vperm.xlu0 %9763, %v1357_v4   ;;  %v8565_v61 = vld.sshfl [vmem:[%s9972_s12 + $0x34] sm:$0x1 pattern:$0x75316420] }
  0x22   : > { %v566_v23 = vcombine.high %v564_v9, %v564_v9  ;;  %v8576_v24 = vpack.i.b16 %v564_v9, %v799_v13  ;;  %v960_v25 = vcombine.low %v528_v48, %v8575_v14  ;;  %v588_v27 = vcombine.high %v8560_v11, %v8560_v11  ;;  %1407 = vperm.xlu1 %9764, %v1358_v28   ;;  %v8563_v48 = vld.sshfl [vmem:[%s9972_s12 + $0x2c] sm:$0x1 pattern:$0x75316420] }
  0x23   : > { %9347 = vmatpush3.bf16.msra.mxu1 %v10013_v29  ;;  %v968_v26 = vrot.slane %v958_v15, %v9995_v20  ;;  %v942_v30 = vcombine.low %v933_v8, %v940_v18  ;;  %v8577_v31 = vpack.i.b16 %v565_v10, %v801_v19  ;;  %v595_v32 = vrot.slane %v8560_v11, %v9995_v20  ;;  %v8566_v4 = vld.sshfl [vmem:[%s9972_s12 + $0x38] sm:$0x33 pattern:$0x75316420] }
  0x24   : > { %9348 = vmatprep.subr.bf16.mxu1 %v10036_v51  ;;  %v618_v33 = vrot.slane %v8561_v16, %v9995_v20  ;;  %v982_v35 = vrot.slane %v960_v25, %v9995_v20  ;;  %v602_v37 = vrot.slane %v588_v27, %v9995_v20  ;;  %v626_v38 = vcombine.high %v8562_v22, %v8562_v22  ;;  %v8747_v15 = vld [vmem:[%s12180_s1 + $0xd8] sm:$0xff] }
  0x25   : > { %v990_v36 = vcombine.low %v968_v26, %v975_v21  ;;  %v956_v39 = vrot.slane %v942_v30, %v9995_v20  ;;  %v961_v40 = vcombine.low %v8576_v24, %v8577_v31  ;;  %v633_v41 = vrot.slane %v8562_v22, %v9995_v20  ;;  %3950 = vperm.xlu0 %9763, %v8743_v34   ;;  %v8567_v31 = vld.sshfl [vmem:[%s9972_s12 + $0x3c] sm:$0x1 pattern:$0x75316420] }
  0x26   : > { %v803_v42 = vunpack.i.h.s16 %v565_v10  ;;  %v640_v45 = vrot.slane %v626_v38, %v9995_v20  ;;  %v805_v46 = vunpack.i.h.s16 %v566_v23  ;;  %v1008_v47 = vcombine.low %v595_v32, %v602_v37  ;;  %3960 = vperm.xlu1 %9764, %v8745_v49  }
  0x27   : > { %9349 = vmatpush3.bf16.msra.mxu1 %v10036_v51  ;;  %v998_v44 = vrot.slane %v990_v36, %v9995_v20  ;;  %v957_v50 = vcombine.low %v949_v12, %v956_v39  ;;  %v989_v52 = vrot.slane %v961_v40, %v9995_v20  ;;  %v817_v53 = vunpack.i.h.s16 %v633_v41  ;;  %v8568_v36 = vld.sshfl [vmem:[%s9972_s12 + $0x40] sm:$0x33 pattern:$0x75316420] }
  0x28   : > { %9350 = vmatprep.subr.bf16.mxu1 %v10044_v60  ;;  %v8578_v54 = vpack.i.b16 %v566_v23, %v803_v42  ;;  %v8579_v56 = vpack.i.b16 %v580_v3, %v805_v46  ;;  %v8580_v57 = vpack.i.b16 %v633_v41, %v618_v33  ;;  %v8591_v58 = vcombine.high %v595_v32, %v602_v37  ;;  %v8749_v37 = vld [vmem:[%s12180_s1 + $0xe8] sm:$0xff]  ;;  %v8746_v42 = vld [vmem:[%s12180_s1 + $0xd0] sm:$0xff] }
  0x29   : > { %v1024_v59 = vrot.slane %v1008_v47, %v9995_v20  ;;  %9352 = vmatprep.mubr.bf16.mxu1 %v957_v50  ;;  %v991_v62 = vcombine.low %v982_v35, %v989_v52  ;;  %v8581_v63 = vpack.i.b16 %v640_v45, %v817_v53  ;;  %v641_v6 = vcombine.high %v633_v41, %v633_v41  ;;  %v8569_v52 = vld.sshfl [vmem:[%s9972_s12 + $0x44] sm:$0x1 pattern:$0x75316420] }
  0x2a   : > { %v642_v7 = vcombine.high %v640_v45, %v640_v45  ;;  %v1007_v8 = vcombine.low %v8578_v54, %v8579_v56  ;;  %v1031_v9 = vrot.slane %v8591_v58, %v9995_v20  ;;  %v656_v10 = vrot.slane %v8563_v48, %v9995_v20  ;;  %3955 = vperm.xlu0 %9763, %v8744_v43  }
  0x2b   : > { %9351 = vmatpush3.bf16.msra.mxu1 %v10044_v60  ;;  %v664_v11 = vcombine.high %v8564_v55, %v8564_v55  ;;  %v1005_v3 = vrot.slane %v991_v62, %v9995_v20  ;;  %v1010_v12 = vcombine.low %v8580_v57, %v8581_v63  ;;  %v671_v13 = vrot.slane %v8564_v55, %v9995_v20  ;;  %v8750_v57 = vld [vmem:[%s12180_s1 + $0xf0] sm:$0xff] }
  0x2c   : > { %9364 = vmatprep.subr.bf16.mxu1 %v9947_v0  ;;  %v694_v14 = vrot.slane %v8565_v61, %v9995_v20  ;;  %v1017_v16 = vrot.slane %v1007_v8, %v9995_v20  ;;  %v709_v19 = vrot.slane %v8566_v4, %v9995_v20  ;;  %v819_v21 = vunpack.i.h.s16 %v640_v45  ;;  %3965 = vperm.xlu1 %9764, %v8746_v42   ;;  %v8742_v63 = vld [vmem:[%s12180_s1 + $0xb0] sm:$0xff] }
  0x2d   : > { %v678_v18 = vrot.slane %v664_v11, %v9995_v20  ;;  %v1006_v22 = vcombine.low %v998_v44, %v1005_v3  ;;  %v1038_v23 = vrot.slane %v1010_v12, %v9995_v20  ;;  %v679_v24 = vcombine.high %v671_v13, %v671_v13  ;;  %v8626_v12 = vld.sshfl [vmem:[%s9972_s12 + $0x48] sm:$0x33 pattern:$0x75316420] }
  0x2e   : > { %v821_v25 = vunpack.i.h.s16 %v641_v6  ;;  %v1039_v26 = vcombine.low %v1017_v16, %v1024_v59  ;;  %v823_v28 = vunpack.i.h.s16 %v642_v7  ;;  %v8582_v30 = vpack.i.b16 %v641_v6, %v819_v21  ;;  %3970 = vperm.xlu0 %9763, %v8747_v15  }
  0x2f   : > { %v680_v27 = vcombine.high %v678_v18, %v678_v18  ;;  %9353 = vmatmul.mubr.bf16.vlgmr.msra.gmra.mrb[0].mxu1 %v1006_v22  ;;  %v1040_v32 = vcombine.low %v1031_v9, %v1038_v23  ;;  %v8585_v34 = vpack.i.b16 %v709_v19, %v694_v14  ;;  %v1058_v35 = vcombine.low %v678_v18, %v679_v24  ;;  %v8627_v18 = vld.sshfl [vmem:[%s9972_s12 + $0x4c] sm:$0x1 pattern:$0x75316420] }
  0x30   : > { %v8583_v33 = vpack.i.b16 %v642_v7, %v821_v25  ;;  %9365 = vmatpush3.bf16.msra.mxu1 %v9947_v0  ;;  %v1047_v38 = vrot.slane %v1039_v26, %v9995_v20  ;;  %v8584_v39 = vpack.i.b16 %v656_v10, %v823_v28  ;;  %v702_v40 = vcombine.high %v8566_v4, %v8566_v4  ;;  %v8628_v25 = vld.sshfl [vmem:[%s9972_s12 + $0x50] sm:$0x33 pattern:$0x75316420]  ;;  %v8748_v26 = vld [vmem:[%s12180_s1 + $0xe0] sm:$0xff] }
  0x31   : > { %v717_v41 = vcombine.high %v709_v19, %v709_v19  ;;  %9366 = vmatprep.subr.bf16.mxu1 %v9953_v1  ;;  %v1054_v43 = vrot.slane %v1040_v32, %v9995_v20  ;;  %v1059_v45 = vcombine.low %v680_v27, %v8585_v34  ;;  %v1080_v46 = vrot.slane %v1058_v35, %v9995_v20 }
  0x32   : > { %v1056_v44 = vcombine.low %v8582_v30, %v8583_v33  ;;  %v1057_v47 = vcombine.low %v8584_v39, %v671_v13  ;;  %v716_v48 = vrot.slane %v702_v40, %v9995_v20  ;;  %v732_v49 = vrot.slane %v8567_v31, %v9995_v20  ;;  %3980 = vperm.xlu0 %9763, %v8749_v37   ;;  %v8629_v30 = vld.sshfl [vmem:[%s9972_s12 + $0x54] sm:$0x1 pattern:$0x75316420]  ;;  %v8818_v40 = vld [vmem:[%s12180_s1 + $0x118] sm:$0xff] }
  0x33   : > { %v740_v50 = vcombine.high %v8568_v36, %v8568_v36  ;;  %v1055_v53 = vcombine.low %v1047_v38, %v1054_v43  ;;  %v1087_v55 = vrot.slane %v1059_v45, %v9995_v20  ;;  %v747_v56 = vrot.slane %v8568_v36, %v9995_v20  ;;  %3945 = vperm.xlu1 %9764, %v8742_v63   ;;  %v8751_v45 = vld [vmem:[%s12180_s1 + $0xf8] sm:$0xff] }
  0x34   : > { %v1066_v54 = vrot.slane %v1056_v44, %v9995_v20  ;;  %9367 = vmatpush3.bf16.msra.mxu1 %v9953_v1  ;;  %v1073_v58 = vrot.slane %v1057_v47, %v9995_v20  ;;  %v718_v59 = vcombine.high %v716_v48, %v716_v48  ;;  %v835_v62 = vunpack.i.h.s16 %v709_v19  ;;  %v8817_v19 = vld [vmem:[%s12180_s1 + $0x110] sm:$0xff] }
  0x35   : > { %v754_v61 = vrot.slane %v740_v50, %v9995_v20  ;;  %9356 = vmatprep.mubr.bf16.mxu1 %v1055_v53  ;;  %v1089_v4 = vcombine.low %v1080_v46, %v1087_v55  ;;  %9368 = vmatprep.subr.bf16.mxu1 %v9961_v2  ;;  %v837_v6 = vunpack.i.h.s16 %v716_v48  ;;  %v839_v7 = vunpack.i.h.s16 %v717_v41  ;;  %v8630_v50 = vld.sshfl [vmem:[%s9972_s12 + $0x58] sm:$0x33 pattern:$0x75316420] }
  0x36   : > { %v770_v8 = vrot.slane %v8569_v52, %v9995_v20  ;;  %v1088_v9 = vcombine.low %v1066_v54, %v1073_v58  ;;  %v841_v10 = vunpack.i.h.s16 %v718_v59  ;;  %v8586_v11 = vpack.i.b16 %v716_v48, %v835_v62  ;;  %3985 = vperm.xlu0 %9763, %v8750_v57  }
  0x37   : > { %v1107_v3 = vcombine.low %v747_v56, %v754_v61  ;;  %v1103_v13 = vrot.slane %v1089_v4, %v9995_v20  ;;  %v8587_v14 = vpack.i.b16 %v717_v41, %v837_v6  ;;  %v8588_v15 = vpack.i.b16 %v718_v59, %v839_v7  ;;  %3975 = vperm.xlu1 %9764, %v8748_v26   ;;  %v8821_v59 = vld [vmem:[%s12180_s1 + $0x130] sm:$0xff]  ;;  %v8631_v4 = vld.sshfl [vmem:[%s9972_s12 + $0x5c] sm:$0x1 pattern:$0x75316420]  ;;  %v8823_v26 = vld [vmem:[%s12180_s1 + $0x140] sm:$0xff] }
  0x38   : > { %v8592_v16 = vcombine.high %v747_v56, %v754_v61  ;;  %v1096_v21 = vrot.slane %v1088_v9, %v9995_v20  ;;  %9369 = vmatpush3.bf16.msra.mxu1 %v9961_v2  ;;  %v8589_v22 = vpack.i.b16 %v732_v49, %v841_v10  ;;  %v851_v24 = vunpack.i.l.s16 %v770_v8  ;;  %v8632_v10 = vld.sshfl [vmem:[%s9972_s12 + $0x60] sm:$0x33 pattern:$0x75316420] }
  0x39   : > { %v1129_v23 = vrot.slane %v1107_v3, %v9995_v20  ;;  %9370 = vmatprep.subr.bf16.mxu1 %v9967_v5  ;;  %v1105_v27 = vcombine.low %v8586_v11, %v8587_v14  ;;  %v1822_v31 = vcombine.high %v8626_v12, %v8626_v12  ;;  %v1829_v32 = vrot.slane %v8626_v12, %v9995_v20 }
  0x3a   : > { %v1136_v28 = vrot.slane %v8592_v16, %v9995_v20  ;;  %v1104_v33 = vcombine.low %v1096_v21, %v1103_v13  ;;  %v1106_v2 = vcombine.low %v8588_v15, %v8589_v22  ;;  %v1160_v34 = vrot.slane %v851_v24, %v9995_v20  ;;  %5203 = vperm.xlu0 %9763, %v8817_v19   ;;  %v10186_v15 = vld.sshfl [vmem:[%s9972_s12 + $0x64] sm:$0x1 pattern:$0x75316420] }
  0x3b   : > { %v1852_v35 = vrot.slane %v8627_v18, %v9995_v20  ;;  %v1115_v36 = vrot.slane %v1105_v27, %v9995_v20  ;;  %v1836_v38 = vrot.slane %v1822_v31, %v9995_v20  ;;  %v1860_v39 = vcombine.high %v8628_v25, %v8628_v25  ;;  %3990 = vperm.xlu1 %9764, %v8751_v45   ;;  %v8634_v21 = vld.sshfl [vmem:[%s9972_s12 + $0x68] sm:$0x33 pattern:$0x75316420] }
  0x3c   : > { %v1138_v37 = vcombine.low %v1129_v23, %v1136_v28  ;;  %9357 = vmatmul.mubr.bf16.gmra.mrb[4].mxu1 %v1104_v33  ;;  %v1122_v41 = vrot.slane %v1106_v2, %v9995_v20  ;;  %v1167_v42 = vrot.slane %v1160_v34, %v9995_v20  ;;  %v1867_v43 = vrot.slane %v8628_v25, %v9995_v20  ;;  %v8635_v34 = vld.sshfl [vmem:[%s9972_s12 + $0x6c] sm:$0x1 pattern:$0x75316420] }
  0x3d   : > { %v1890_v44 = vrot.slane %v8629_v30, %v9995_v20  ;;  %9371 = vmatpush3.bf16.msra.mxu1 %v9967_v5  ;;  %v1874_v47 = vrot.slane %v1860_v39, %v9995_v20  ;;  %v2279_v48 = vcombine.low %v1829_v32, %v1836_v38  ;;  %v8664_v49 = vcombine.high %v1829_v32, %v1836_v38  ;;  %v8819_v32 = vld [vmem:[%s12180_s1 + $0x120] sm:$0xff]  ;;  %v8824_v45 = vld [vmem:[%s12180_s1 + $0x148] sm:$0xff] }
  0x3e   : > { %v1152_v46 = vrot.slane %v1138_v37, %v9995_v20  ;;  %v1137_v52 = vcombine.low %v1115_v36, %v1122_v41  ;;  %9372 = vmatprep.subr.bf16.mxu1 %v9992_v17  ;;  %v1875_v53 = vcombine.high %v1867_v43, %v1867_v43  ;;  %v2167_v54 = vunpack.i.h.s16 %v1867_v43  ;;  %5208 = vperm.xlu0 %9763, %v8818_v40   ;;  %v8636_v41 = vld.sshfl [vmem:[%s9972_s12 + $0x70] sm:$0x33 pattern:$0x75316420] }
  0x3f   : > { %v8644_v55 = vpack.i.b16 %v1867_v43, %v1852_v35  ;;  %v1876_v56 = vcombine.high %v1874_v47, %v1874_v47  ;;  %v2169_v57 = vunpack.i.h.s16 %v1874_v47  ;;  %v2289_v5 = vrot.slane %v2279_v48, %v9995_v20  ;;  %5213 = vperm.xlu1 %9764, %v8819_v32  }
  0x40   : > { %v2296_v58 = vrot.slane %v8664_v49, %v9995_v20  ;;  %v1145_v61 = vrot.slane %v1137_v52, %v9995_v20  ;;  %v2171_v62 = vunpack.i.h.s16 %v1875_v53  ;;  %v8645_v63 = vpack.i.b16 %v1874_v47, %v2167_v54 }
  0x41   : > { %v1898_v6 = vcombine.high %v8630_v50, %v8630_v50  ;;  %9373 = vmatpush3.bf16.msra.mxu1 %v9992_v17  ;;  %v2173_v7 = vunpack.i.h.s16 %v1876_v56  ;;  %v8646_v8 = vpack.i.b16 %v1875_v53, %v2169_v57  ;;  %v1905_v11 = vrot.slane %v8630_v50, %v9995_v20  ;;  %v8820_v50 = vld [vmem:[%s12180_s1 + $0x128] sm:$0xff] }
  0x42   : > { %v2311_v9 = vcombine.low %v2289_v5, %v2296_v58  ;;  %v1153_v3 = vcombine.low %v1145_v61, %v1152_v46  ;;  %9374 = vmatprep.subr.bf16.mxu1 %v10013_v29  ;;  %v8647_v12 = vpack.i.b16 %v1876_v56, %v2171_v62  ;;  %v2281_v13 = vcombine.low %v8644_v55, %v8645_v63 }
  0x43   : > { %v1912_v14 = vrot.slane %v1898_v6, %v9995_v20  ;;  %v8648_v16 = vpack.i.b16 %v1890_v44, %v2173_v7  ;;  %v1913_v17 = vcombine.high %v1905_v11, %v1905_v11  ;;  %v1928_v19 = vrot.slane %v8631_v4, %v9995_v20  ;;  %5223 = vperm.xlu0 %9763, %v8821_v59   ;;  %v8637_v4 = vld.sshfl [vmem:[%s9972_s12 + $0x74] sm:$0x1 pattern:$0x75316420]  ;;  %v8816_v6 = vld [vmem:[%s12180_s1 + $0x108] sm:$0xff] }
  0x44   : > { %v10189_v18 = vrot.slane %v2311_v9, %v9995_v20  ;;  %9360 = vmatprep.mubr.bf16.mxu1 %v1153_v3  ;;  %v2282_v22 = vcombine.low %v8646_v8, %v8647_v12  ;;  %v2303_v23 = vrot.slane %v2281_v13, %v9995_v20  ;;  %v1936_v25 = vcombine.high %v8632_v10, %v8632_v10 }
  0x45   : > { %v1914_v24 = vcombine.high %v1912_v14, %v1912_v14  ;;  %9361 = vmatmul.mubr.bf16.gmra.mrb[8].mxu1 %v1167_v42  ;;  %v1943_v27 = vrot.slane %v8632_v10, %v9995_v20  ;;  %v2328_v28 = vcombine.low %v8648_v16, %v1905_v11  ;;  %v2329_v30 = vcombine.low %v1912_v14, %v1913_v17  ;;  %v8638_v11 = vld.sshfl [vmem:[%s9972_s12 + $0x78] sm:$0x33 pattern:$0x75316420] }
  0x46   : > { %v1966_v31 = vrot.slane %v10186_v15, %v9995_v20  ;;  %9375 = vmatpush3.bf16.msra.mxu1 %v10013_v29  ;;  %v2310_v33 = vrot.slane %v2282_v22, %v9995_v20  ;;  %v1950_v2 = vrot.slane %v1936_v25, %v9995_v20  ;;  %v1974_v35 = vcombine.high %v8634_v21, %v8634_v21  ;;  %v8639_v14 = vld.sshfl [vmem:[%s9972_s12 + $0x7c] sm:$0x1 pattern:$0x75316420] }
  0x47   : > { %v1981_v36 = vrot.slane %v8634_v21, %v9995_v20  ;;  %9376 = vmatprep.subr.bf16.mxu1 %v10036_v51  ;;  %v1951_v37 = vcombine.high %v1943_v27, %v1943_v27  ;;  %v2185_v38 = vunpack.i.h.s16 %v1943_v27  ;;  %v8649_v39 = vpack.i.b16 %v1943_v27, %v1928_v19  ;;  %5233 = vperm.xlu0 %9763, %v8823_v26   ;;  %v8640_v17 = vld.sshfl [vmem:[%s9972_s12 + $0x80] sm:$0x33 pattern:$0x75316420] }
  0x48   : > { %v2338_v40 = vrot.slane %v2328_v28, %v9995_v20  ;;  %v2312_v42 = vcombine.low %v2303_v23, %v2310_v33  ;;  %v2187_v43 = vunpack.i.h.s16 %v1950_v2  ;;  %v2345_v29 = vrot.slane %v2329_v30, %v9995_v20  ;;  %5218 = vperm.xlu1 %9764, %v8820_v50   ;;  %v8669_v30 = vld [vmem:[%s12180_s1 + $0x68] sm:$0xff] }
  0x49   : > { %v1952_v44 = vcombine.high %v1950_v2, %v1950_v2  ;;  %v8650_v46 = vpack.i.b16 %v1950_v2, %v2185_v38  ;;  %v2330_v47 = vcombine.low %v1914_v24, %v8649_v39  ;;  %v1988_v48 = vrot.slane %v1974_v35, %v9995_v20 }
  0x4a   : > { %v2004_v49 = vrot.slane %v8635_v34, %v9995_v20  ;;  %9377 = vmatpush3.bf16.msra.mxu1 %v10036_v51  ;;  %v2326_v52 = vrot.slane %v2312_v42, %v9995_v20  ;;  %v8651_v53 = vpack.i.b16 %v1951_v37, %v2187_v43  ;;  %v2360_v54 = vcombine.low %v2338_v40, %v2345_v29  ;;  %v8668_v51 = vld [vmem:[%s12180_s1 + $0x60] sm:$0xff]  ;;  %v8822_v34 = vld [vmem:[%s12180_s1 + $0x138] sm:$0xff] }
  0x4b   : > { %v2012_v55 = vcombine.high %v8636_v41, %v8636_v41  ;;  %9378 = vmatprep.subr.bf16.mxu1 %v10044_v60  ;;  %v2352_v56 = vrot.slane %v2330_v47, %v9995_v20  ;;  %v2019_v57 = vrot.slane %v8636_v41, %v9995_v20  ;;  %v2189_v5 = vunpack.i.h.s16 %v1951_v37  ;;  %5238 = vperm.xlu0 %9763, %v8824_v45   ;;  %v10258_v43 = vld.sshfl [vmem:[%s9972_s12 + $0x84] sm:$0x1 pattern:$0x75316420] }
  0x4c   : > { %v2191_v58 = vunpack.i.h.s16 %v1952_v44  ;;  %v2327_v59 = vcombine.low %v10189_v18, %v2326_v52  ;;  %v2331_v61 = vcombine.low %v8650_v46, %v8651_v53  ;;  %v2368_v62 = vrot.slane %v2360_v54, %v9995_v20  ;;  %5198 = vperm.xlu1 %9764, %v8816_v6   ;;  %v8672_v47 = vld [vmem:[%s12180_s1 + $0x80] sm:$0xff]  ;;  %v8642_v53 = vld.sshfl [vmem:[%s9972_s12 + $0x88] sm:$0x33 pattern:$0x75316420] }
  0x4d   : > { %v2026_v63 = vrot.slane %v2012_v55, %v9995_v20  ;;  %v2203_v7 = vunpack.i.h.s16 %v2019_v57  ;;  %v8652_v8 = vpack.i.b16 %v1952_v44, %v2189_v5  ;;  %v8654_v10 = vpack.i.b16 %v2019_v57, %v2004_v49 }
  0x4e   : > { %v8653_v9 = vpack.i.b16 %v1966_v31, %v2191_v58  ;;  %9379 = vmatpush3.bf16.msra.mxu1 %v10044_v60  ;;  %9380 = vmatprep.mubr.bf16.mxu1 %v2327_v59  ;;  %v2359_v3 = vrot.slane %v2331_v61, %v9995_v20  ;;  %v2378_v12 = vcombine.low %v1981_v36, %v1988_v48  ;;  %v8643_v58 = vld.sshfl [vmem:[%s9972_s12 + $0x8c] sm:$0x1 pattern:$0x75316420] }
  0x4f   : > { %v8665_v13 = vcombine.high %v1981_v36, %v1988_v48  ;;  %v2205_v15 = vunpack.i.h.s16 %v2026_v63  ;;  %9392 = vmatprep.subr.bf16.mxu1 %v9947_v0  ;;  %v8655_v16 = vpack.i.b16 %v2026_v63, %v2203_v7  ;;  %v2027_v19 = vcombine.high %v2019_v57, %v2019_v57  ;;  %2672 = vperm.xlu0 %9763, %v8668_v51   ;;  %v8825_v48 = vld [vmem:[%s12180_s1 + $0x150] sm:$0xff] }
  0x50   : > { %v2377_v18 = vcombine.low %v8652_v8, %v8653_v9  ;;  %v2028_v21 = vcombine.high %v2026_v63, %v2026_v63  ;;  %v2361_v22 = vcombine.low %v2352_v56, %v2359_v3  ;;  %v2394_v23 = vrot.slane %v2378_v12, %v9995_v20  ;;  %5228 = vperm.xlu1 %9764, %v8822_v34   ;;  %v8701_v3 = vld.sshfl [vmem:[%s9972_s12 + $0x90] sm:$0x33 pattern:$0x75316420]  ;;  %v10290_v12 = vld [vmem:[%s12181_s2 + $0x8] sm:$0xff]  }
  0x51   : > { %v2401_v24 = vrot.slane %v8665_v13, %v9995_v20  ;;  %v2042_v60 = vrot.slane %v8637_v4, %v9995_v20  ;;  %v2380_v25 = vcombine.low %v8654_v10, %v8655_v16  ;;  %v2050_v27 = vcombine.high %v8638_v11, %v8638_v11 }
  0x52   : > { %v2387_v26 = vrot.slane %v2377_v18, %v9995_v20  ;;  %v2057_v28 = vrot.slane %v8638_v11, %v9995_v20  ;;  %v2375_v31 = vrot.slane %v2361_v22, %v9995_v20  ;;  %v2080_v32 = vrot.slane %v8639_v14, %v9995_v20 }
  0x53   : > { %v2095_v33 = vrot.slane %v8640_v17, %v9995_v20  ;;  %v2207_v2 = vunpack.i.h.s16 %v2027_v19  ;;  %v2408_v35 = vrot.slane %v2380_v25, %v9995_v20  ;;  %v2064_v37 = vrot.slane %v2050_v27, %v9995_v20  ;;  %2677 = vperm.xlu0 %9763, %v8669_v30   ;;  %v10308_v30 = vld.sshfl [vmem:[%s9972_s12 + $0x9c] sm:$0x1 pattern:$0x75316420] }
  0x54   : > { %v2409_v36 = vcombine.low %v2387_v26, %v2394_v23  ;;  %v2065_v38 = vcombine.high %v2057_v28, %v2057_v28  ;;  %v2376_v39 = vcombine.low %v2368_v62, %v2375_v31  ;;  %v2209_v40 = vunpack.i.h.s16 %v2028_v21  ;;  %5243 = vperm.xlu1 %9764, %v8825_v48   ;;  %v8702_v23 = vld.sshfl [vmem:[%s9972_s12 + $0x94] sm:$0x1 pattern:$0x75316420] }
  0x55   : > { %v8656_v41 = vpack.i.b16 %v2027_v19, %v2205_v15  ;;  %v8657_v42 = vpack.i.b16 %v2028_v21, %v2207_v2  ;;  %v2410_v29 = vcombine.low %v2401_v24, %v2408_v35  ;;  %v2066_v45 = vcombine.high %v2064_v37, %v2064_v37  ;;  %v8703_v24 = vld.sshfl [vmem:[%s9972_s12 + $0x98] sm:$0x33 pattern:$0x75316420] }
  0x56   : > { %v2417_v44 = vrot.slane %v2409_v36, %v9995_v20  ;;  %v8659_v46 = vpack.i.b16 %v2095_v33, %v2080_v32  ;;  %9381 = vmatmul.mubr.bf16.vlgmr.msra.gmra.mrb[12].mxu1 %v2376_v39  ;;  %v8658_v49 = vpack.i.b16 %v2042_v60, %v2209_v40  ;;  %v2428_v52 = vcombine.low %v2064_v37, %v2065_v38  ;;  %v8675_v60 = vld [vmem:[%s12180_s1 + $0x98] sm:$0xff]  ;;  %v8705_v48 = vld.sshfl [vmem:[%s9972_s12 + $0xa0] sm:$0x33 pattern:$0x75316420] }
  0x57   : > { %v2426_v50 = vcombine.low %v8656_v41, %v8657_v42  ;;  %v2088_v54 = vcombine.high %v8640_v17, %v8640_v17  ;;  %9393 = vmatpush3.bf16.msra.mxu1 %v9947_v0  ;;  %v2424_v55 = vrot.slane %v2410_v29, %v9995_v20  ;;  %v2103_v57 = vcombine.high %v2095_v33, %v2095_v33  ;;  %v8674_v0 = vld [vmem:[%s12180_s1 + $0x90] sm:$0xff]  ;;  %v8671_v38 = vld [vmem:[%s12180_s1 + $0x78] sm:$0xff] }
  0x58   : > { %v2429_v56 = vcombine.low %v2066_v45, %v8659_v46  ;;  %v2118_v5 = vrot.slane %v10258_v43, %v9995_v20  ;;  %9394 = vmatprep.subr.bf16.mxu1 %v9953_v1  ;;  %v2427_v51 = vcombine.low %v8658_v49, %v2057_v28  ;;  %v2450_v61 = vrot.slane %v2428_v52, %v9995_v20  ;;  %v8670_v1 = vld [vmem:[%s12180_s1 + $0x70] sm:$0xff]  ;;  %v10321_v40 = vld [vmem:[%s12181_s2 + $0x18] sm:$0xff]  }
  0x59   : > { %v2436_v59 = vrot.slane %v2426_v50, %v9995_v20  ;;  %v2102_v62 = vrot.slane %v2088_v54, %v9995_v20  ;;  %v2425_v63 = vcombine.low %v2417_v44, %v2424_v55  ;;  %v2126_v6 = vcombine.high %v8642_v53, %v8642_v53  ;;  %2692 = vperm.xlu0 %9763, %v8672_v47   ;;  %v10298_v17 = vld [vmem:[%s12181_s2 + $0x10] sm:$0xff]  }
  0x5a   : > { %v2457_v4 = vrot.slane %v2429_v56, %v9995_v20  ;;  %v2133_v7 = vrot.slane %v8642_v53, %v9995_v20  ;;  %v2443_v8 = vrot.slane %v2427_v51, %v9995_v20  ;;  %v2221_v10 = vunpack.i.h.s16 %v2095_v33  ;;  %2682 = vperm.xlu1 %9764, %v8670_v1   ;;  %v1359_v29 = vld [vmem:[%s12180_s1 + $0x50] sm:$0x1]  ;;  %v8707_v1 = vld.sshfl [vmem:[%s9972_s12 + $0xa8] sm:$0x33 pattern:$0x75316420] }
  0x5b   : > { %v2104_v9 = vcombine.high %v2102_v62, %v2102_v62  ;;  %v2223_v11 = vunpack.i.h.s16 %v2102_v62  ;;  %9395 = vmatpush3.bf16.msra.mxu1 %v10290_v12  ;;  %9384 = vmatprep.mubr.bf16.mxu1 %v2425_v63  ;;  %v2140_v14 = vrot.slane %v2126_v6, %v9995_v20  ;;  %v2225_v15 = vunpack.i.h.s16 %v2103_v57 }
  0x5c   : > { %v2459_v13 = vcombine.low %v2450_v61, %v2457_v4  ;;  %v2156_v16 = vrot.slane %v8643_v58, %v9995_v20  ;;  %v2458_v18 = vcombine.low %v2436_v59, %v2443_v8  ;;  %9396 = vmatprep.subr.bf16.mxu1 %v10298_v17  ;;  %v8660_v21 = vpack.i.b16 %v2102_v62, %v2221_v10  ;;  %v10343_v58 = vld [vmem:[%s12181_s2 + $0x20] sm:$0xff]  }
  0x5d   : > { %v2227_v19 = vunpack.i.h.s16 %v2104_v9  ;;  %v8661_v22 = vpack.i.b16 %v2103_v57, %v2223_v11  ;;  %v8662_v26 = vpack.i.b16 %v2104_v9, %v2225_v15  ;;  %v2477_v27 = vcombine.low %v2133_v7, %v2140_v14  ;;  %2702 = vperm.xlu0 %9763, %v8674_v0   ;;  %v8706_v62 = vld.sshfl [vmem:[%s9972_s12 + $0xa4] sm:$0x1 pattern:$0x75316420]  ;;  %v8667_v0 = vld [vmem:[%s12180_s1 + $0x58] sm:$0xff] }
  0x5e   : > { %v2473_v25 = vrot.slane %v2459_v13, %v9995_v20  ;;  %v8666_v28 = vcombine.high %v2133_v7, %v2140_v14  ;;  %v2466_v31 = vrot.slane %v2458_v18, %v9995_v20  ;;  %v2237_v2 = vunpack.i.l.s16 %v2156_v16  ;;  %2687 = vperm.xlu1 %9764, %v8671_v38   ;;  %v8709_v18 = vld.sshfl [vmem:[%s9972_s12 + $0xb0] sm:$0x33 pattern:$0x75316420] }
  0x5f   : > { %v8663_v32 = vpack.i.b16 %v2118_v5, %v2227_v19  ;;  %v2475_v33 = vcombine.low %v8660_v21, %v8661_v22  ;;  %9397 = vmatpush3.bf16.msra.mxu1 %v10298_v17  ;;  %v2499_v34 = vrot.slane %v2477_v27, %v9995_v20  ;;  %v3100_v36 = vcombine.high %v8701_v3, %v8701_v3  ;;  %v10363_v21 = vld [vmem:[%s12181_s2 + $0x28] sm:$0xff]  }
  0x60   : > { %v2506_v35 = vrot.slane %v8666_v28, %v9995_v20  ;;  %v3107_v37 = vrot.slane %v8701_v3, %v9995_v20  ;;  %v2474_v39 = vcombine.low %v2466_v31, %v2473_v25  ;;  %9398 = vmatprep.subr.bf16.mxu1 %v10321_v40  ;;  %v2530_v43 = vrot.slane %v2237_v2, %v9995_v20  ;;  %v10355_v3 = vld.sshfl [vmem:[%s9972_s12 + $0xac] sm:$0x1 pattern:$0x75316420] }
  0x61   : > { %v2476_v41 = vcombine.low %v8662_v26, %v8663_v32  ;;  %v2485_v42 = vrot.slane %v2475_v33, %v9995_v20  ;;  %v3114_v45 = vrot.slane %v3100_v36, %v9995_v20  ;;  %v3130_v46 = vrot.slane %v8702_v23, %v9995_v20  ;;  %2707 = vperm.xlu0 %9763, %v8675_v60   ;;  %v8673_v60 = vld [vmem:[%s12180_s1 + $0x88] sm:$0xff]  ;;  %v8710_v2 = vld.sshfl [vmem:[%s9972_s12 + $0xb4] sm:$0x1 pattern:$0x75316420] }
  0x62   : > { %v2508_v44 = vcombine.low %v2499_v34, %v2506_v35  ;;  %v3138_v47 = vcombine.high %v8703_v24, %v8703_v24  ;;  %9385 = vmatmul.mubr.bf16.gmra.mrb[16].mxu1 %v2474_v39  ;;  %v2537_v50 = vrot.slane %v2530_v43, %v9995_v20  ;;  %v3145_v52 = vrot.slane %v8703_v24, %v9995_v20 }
  0x63   : > { %v2492_v49 = vrot.slane %v2476_v41, %v9995_v20  ;;  %v3168_v53 = vrot.slane %v10308_v30, %v9995_v20  ;;  %9399 = vmatpush3.bf16.msra.mxu1 %v10321_v40  ;;  %v3557_v56 = vcombine.low %v3107_v37, %v3114_v45  ;;  %v8739_v57 = vcombine.high %v3107_v37, %v3114_v45  ;;  %v8711_v37 = vld.sshfl [vmem:[%s9972_s12 + $0xb8] sm:$0x33 pattern:$0x75316420] }
  0x64   : > { %v2522_v54 = vrot.slane %v2508_v44, %v9995_v20  ;;  %v3152_v55 = vrot.slane %v3138_v47, %v9995_v20  ;;  %9400 = vmatprep.subr.bf16.mxu1 %v10343_v58  ;;  %v3153_v51 = vcombine.high %v3145_v52, %v3145_v52  ;;  %v3445_v59 = vunpack.i.h.s16 %v3145_v52  ;;  %2667 = vperm.xlu1 %9764, %v8667_v0   ;;  %v10388_v44 = vld [vmem:[%s12181_s2 + $0x30] sm:$0xff]  }
  0x65   : > { %v2507_v5 = vcombine.low %v2485_v42, %v2492_v49  ;;  %v8719_v61 = vpack.i.b16 %v3145_v52, %v3130_v46  ;;  %v3567_v6 = vrot.slane %v3557_v56, %v9995_v20  ;;  %v3574_v7 = vrot.slane %v8739_v57, %v9995_v20  ;;  %1412 = vperm.xlu0 %9763, %v1359_v29   ;;  %v8676_v29 = vld [vmem:[%s12180_s1 + $0xa0] sm:$0xff] }
  0x66   : > { %v3154_v63 = vcombine.high %v3152_v55, %v3152_v55  ;;  %v3447_v4 = vunpack.i.h.s16 %v3152_v55  ;;  %v3449_v9 = vunpack.i.h.s16 %v3153_v51  ;;  %v8720_v10 = vpack.i.b16 %v3152_v55, %v3445_v59 }
  0x67   : > { %v2515_v8 = vrot.slane %v2507_v5, %v9995_v20  ;;  %v3176_v11 = vcombine.high %v8705_v48, %v8705_v48  ;;  %9401 = vmatpush3.bf16.msra.mxu1 %v10343_v58  ;;  %v3589_v15 = vcombine.low %v3567_v6, %v3574_v7  ;;  %v3183_v16 = vrot.slane %v8705_v48, %v9995_v20  ;;  %v8712_v7 = vld.sshfl [vmem:[%s9972_s12 + $0xbc] sm:$0x1 pattern:$0x75316420] }
  0x68   : > { %v3451_v13 = vunpack.i.h.s16 %v3154_v63  ;;  %v8721_v14 = vpack.i.b16 %v3153_v51, %v3447_v4  ;;  %9402 = vmatprep.subr.bf16.mxu1 %v10363_v21  ;;  %v8722_v22 = vpack.i.b16 %v3154_v63, %v3449_v9  ;;  %v3559_v23 = vcombine.low %v8719_v61, %v8720_v10  ;;  %2697 = vperm.xlu1 %9764, %v8673_v60   ;;  %v9860_v60 = vld [vmem:[%s12181_s2] sm:$0xff]  }
  0x69   : > { %v2523_v19 = vcombine.low %v2515_v8, %v2522_v54  ;;  %v3190_v24 = vrot.slane %v3176_v11, %v9995_v20  ;;  %v3597_v26 = vrot.slane %v3589_v15, %v9995_v20  ;;  %v3191_v27 = vcombine.high %v3183_v16, %v3183_v16  ;;  %v8713_v11 = vld.sshfl [vmem:[%s9972_s12 + $0xc0] sm:$0x33 pattern:$0x75316420] }
  0x6a   : > { %v8723_v25 = vpack.i.b16 %v3168_v53, %v3451_v13  ;;  %v3206_v28 = vrot.slane %v8706_v62, %v9995_v20  ;;  %v3560_v30 = vcombine.low %v8721_v14, %v8722_v22  ;;  %v3581_v31 = vrot.slane %v3559_v23, %v9995_v20  ;;  %v10400_v62 = vld [vmem:[%s12181_s2 + $0x38] sm:$0xff]  }
  0x6b   : > { %9388 = vmatprep.mubr.bf16.mxu1 %v2523_v19  ;;  %v3192_v32 = vcombine.high %v3190_v24, %v3190_v24  ;;  %v3214_v33 = vcombine.high %v8707_v1, %v8707_v1  ;;  %v3221_v34 = vrot.slane %v8707_v1, %v9995_v20  ;;  %v3607_v36 = vcombine.low %v3190_v24, %v3191_v27 }
  0x6c   : > { %9389 = vmatmul.mubr.bf16.gmra.mrb[20].mxu1 %v2537_v50  ;;  %v3606_v35 = vcombine.low %v8723_v25, %v3183_v16  ;;  %v3244_v38 = vrot.slane %v10355_v3, %v9995_v20  ;;  %v3588_v39 = vrot.slane %v3560_v30, %v9995_v20  ;;  %v3252_v42 = vcombine.high %v8709_v18, %v8709_v18  ;;  %v8714_v16 = vld.sshfl [vmem:[%s9972_s12 + $0xc4] sm:$0x1 pattern:$0x75316420] }
  0x6d   : > { %9403 = vmatpush3.bf16.msra.mxu1 %v10363_v21  ;;  %v3228_v41 = vrot.slane %v3214_v33, %v9995_v20  ;;  %v3259_v43 = vrot.slane %v8709_v18, %v9995_v20  ;;  %v3229_v45 = vcombine.high %v3221_v34, %v3221_v34  ;;  %v3463_v46 = vunpack.i.h.s16 %v3221_v34  ;;  %2712 = vperm.xlu1 %9764, %v8676_v29   ;;  %v8715_v18 = vld.sshfl [vmem:[%s9972_s12 + $0xc8] sm:$0x33 pattern:$0x75316420] }
  0x6e   : > { %9404 = vmatprep.subr.bf16.mxu1 %v10388_v44  ;;  %v8724_v47 = vpack.i.b16 %v3221_v34, %v3206_v28  ;;  %v3616_v48 = vrot.slane %v3606_v35, %v9995_v20  ;;  %v3590_v49 = vcombine.low %v3581_v31, %v3588_v39  ;;  %v3623_v52 = vrot.slane %v3607_v36, %v9995_v20 }
  0x6f   : > { %v3465_v50 = vunpack.i.h.s16 %v3228_v41  ;;  %v3230_v53 = vcombine.high %v3228_v41, %v3228_v41  ;;  %v8725_v54 = vpack.i.b16 %v3228_v41, %v3463_v46  ;;  %v3266_v56 = vrot.slane %v3252_v42, %v9995_v20  ;;  %v8716_v42 = vld.sshfl [vmem:[%s9972_s12 + $0xcc] sm:$0x1 pattern:$0x75316420] }
  0x70   : > { %v3608_v55 = vcombine.low %v3192_v32, %v8724_v47  ;;  %v3282_v57 = vrot.slane %v8710_v2, %v9995_v20  ;;  %v3604_v5 = vrot.slane %v3590_v49, %v9995_v20  ;;  %v3638_v59 = vcombine.low %v3616_v48, %v3623_v52  ;;  %v8717_v52 = vld.sshfl [vmem:[%s9972_s12 + $0xd0] sm:$0x33 pattern:$0x75316420] }
  0x71   : > { %9405 = vmatpush3.bf16.msra.mxu1 %v10388_v44  ;;  %v8726_v51 = vpack.i.b16 %v3229_v45, %v3465_v50  ;;  %v3290_v61 = vcombine.high %v8711_v37, %v8711_v37  ;;  %v3297_v63 = vrot.slane %v8711_v37, %v9995_v20  ;;  %v3467_v4 = vunpack.i.h.s16 %v3229_v45 }
  0x72   : > { %9406 = vmatprep.subr.bf16.mxu1 %v10400_v62  ;;  %v3630_v0 = vrot.slane %v3608_v55, %v9995_v20  ;;  %v3469_v6 = vunpack.i.h.s16 %v3230_v53  ;;  %v3605_v1 = vcombine.low %v3597_v26, %v3604_v5  ;;  %v3646_v9 = vrot.slane %v3638_v59, %v9995_v20 }
  0x73   : > { %v3609_v8 = vcombine.low %v8725_v54, %v8726_v51  ;;  %v3304_v10 = vrot.slane %v3290_v61, %v9995_v20  ;;  %v3481_v3 = vunpack.i.h.s16 %v3297_v63  ;;  %v8727_v13 = vpack.i.b16 %v3230_v53, %v3467_v4 }
  0x74   : > { %v8728_v14 = vpack.i.b16 %v3244_v38, %v3469_v6  ;;  %v8729_v15 = vpack.i.b16 %v3297_v63, %v3282_v57  ;;  %9408 = vmatprep.mubr.bf16.mxu1 %v3605_v1  ;;  %v3656_v22 = vcombine.low %v3259_v43, %v3266_v56  ;;  %v8740_v23 = vcombine.high %v3259_v43, %v3266_v56 }
  0x75   : > { %9407 = vmatpush3.bf16.msra.mxu1 %v10400_v62  ;;  %v3637_v19 = vrot.slane %v3609_v8, %v9995_v20  ;;  %v3483_v24 = vunpack.i.h.s16 %v3304_v10  ;;  %v8730_v25 = vpack.i.b16 %v3304_v10, %v3481_v3  ;;  %v3305_v27 = vcombine.high %v3297_v63, %v3297_v63 }
  0x76   : > { %9420 = vmatprep.subr.bf16.mxu1 %v9860_v60  ;;  %v3655_v26 = vcombine.low %v8727_v13, %v8728_v14  ;;  %v3306_v28 = vcombine.high %v3304_v10, %v3304_v10  ;;  %v3672_v31 = vrot.slane %v3656_v22, %v9995_v20  ;;  %v3679_v32 = vrot.slane %v8740_v23, %v9995_v20 }
  0x77   : > { %v3639_v30 = vcombine.low %v3630_v0, %v3637_v19  ;;  %v3320_v33 = vrot.slane %v8712_v7, %v9995_v20  ;;  %v3658_v2 = vcombine.low %v8729_v15, %v8730_v25  ;;  %v3328_v35 = vcombine.high %v8713_v11, %v8713_v11 }
  0x78   : > { %v3665_v34 = vrot.slane %v3655_v26, %v9995_v20  ;;  %v3335_v36 = vrot.slane %v8713_v11, %v9995_v20  ;;  %v3358_v38 = vrot.slane %v8714_v16, %v9995_v20  ;;  %v3373_v39 = vrot.slane %v8715_v18, %v9995_v20 }
  0x79   : > { %v3653_v37 = vrot.slane %v3639_v30, %v9995_v20  ;;  %v3485_v41 = vunpack.i.h.s16 %v3305_v27  ;;  %v3686_v43 = vrot.slane %v3658_v2, %v9995_v20  ;;  %v3342_v45 = vrot.slane %v3328_v35, %v9995_v20 }
  0x7a   : > { %v3687_v29 = vcombine.low %v3665_v34, %v3672_v31  ;;  %v3343_v46 = vcombine.high %v3335_v36, %v3335_v36  ;;  %v3487_v48 = vunpack.i.h.s16 %v3306_v28  ;;  %v8731_v49 = vpack.i.b16 %v3305_v27, %v3483_v24 }
  0x7b   : > { %v3654_v47 = vcombine.low %v3646_v9, %v3653_v37  ;;  %v8732_v50 = vpack.i.b16 %v3306_v28, %v3485_v41  ;;  %v3688_v53 = vcombine.low %v3679_v32, %v3686_v43  ;;  %v3344_v55 = vcombine.high %v3342_v45, %v3342_v45  ;;  %v8718_v9 = vld.sshfl [vmem:[%s9972_s12 + $0xd4] sm:$0x1 pattern:$0x75316420] }
  0x7c   : > { %v3695_v54 = vrot.slane %v3687_v29, %v9995_v20  ;;  %v8734_v56 = vpack.i.b16 %v3373_v39, %v3358_v38  ;;  %v8733_v57 = vpack.i.b16 %v3320_v33, %v3487_v48  ;;  %v3706_v51 = vcombine.low %v3342_v45, %v3343_v46  ;;  %v8775_v28 = vld.sshfl [vmem:[%s9972_s12 + $0xd8] sm:$0x33 pattern:$0x75316420] }
  0x7d   : > { %9409 = vmatmul.mubr.bf16.vlgmr.msra.gmra.mrb[24].mxu1 %v3654_v47  ;;  %v3704_v5 = vcombine.low %v8731_v49, %v8732_v50  ;;  %v3366_v59 = vcombine.high %v8715_v18, %v8715_v18  ;;  %v3702_v61 = vrot.slane %v3688_v53, %v9995_v20  ;;  %v3381_v63 = vcombine.high %v3373_v39, %v3373_v39  ;;  %v8776_v33 = vld.sshfl [vmem:[%s9972_s12 + $0xdc] sm:$0x1 pattern:$0x75316420] }
  0x7e   : > { %9421 = vmatpush3.bf16.msra.mxu1 %v9860_v60  ;;  %v3707_v0 = vcombine.low %v3344_v55, %v8734_v56  ;;  %v3396_v4 = vrot.slane %v8716_v42, %v9995_v20  ;;  %v3705_v6 = vcombine.low %v8733_v57, %v3335_v36  ;;  %v3728_v1 = vrot.slane %v3706_v51, %v9995_v20  ;;  %v8777_v37 = vld.sshfl [vmem:[%s9972_s12 + $0xe0] sm:$0x33 pattern:$0x75316420] }
  0x7f   : > { %9422 = vmatprep.subr.bf16.mxu1 %v10290_v12  ;;  %v3714_v7 = vrot.slane %v3704_v5, %v9995_v20  ;;  %v3380_v8 = vrot.slane %v3366_v59, %v9995_v20  ;;  %v3703_v10 = vcombine.low %v3695_v54, %v3702_v61  ;;  %v3404_v3 = vcombine.high %v8717_v52, %v8717_v52  ;;  %v8778_v41 = vld.sshfl [vmem:[%s9972_s12 + $0xe4] sm:$0x1 pattern:$0x75316420] }
  0x80   : > { %v3735_v11 = vrot.slane %v3707_v0, %v9995_v20  ;;  %v3411_v13 = vrot.slane %v8717_v52, %v9995_v20  ;;  %v3721_v14 = vrot.slane %v3705_v6, %v9995_v20  ;;  %v3499_v16 = vunpack.i.h.s16 %v3373_v39  ;;  %v8779_v59 = vld.sshfl [vmem:[%s9972_s12 + $0xe8] sm:$0x33 pattern:$0x75316420] }
  0x81   : > { %v3382_v15 = vcombine.high %v3380_v8, %v3380_v8  ;;  %v3501_v18 = vunpack.i.h.s16 %v3380_v8  ;;  %9412 = vmatprep.mubr.bf16.mxu1 %v3703_v10  ;;  %v3418_v22 = vrot.slane %v3404_v3, %v9995_v20  ;;  %v3503_v23 = vunpack.i.h.s16 %v3381_v63 }
  0x82   : > { %9423 = vmatpush3.bf16.msra.mxu1 %v10290_v12  ;;  %v3737_v19 = vcombine.low %v3728_v1, %v3735_v11  ;;  %v3434_v24 = vrot.slane %v8718_v9, %v9995_v20  ;;  %v3736_v60 = vcombine.low %v3714_v7, %v3721_v14  ;;  %v8735_v26 = vpack.i.b16 %v3380_v8, %v3499_v16  ;;  %v8780_v11 = vld.sshfl [vmem:[%s9972_s12 + $0xec] sm:$0x1 pattern:$0x75316420] }
  0x83   : > { %9424 = vmatprep.subr.bf16.mxu1 %v10298_v17  ;;  %v3505_v25 = vunpack.i.h.s16 %v3382_v15  ;;  %v8736_v27 = vpack.i.b16 %v3381_v63, %v3501_v18  ;;  %v8737_v12 = vpack.i.b16 %v3382_v15, %v3503_v23  ;;  %v3755_v31 = vcombine.low %v3411_v13, %v3418_v22  ;;  %v8781_v16 = vld.sshfl [vmem:[%s9972_s12 + $0xf0] sm:$0x33 pattern:$0x75316420] }
  0x84   : > { %v3751_v30 = vrot.slane %v3737_v19, %v9995_v20  ;;  %v8741_v32 = vcombine.high %v3411_v13, %v3418_v22  ;;  %v3744_v2 = vrot.slane %v3736_v60, %v9995_v20  ;;  %v3515_v36 = vunpack.i.l.s16 %v3434_v24  ;;  %v8782_v60 = vld.sshfl [vmem:[%s9972_s12 + $0xf4] sm:$0x1 pattern:$0x75316420] }
  0x85   : > { %v8738_v34 = vpack.i.b16 %v3396_v4, %v3505_v25  ;;  %v3753_v35 = vcombine.low %v8735_v26, %v8736_v27  ;;  %v3777_v38 = vrot.slane %v3755_v31, %v9995_v20  ;;  %v4353_v42 = vcombine.high %v8775_v28, %v8775_v28 }
  0x86   : > { %9425 = vmatpush3.bf16.msra.mxu1 %v10298_v17  ;;  %v3784_v39 = vrot.slane %v8741_v32, %v9995_v20  ;;  %v4360_v43 = vrot.slane %v8775_v28, %v9995_v20  ;;  %v3752_v29 = vcombine.low %v3744_v2, %v3751_v30  ;;  %v3808_v47 = vrot.slane %v3515_v36, %v9995_v20  ;;  %v8783_v28 = vld.sshfl [vmem:[%s9972_s12 + $0xf8] sm:$0x33 pattern:$0x75316420] }
  0x87   : > { %9426 = vmatprep.subr.bf16.mxu1 %v10321_v40  ;;  %v3754_v45 = vcombine.low %v8737_v12, %v8738_v34  ;;  %v3763_v46 = vrot.slane %v3753_v35, %v9995_v20  ;;  %v4367_v17 = vrot.slane %v4353_v42, %v9995_v20  ;;  %v4383_v49 = vrot.slane %v8776_v33, %v9995_v20 }
  0x88   : > { %v3786_v48 = vcombine.low %v3777_v38, %v3784_v39  ;;  %v4391_v50 = vcombine.high %v8777_v37, %v8777_v37  ;;  %9413 = vmatmul.mubr.bf16.gmra.mrb[28].mxu1 %v3752_v29  ;;  %v3815_v53 = vrot.slane %v3808_v47, %v9995_v20  ;;  %v4398_v54 = vrot.slane %v8777_v37, %v9995_v20  ;;  %v8784_v38 = vld.sshfl [vmem:[%s9972_s12 + $0xfc] sm:$0x1 pattern:$0x75316420] }
  0x89   : > { %v3770_v52 = vrot.slane %v3754_v45, %v9995_v20  ;;  %v4421_v55 = vrot.slane %v8778_v41, %v9995_v20  ;;  %v4810_v5 = vcombine.low %v4360_v43, %v4367_v17  ;;  %v8813_v51 = vcombine.high %v4360_v43, %v4367_v17 }
  0x8a   : > { %9427 = vmatpush3.bf16.msra.mxu1 %v10321_v40  ;;  %v3800_v56 = vrot.slane %v3786_v48, %v9995_v20  ;;  %v4405_v57 = vrot.slane %v4391_v50, %v9995_v20  ;;  %v4406_v0 = vcombine.high %v4398_v54, %v4398_v54  ;;  %v4698_v63 = vunpack.i.h.s16 %v4398_v54 }
  0x8b   : > { %v3785_v61 = vcombine.low %v3763_v46, %v3770_v52  ;;  %9428 = vmatprep.subr.bf16.mxu1 %v10343_v58  ;;  %v8793_v4 = vpack.i.b16 %v4398_v54, %v4383_v49  ;;  %v4820_v1 = vrot.slane %v4810_v5, %v9995_v20  ;;  %v4827_v40 = vrot.slane %v8813_v51, %v9995_v20  ;;  %v8785_v46 = vld.sshfl [vmem:[%s9972_s12 + $0x100] sm:$0x33 pattern:$0x75316420] }
  0x8c   : > { %v4407_v6 = vcombine.high %v4405_v57, %v4405_v57  ;;  %v4700_v7 = vunpack.i.h.s16 %v4405_v57  ;;  %v4702_v9 = vunpack.i.h.s16 %v4406_v0  ;;  %v8794_v10 = vpack.i.b16 %v4405_v57, %v4698_v63 }
  0x8d   : > { %v3793_v8 = vrot.slane %v3785_v61, %v9995_v20  ;;  %v4429_v3 = vcombine.high %v8779_v59, %v8779_v59  ;;  %v4842_v15 = vcombine.low %v4820_v1, %v4827_v40  ;;  %v4436_v18 = vrot.slane %v8779_v59, %v9995_v20 }
  0x8e   : > { %9429 = vmatpush3.bf16.msra.mxu1 %v10343_v58  ;;  %v4704_v13 = vunpack.i.h.s16 %v4407_v6  ;;  %v8795_v14 = vpack.i.b16 %v4406_v0, %v4700_v7  ;;  %v8796_v22 = vpack.i.b16 %v4407_v6, %v4702_v9  ;;  %v4812_v23 = vcombine.low %v8793_v4, %v8794_v10  ;;  %v9773_v0 = vld [vmem:[%s12182_s3 + $0x80] sm:$0xff]   ;;  %v8787_v10 = vld.sshfl [vmem:[%s9972_s12 + $0x108] sm:$0x33 pattern:$0x75316420] }
  0x8f   : > { %v3801_v19 = vcombine.low %v3793_v8, %v3800_v56  ;;  %9430 = vmatprep.subr.bf16.mxu1 %v10363_v21  ;;  %v4443_v24 = vrot.slane %v4429_v3, %v9995_v20  ;;  %v4850_v26 = vrot.slane %v4842_v15, %v9995_v20  ;;  %v4444_v27 = vcombine.high %v4436_v18, %v4436_v18  ;;  %v8786_v7 = vld.sshfl [vmem:[%s9972_s12 + $0x104] sm:$0x1 pattern:$0x75316420] }
  0x90   : > { %v8797_v25 = vpack.i.b16 %v4421_v55, %v4704_v13  ;;  %v4459_v58 = vrot.slane %v8780_v11, %v9995_v20  ;;  %v4813_v30 = vcombine.low %v8795_v14, %v8796_v22  ;;  %v4834_v12 = vrot.slane %v4812_v23, %v9995_v20  ;;  %9496 = vmatprep.subr.bf16.mxu0 %v9773_v0  ;;  %v8788_v14 = vld.sshfl [vmem:[%s9972_s12 + $0x10c] sm:$0x1 pattern:$0x75316420] }
  0x91   : > { %9416 = vmatprep.mubr.bf16.mxu1 %v3801_v19  ;;  %v4445_v31 = vcombine.high %v4443_v24, %v4443_v24  ;;  %v4467_v32 = vcombine.high %v8781_v16, %v8781_v16  ;;  %v4474_v33 = vrot.slane %v8781_v16, %v9995_v20  ;;  %v4860_v34 = vcombine.low %v4443_v24, %v4444_v27  ;;  %v8789_v19 = vld.sshfl [vmem:[%s9972_s12 + $0x110] sm:$0x33 pattern:$0x75316420] }
  0x92   : > { %9417 = vmatmul.mubr.bf16.gmra.mrb[32].mxu1 %v3815_v53  ;;  %v4859_v2 = vcombine.low %v8797_v25, %v4436_v18  ;;  %v4497_v35 = vrot.slane %v8782_v60, %v9995_v20  ;;  %v4841_v36 = vrot.slane %v4813_v30, %v9995_v20  ;;  %v4505_v39 = vcombine.high %v8783_v28, %v8783_v28 }
  0x93   : > { %9431 = vmatpush3.bf16.msra.mxu1 %v10363_v21  ;;  %v4481_v37 = vrot.slane %v4467_v32, %v9995_v20  ;;  %v4512_v41 = vrot.slane %v8783_v28, %v9995_v20  ;;  %v4482_v42 = vcombine.high %v4474_v33, %v4474_v33  ;;  %v4716_v43 = vunpack.i.h.s16 %v4474_v33  ;;  %9497 = vmatpush3.bf16.msra.mxu0 %v9773_v0 }
  0x94   : > { %9432 = vmatprep.subr.bf16.mxu1 %v10388_v44  ;;  %v8798_v29 = vpack.i.b16 %v4474_v33, %v4459_v58  ;;  %v4869_v45 = vrot.slane %v4859_v2, %v9995_v20  ;;  %v4843_v47 = vcombine.low %v4834_v12, %v4841_v36  ;;  %v4876_v21 = vrot.slane %v4860_v34, %v9995_v20 }
  0x95   : > { %v4718_v48 = vunpack.i.h.s16 %v4481_v37  ;;  %v4483_v17 = vcombine.high %v4481_v37, %v4481_v37  ;;  %v8799_v49 = vpack.i.b16 %v4481_v37, %v4716_v43  ;;  %v4519_v52 = vrot.slane %v4505_v39, %v9995_v20 }
  0x96   : > { %v4861_v50 = vcombine.low %v4445_v31, %v8798_v29  ;;  %v4535_v53 = vrot.slane %v8784_v38, %v9995_v20  ;;  %v4857_v54 = vrot.slane %v4843_v47, %v9995_v20  ;;  %v4891_v56 = vcombine.low %v4869_v45, %v4876_v21  ;;  %v8791_v21 = vld.sshfl [vmem:[%s9972_s12 + $0x118] sm:$0x33 pattern:$0x75316420] }
  0x97   : > { %9433 = vmatpush3.bf16.msra.mxu1 %v10388_v44  ;;  %v8800_v55 = vpack.i.b16 %v4482_v42, %v4718_v48  ;;  %v4543_v57 = vcombine.high %v8785_v46, %v8785_v46  ;;  %v4550_v51 = vrot.slane %v8785_v46, %v9995_v20  ;;  %v4720_v59 = vunpack.i.h.s16 %v4482_v42 }
  0x98   : > { %9434 = vmatprep.subr.bf16.mxu1 %v10400_v62  ;;  %v4883_v5 = vrot.slane %v4861_v50, %v9995_v20  ;;  %v4722_v61 = vunpack.i.h.s16 %v4483_v17  ;;  %v4858_v63 = vcombine.low %v4850_v26, %v4857_v54  ;;  %v4899_v4 = vrot.slane %v4891_v56, %v9995_v20 }
  0x99   : > { %v4862_v44 = vcombine.low %v8799_v49, %v8800_v55  ;;  %v4557_v6 = vrot.slane %v4543_v57, %v9995_v20  ;;  %v4734_v1 = vunpack.i.h.s16 %v4550_v51  ;;  %v8801_v40 = vpack.i.b16 %v4483_v17, %v4720_v59  ;;  %v9774_v49 = vld [vmem:[%s12182_s3 + $0x88] sm:$0xff]   ;;  %v10532_v59 = vpop.permute.xlu0 %1362 }
  0x9a   : > { %v8802_v8 = vpack.i.b16 %v4497_v35, %v4722_v61  ;;  %v8803_v9 = vpack.i.b16 %v4550_v51, %v4535_v53  ;;  %9436 = vmatprep.mubr.bf16.mxu1 %v4858_v63  ;;  %v4909_v3 = vcombine.low %v4512_v41, %v4519_v52  ;;  %v8814_v13 = vcombine.high %v4512_v41, %v4519_v52  ;;  %v8790_v41 = vld.sshfl [vmem:[%s9972_s12 + $0x114] sm:$0x1 pattern:$0x75316420] }
  0x9b   : > { %9435 = vmatpush3.bf16.msra.mxu1 %v10400_v62  ;;  %v4890_v11 = vrot.slane %v4862_v44, %v9995_v20  ;;  %v4736_v15 = vunpack.i.h.s16 %v4557_v6  ;;  %v8804_v16 = vpack.i.b16 %v4557_v6, %v4734_v1  ;;  %v4558_v22 = vcombine.high %v4550_v51, %v4550_v51  ;;  %v8792_v51 = vld.sshfl [vmem:[%s9972_s12 + $0x11c] sm:$0x1 pattern:$0x75316420]  ;;  %9498 = vmatprep.subr.bf16.mxu0 %v9774_v49  ;;  %s9159_s12 = sshll.u32 %s12475_s18, 6 }
  0x9c   : > { %v4908_v18 = vcombine.low %v8801_v40, %v8802_v8  ;;  %v4559_v23 = vcombine.high %v4557_v6, %v4557_v6  ;;  %v4925_v60 = vrot.slane %v4909_v3, %v9995_v20  ;;  %v4932_v25 = vrot.slane %v8814_v13, %v9995_v20  ;;  %9499 = vmatpush3.bf16.msra.mxu0 %v9774_v49  ;;  %v9775_v40 = vld [vmem:[%s12182_s3 + $0x90] sm:$0xff]   ;;  %v9776_v3 = vld [vmem:[%s12182_s3 + $0x98] sm:$0xff]   ;;  %s391_s19 = scalar_lea.vmem %s12190_s11, %s9159_s12 }
  0x9d   : > { %v4892_v24 = vcombine.low %v4883_v5, %v4890_v11  ;;  %v4573_v62 = vrot.slane %v8786_v7, %v9995_v20  ;;  %v4911_v26 = vcombine.low %v8803_v9, %v8804_v16  ;;  %v4581_v58 = vcombine.high %v8787_v10, %v8787_v10  ;;  %9500 = vmatprep.subr.bf16.mxu0 %v9775_v40 }
  0x9e   : > { %v4918_v27 = vrot.slane %v4908_v18, %v9995_v20  ;;  %v4588_v28 = vrot.slane %v8787_v10, %v9995_v20  ;;  %v4611_v12 = vrot.slane %v8788_v14, %v9995_v20  ;;  %v4626_v31 = vrot.slane %v8789_v19, %v9995_v20 }
  0x9f   : > { %v4906_v30 = vrot.slane %v4892_v24, %v9995_v20  ;;  %v4738_v32 = vunpack.i.h.s16 %v4558_v22  ;;  %v4939_v33 = vrot.slane %v4911_v26, %v9995_v20  ;;  %v4595_v34 = vrot.slane %v4581_v58, %v9995_v20 }
  0xa0   : > { %v4940_v2 = vcombine.low %v4918_v27, %v4925_v60  ;;  %v4596_v35 = vcombine.high %v4588_v28, %v4588_v28  ;;  %v4740_v37 = vunpack.i.h.s16 %v4559_v23  ;;  %v8805_v38 = vpack.i.b16 %v4558_v22, %v4736_v15  ;;  %9501 = vmatpush3.bf16.msra.mxu0 %v9775_v40 }
  0xa1   : > { %v4907_v36 = vcombine.low %v4899_v4, %v4906_v30  ;;  %v8806_v39 = vpack.i.b16 %v4559_v23, %v4738_v32  ;;  %v4941_v42 = vcombine.low %v4932_v25, %v4939_v33  ;;  %v4597_v29 = vcombine.high %v4595_v34, %v4595_v34  ;;  %9502 = vmatprep.subr.bf16.mxu0 %v9776_v3 }
  0xa2   : > { %v4948_v43 = vrot.slane %v4940_v2, %v9995_v20  ;;  %v8808_v45 = vpack.i.b16 %v4626_v31, %v4611_v12  ;;  %v8807_v46 = vpack.i.b16 %v4573_v62, %v4740_v37  ;;  %v4959_v48 = vcombine.low %v4595_v34, %v4596_v35  ;;  %v10547_v62 = vpop.permute.xlu0 %1367  ;;  %v9778_v2 = vld [vmem:[%s12182_s3 + $0xa8] sm:$0xff]  }
  0xa3   : > { %9437 = vmatmul.mubr.bf16.vlgmr.msra.gmra.mrb[36].mxu1 %v4907_v36  ;;  %v4957_v47 = vcombine.low %v8805_v38, %v8806_v39  ;;  %v4619_v17 = vcombine.high %v8789_v19, %v8789_v19  ;;  %v4955_v50 = vrot.slane %v4941_v42, %v9995_v20  ;;  %v4634_v53 = vcombine.high %v4626_v31, %v4626_v31  ;;  %v9779_v39 = vld [vmem:[%s12182_s3 + $0xb0] sm:$0xff]  }
  0xa4   : > { %v4960_v52 = vcombine.low %v4597_v29, %v8808_v45  ;;  %v4649_v54 = vrot.slane %v8790_v41, %v9995_v20  ;;  %v4958_v55 = vcombine.low %v8807_v46, %v4588_v28  ;;  %v4981_v57 = vrot.slane %v4959_v48, %v9995_v20  ;;  %9503 = vmatpush3.bf16.msra.mxu0 %v9776_v3  ;;  %v9780_v29 = vld [vmem:[%s12182_s3 + $0xb8] sm:$0xff]  }
  0xa5   : > { %v4967_v56 = vrot.slane %v4957_v47, %v9995_v20  ;;  %v4633_v5 = vrot.slane %v4619_v17, %v9995_v20  ;;  %v4956_v61 = vcombine.low %v4948_v43, %v4955_v50  ;;  %v4657_v63 = vcombine.high %v8791_v21, %v8791_v21  ;;  %v9781_v47 = vld [vmem:[%s12182_s3 + $0x40] sm:$0xff]   ;;  %v1373_v17 = vpop.permute.xlu1 %1372 }
  0xa6   : > { %v4988_v0 = vrot.slane %v4960_v52, %v9995_v20  ;;  %v4664_v44 = vrot.slane %v8791_v21, %v9995_v20  ;;  %v4974_v4 = vrot.slane %v4958_v55, %v9995_v20  ;;  %v4752_v7 = vunpack.i.h.s16 %v4626_v31  ;;  %v9777_v31 = vld [vmem:[%s12182_s3 + $0xa0] sm:$0xff]   ;;  %v10561_v37 = vpop.permute.xlu0 %1382  ;;  %9448 = vmatprep.subr.bf16.mxu1 %v9781_v47  ;;  %v9782_v21 = vld [vmem:[%s12182_s3 + $0x48] sm:$0xff]  }
  0xa7   : > { %v4635_v6 = vcombine.high %v4633_v5, %v4633_v5  ;;  %v4754_v1 = vunpack.i.h.s16 %v4633_v5  ;;  %9440 = vmatprep.mubr.bf16.mxu1 %v4956_v61  ;;  %v4671_v9 = vrot.slane %v4657_v63, %v9995_v20  ;;  %v4756_v10 = vunpack.i.h.s16 %v4634_v53  ;;  %9504 = vmatprep.subr.bf16.mxu0 %v9777_v31  ;;  %v9785_v61 = vld [vmem:[%s12182_s3 + $0x60] sm:$0xff]   ;;  %v9786_v63 = vld [vmem:[%s12182_s3 + $0x68] sm:$0xff]  }
  0xa8   : > { %v4990_v8 = vcombine.low %v4981_v57, %v4988_v0  ;;  %v4687_v11 = vrot.slane %v8792_v51, %v9995_v20  ;;  %v4989_v13 = vcombine.low %v4967_v56, %v4974_v4  ;;  %v8809_v15 = vpack.i.b16 %v4633_v5, %v4752_v7  ;;  %9505 = vmatpush3.bf16.msra.mxu0 %v9777_v31  ;;  %v9783_v57 = vld [vmem:[%s12182_s3 + $0x50] sm:$0xff]   ;;  %v9784_v51 = vld [vmem:[%s12182_s3 + $0x58] sm:$0xff]  }
  0xa9   : > { %v4758_v14 = vunpack.i.h.s16 %v4635_v6  ;;  %v8810_v16 = vpack.i.b16 %v4634_v53, %v4754_v1  ;;  %v8811_v19 = vpack.i.b16 %v4635_v6, %v4756_v10  ;;  %v5008_v22 = vcombine.low %v4664_v44, %v4671_v9  ;;  %9506 = vmatprep.subr.bf16.mxu0 %v9778_v2  ;;  %9449 = vmatpush3.bf16.msra.mxu1 %v9781_v47  ;;  %v1378_v50 = vpop.permute.xlu1 %1377  ;;  %v9787_v6 = vld [vmem:[%s12182_s3 + $0x70] sm:$0xff]   ;;  %v9788_v1 = vld [vmem:[%s12182_s3 + $0x78] sm:$0xff]   ;;  %v10635_v10 = vld [vmem:[%s12182_s3 + $0xc0] sm:$0xff]  }
  0xaa   : > { %v5004_v18 = vrot.slane %v4990_v8, %v9995_v20  ;;  %v8815_v23 = vcombine.high %v4664_v44, %v4671_v9  ;;  %v4997_v24 = vrot.slane %v4989_v13, %v9995_v20  ;;  %v4768_v58 = vunpack.i.l.s16 %v4687_v11  ;;  %v10568_v43 = vpop.permute.xlu0 %1392  ;;  %9450 = vmatprep.subr.bf16.mxu1 %v9782_v21  ;;  %v9789_v9 = vld [vmem:[%s12182_s3] sm:$0xff]  }
  0xab   : > { %v8812_v60 = vpack.i.b16 %v4649_v54, %v4758_v14  ;;  %v5006_v25 = vcombine.low %v8809_v15, %v8810_v16  ;;  %v5030_v26 = vrot.slane %v5008_v22, %v9995_v20  ;;  %v10647_v14 = vld [vmem:[%s12184_s5] ss:$0 sm:$0xff] }
  0xac   : > { %v5037_v27 = vrot.slane %v8815_v23, %v9995_v20  ;;  %v5005_v28 = vcombine.low %v4997_v24, %v5004_v18  ;;  %v5061_v34 = vrot.slane %v4768_v58, %v9995_v20  ;;  %9507 = vmatpush3.bf16.msra.mxu0 %v9778_v2  ;;  %v10652_v16 = vld [vmem:[%s12185_s6] ss:$0 sm:$0xff] }
  0xad   : > { %v5007_v30 = vcombine.low %v8811_v19, %v8812_v60  ;;  %v5016_v12 = vrot.slane %v5006_v25, %v9995_v20  ;;  %9508 = vmatprep.subr.bf16.mxu0 %v9779_v39  ;;  %9451 = vmatpush3.bf16.msra.mxu1 %v9782_v21  ;;  %v10589_v53 = vpop.permute.xlu1 %1387 }
  0xae   : > { %v5039_v32 = vcombine.low %v5030_v26, %v5037_v27  ;;  %9441 = vmatmul.mubr.bf16.gmra.mrb[40].mxu1 %v5005_v28  ;;  %v5068_v41 = vrot.slane %v5061_v34, %v9995_v20  ;;  %v10573_v45 = vpop.permute.xlu0 %1402  ;;  %9452 = vmatprep.subr.bf16.mxu1 %v9783_v57 }
  0xaf   : > { %v5023_v33 = vrot.slane %v5007_v30, %v9995_v20 }
  0xb0   : > { %v5053_v36 = vrot.slane %v5039_v32, %v9995_v20  ;;  %9509 = vmatpush3.bf16.msra.mxu0 %v9779_v39 }
  0xb1   : > { %v5038_v35 = vcombine.low %v5016_v12, %v5023_v33  ;;  %9510 = vmatprep.subr.bf16.mxu0 %v9780_v29  ;;  %v10593_v55 = vpop.permute.xlu1 %1397  ;;  %9453 = vmatpush3.bf16.msra.mxu1 %v9783_v57 }
  0xb2   : > { %v10575_v46 = vpop.permute.xlu0 %3950  ;;  %9454 = vmatprep.subr.bf16.mxu1 %v9784_v51 }
  0xb3   : > { %v5046_v38 = vrot.slane %v5038_v35, %v9995_v20 }
  0xb4   : > { %9511 = vmatpush3.bf16.msra.mxu0 %v9780_v29 }
  0xb5   : > { %v5054_v42 = vcombine.low %v5046_v38, %v5053_v36  ;;  %v10600_v5 = vpop.permute.xlu1 %1407  ;;  %9455 = vmatpush3.bf16.msra.mxu1 %v9784_v51  ;;  %9520 = vmatprep.subr.bf16.mxu0 %v10635_v10 }
  0xb6   : > { %v10580_v48 = vpop.permute.xlu0 %3955  ;;  %9456 = vmatprep.subr.bf16.mxu1 %v9785_v61 }
  0xb7   : > { %9444 = vmatprep.mubr.bf16.mxu1 %v5054_v42 }
  0xb8   : > { %9445 = vmatmul.mubr.bf16.gmra.mrb[44].mxu1 %v5068_v41 }
  0xb9   : > { %v10613_v44 = vpop.permute.xlu1 %3960  ;;  %9457 = vmatpush3.bf16.msra.mxu1 %v9785_v61 }
  0xba   : > { %v10585_v49 = vpop.permute.xlu0 %3970  ;;  %9458 = vmatprep.subr.bf16.mxu1 %v9786_v63 }
  0xbd   : > { %v10620_v7 = vpop.permute.xlu1 %3965  ;;  %9459 = vmatpush3.bf16.msra.mxu1 %v9786_v63 }
  0xbe   : > { %v10587_v52 = vpop.permute.xlu0 %3980  ;;  %9460 = vmatprep.subr.bf16.mxu1 %v9787_v6 }
  0xc1   : > { %9461 = vmatpush3.bf16.msra.mxu1 %v9787_v6  ;;  %v10627_v8 = vpop.permute.xlu1 %3945 }
  0xc2   : > { %v10591_v54 = vpop.permute.xlu0 %3985  ;;  %9462 = vmatprep.subr.bf16.mxu1 %v9788_v1 }
  0xc5   : > { %9463 = vmatpush3.bf16.msra.mxu1 %v9788_v1  ;;  %v10640_v3 = vpop.permute.xlu1 %3975 }
  0xc6   : > { %v10595_v56 = vpop.permute.xlu0 %5203  ;;  %9472 = vmatprep.subr.bf16.mxu1 %v9789_v9 }
  0xc7   : > { %12275 = vst [vmem:[#allocation2_spill] sm:$0xff] %v10595_v56 }
  0xc9   : > { %v10654_v18 = vpop.permute.xlu1 %3990 }
  0xca   : > { %v10608_v0 = vpop.permute.xlu0 %5208  ;;  %12280 = vst [vmem:[#allocation7_spill] sm:$0xff] %v10654_v18 }
  0xcb   : > { %12276 = vst [vmem:[#allocation3_spill] sm:$0xff] %v10608_v0 }
  0xcd   : > { %v10666_v33 = vpop.permute.xlu1 %5213 }
  0xce   : > { %v10615_v4 = vpop.permute.xlu0 %5223  ;;  %12281 = vst [vmem:[#allocation8_spill] sm:$0xff] %v10666_v33 }
  0xcf   : > { %12277 = vst [vmem:[#allocation4_spill] sm:$0xff] %v10615_v4 }
  0xd1   : > { %v10672_v57 = vpop.permute.xlu1 %5218 }
  0xd2   : > { %v10625_v40 = vpop.permute.xlu0 %5233  ;;  %12282 = vst [vmem:[#allocation9_spill] sm:$0xff] %v10672_v57 }
  0xd3   : > { %12278 = vst [vmem:[#allocation5_spill] sm:$0xff] %v10625_v40 }
  0xd6   : > { %v10637_v11 = vpop.permute.xlu0 %5238 }
  0xd7   : > { %12279 = vst [vmem:[#allocation6_spill] sm:$0xff] %v10637_v11 }
  0xda   : > { %v10642_v13 = vpop.permute.xlu0 %2672 }
  0xde   : > { %v10658_v60 = vpop.permute.xlu0 %2677 }
  0xe2   : > { %v10668_v36 = vpop.permute.xlu0 %2692 }
  0xe6   : > { %v10679_v1 = vpop.permute.xlu0 %2702 }
 0x102   : > { %v9354_v15 = vpop.f32.mrb[0].mxu1 }
 0x103   : > { %v1311_v19 = vmul.f32 %v9354_v15, %v10647_v14  ;;  %v1256_v22 = vpop.f32.mrb[1].mxu1 }
 0x104   : > { %v1309_v23 = vmul.f32 %v10647_v14, %v1256_v22  ;;  %v9355_v24 = vpop.f32.mrb[2].mxu1 }
 0x105   : > { %v1329_v25 = vadd.f32 %v10652_v16, %v1311_v19  ;;  %v1312_v26 = vmul.f32 %v9355_v24, %v10647_v14  ;;  %v1259_v27 = vpop.f32.mrb[3].mxu1 }
 0x106   : > { %v1327_v58 = vadd.f32 %v10652_v16, %v1309_v23  ;;  %v1310_v28 = vmul.f32 %v10647_v14, %v1259_v27 }
 0x107   : > { %v1340_v30 = vmax.f32 %v1329_v25, 0.0  ;;  %v1330_v12 = vadd.f32 %v10652_v16, %v1312_v26 }
 0x108   : > { %v1338_v31 = vmax.f32 %v1327_v58, 0.0  ;;  %v1328_v32 = vadd.f32 %v10652_v16, %v1310_v28 }
 0x109   : > { %v1417_v2 = vmul.f32 %v1373_v17, %v1340_v30  ;;  %v1341_v34 = vmax.f32 %v1330_v12, 0.0  ;;  %v10698_v30 = vpop.permute.xlu1 %5198 }
 0x10a   : > { %v1339_v35 = vmax.f32 %v1328_v32, 0.0  ;;  %v1415_v39 = vmul.f32 %v10532_v59, %v1338_v31  ;;  %12288 = vst [vmem:[#allocation15_spill] sm:$0xff] %v10698_v30 }
 0x10b   : > { %v1418_v38 = vmul.f32 %v1378_v50, %v1341_v34 }
 0x10c   : > { %v1416_v41 = vmul.f32 %v10547_v62, %v1339_v35 }
 0x10d   : > { %v1427_v42 = vpack.c.bf16 %v1418_v38, %v1417_v2  ;;  %v8604_v29 = vpack.c.bf16 %v1418_v38, %v1418_v38 }
 0x10e   : > { %v1426_v47 = vpack.c.bf16 %v1416_v41, %v1415_v39  ;;  %v8603_v21 = vpack.c.bf16 %v1416_v41, %v1416_v41  ;;  %v10711_v39 = vpop.permute.xlu0 %2707 }
 0x10f   : > { %v1494_v51 = vrot.slane %v1427_v42, %v9995_v20  ;;  %v1501_v61 = vrot.slane %v8604_v29, %v9995_v20  ;;  %v9358_v17 = vpop.f32.mrb[4].mxu1 }
 0x110   : > { %v1445_v63 = vrot.slane %v1426_v47, %v9995_v20  ;;  %v1452_v6 = vrot.slane %v8603_v21, %v9995_v20  ;;  %v1315_v50 = vmul.f32 %v9358_v17, %v10647_v14  ;;  %v1272_v59 = vpop.f32.mrb[5].mxu1 }
 0x111   : > { %v1502_v62 = vcombine.high %v1494_v51, %v1494_v51  ;;  %v10682_v9 = vrot.slane %v1494_v51, %v9995_v20  ;;  %v9359_v15 = vpop.f32.mrb[6].mxu1  ;;  %v1503_v19 = vcombine.high %v1501_v61, %v1501_v61  ;;  %v10685_v24 = vrot.slane %v1501_v61, %v9995_v20 }
 0x112   : > { %v1453_v22 = vcombine.high %v1445_v63, %v1445_v63  ;;  %v1275_v23 = vpop.f32.mrb[7].mxu1  ;;  %v1454_v27 = vcombine.high %v1452_v6, %v1452_v6  ;;  %v10695_v58 = vrot.slane %v1452_v6, %v9995_v20  ;;  %v1333_v28 = vadd.f32 %v10652_v16, %v1315_v50 }
 0x113   : > { %12283 = vst [vmem:[#allocation10_spill] sm:$0xff] %v10682_v9  ;;  %12284 = vst [vmem:[#allocation11_spill] sm:$0xff] %v10685_v24  ;;  %v10688_v25 = vrot.slane %v1502_v62, %v9995_v20  ;;  %v10692_v26 = vcombine.high %v10682_v9, %v10682_v9  ;;  %v10703_v31 = vrot.slane %v1445_v63, %v9995_v20 }
 0x114   : > { %12287 = vst [vmem:[#allocation14_spill] sm:$0xff] %v10695_v58  ;;  %v10706_v32 = vrot.slane %v1453_v22, %v9995_v20  ;;  %v1344_v2 = vmax.f32 %v1333_v28, 0.0  ;;  %v1313_v34 = vmul.f32 %v10647_v14, %v1272_v59  ;;  %v1316_v35 = vmul.f32 %v9359_v15, %v10647_v14 }
 0x115   : > { %12285 = vst [vmem:[#allocation12_spill] sm:$0xff] %v10688_v25  ;;  %12286 = vst [vmem:[#allocation13_spill] sm:$0xff] %v10692_v26  ;;  %v1314_v38 = vmul.f32 %v10647_v14, %v1275_v23  ;;  %v10714_v41 = vrot.slane %v1503_v19, %v9995_v20  ;;  %v10718_v42 = vcombine.high %v10685_v24, %v10685_v24  ;;  %v10733_v23 = vpop.permute.xlu1 %5228 }
 0x116   : > { %12289 = vst [vmem:[#allocation16_spill] sm:$0xff] %v10703_v31  ;;  %12290 = vst [vmem:[#allocation17_spill] sm:$0xff] %v10706_v32  ;;  %v10721_v29 = vrot.slane %v1454_v27, %v9995_v20  ;;  %v1331_v21 = vadd.f32 %v10652_v16, %v1313_v34  ;;  %v1334_v51 = vadd.f32 %v10652_v16, %v1316_v35  ;;  %v1698_v35 = vunpack.i.h.s16 %v10703_v31 }
 0x117   : > { %12291 = vst [vmem:[#allocation18_spill] sm:$0xff] %v10714_v41  ;;  %12292 = vst [vmem:[#allocation19_spill] sm:$0xff] %v10718_v42  ;;  %v1332_v61 = vadd.f32 %v10652_v16, %v1314_v38  ;;  %v1421_v63 = vmul.f32 %v10568_v43, %v1344_v2  ;;  %v1483_v59 = vcombine.high %v10703_v31, %v10703_v31  ;;  %v1700_v38 = vunpack.i.h.s16 %v10706_v32 }
 0x118   : > { %v9362_v17 = vpop.f32.mrb[8].mxu1  ;;  %v1485_v62 = vcombine.high %v10706_v32, %v10706_v32  ;;  %v1342_v15 = vmax.f32 %v1331_v21, 0.0  ;;  %v1345_v19 = vmax.f32 %v1334_v51, 0.0  ;;  %12293 = vst [vmem:[#allocation20_spill] sm:$0xff] %v10733_v23  ;;  %v10738_v43 = vcombine.high %v10714_v41, %v10714_v41 }
 0x119   : > { %v1319_v6 = vmul.f32 %v9362_v17, %v10647_v14  ;;  %v1288_v50 = vpop.f32.mrb[9].mxu1  ;;  %v1343_v22 = vmax.f32 %v1332_v61, 0.0  ;;  %v1702_v47 = vunpack.i.h.s16 %v1483_v59 }
 0x11a   : > { %v1317_v27 = vmul.f32 %v10647_v14, %v1288_v50  ;;  %v9363_v28 = vpop.f32.mrb[10].mxu1  ;;  %12294 = vst [vmem:[#allocation21_spill] sm:$0xff] %v10738_v43  ;;  %v1419_v21 = vmul.f32 %v10561_v37, %v1342_v15  ;;  %v1422_v51 = vmul.f32 %v10593_v55, %v1345_v19  ;;  %v1413_v50 = vpop.permute.xlu0 %1412  ;;  %v1704_v11 = vunpack.i.h.s16 %v1485_v62 }
 0x11b   : > { %v1337_v2 = vadd.f32 %v10652_v16, %v1319_v6  ;;  %v1291_v34 = vpop.f32.mrb[11].mxu1  ;;  %v1420_v61 = vmul.f32 %v10589_v53, %v1343_v22  ;;  %v8916_v15 = vpack.i.b16 %v1483_v59, %v1700_v38  ;;  %v10751_v53 = vcombine.high %v10688_v25, %v10688_v25  ;;  %v10755_v22 = vpop.permute.xlu1 %5243 }
 0x11c   : > { %v1335_v17 = vadd.f32 %v10652_v16, %v1317_v27  ;;  %v1318_v28 = vmul.f32 %v10647_v14, %v1291_v34  ;;  %v1429_v6 = vpack.c.bf16 %v1422_v51, %v1421_v63  ;;  %v8606_v4 = vpack.c.bf16 %v1422_v51, %v1422_v51  ;;  %12296 = vst [vmem:[#allocation23_spill] sm:$0xff] %v10755_v22 }
 0x11d   : > { %v1348_v12 = vmax.f32 %v1337_v2, 0.0  ;;  %v1428_v40 = vpack.c.bf16 %v1420_v61, %v1419_v21  ;;  %v8605_v57 = vpack.c.bf16 %v1420_v61, %v1420_v61  ;;  %12295 = vst [vmem:[#allocation22_spill] sm:$0xff] %v10751_v53  ;;  %v8915_v63 = vpack.i.b16 %v10706_v32, %v1698_v35 }
 0x11e   : > { %v1346_v23 = vmax.f32 %v1335_v17, 0.0  ;;  %v1336_v42 = vadd.f32 %v10652_v16, %v1318_v28  ;;  %v1592_v55 = vrot.slane %v1429_v6, %v9995_v20  ;;  %v1599_v19 = vrot.slane %v8606_v4, %v9995_v20 }
 0x11f   : > { %v1425_v37 = vmul.f32 %v1413_v50, %v1348_v12  ;;  %v10759_v27 = vrot.slane %v1428_v40, %v9995_v20  ;;  %v8918_v12 = vpack.i.b16 %v10695_v58, %v1704_v11  ;;  %v10764_v38 = vrot.slane %v8605_v57, %v9995_v20 }
 0x120   : > { %v1347_v2 = vmax.f32 %v1336_v42, 0.0  ;;  %v10767_v21 = vmul.f32 %v10573_v45, %v1346_v23  ;;  %v10771_v4 = vcombine.high %v10695_v58, %v10695_v58  ;;  %v10776_v40 = vcombine.high %v10721_v29, %v10721_v29 }
 0x121   : > { %v1431_v34 = vpack.c.bf16 %v1425_v37, %v1425_v37  ;;  %v8917_v42 = vpack.i.b16 %v1485_v62, %v1702_v47  ;;  %v6326_v11 = vcombine.low %v8915_v63, %v8916_v15  ;;  %v1600_v51 = vcombine.high %v1592_v55, %v1592_v55  ;;  %v2683_v37 = vpop.permute.xlu1 %2682 }
 0x122   : > { %12297 = vst [vmem:[#allocation24_spill] sm:$0xff] %v10771_v4  ;;  %12298 = vst [vmem:[#allocation25_spill] sm:$0xff] %v10776_v40  ;;  %v1601_v61 = vcombine.high %v1599_v19, %v1599_v19  ;;  %v10779_v57 = vrot.slane %v1592_v55, %v9995_v20  ;;  %v1424_v45 = vmul.f32 %v10600_v5, %v1347_v2  ;;  %v1716_v59 = vunpack.i.h.s16 %v10688_v25 }
 0x123   : > { %v10783_v23 = vrot.slane %v1599_v19, %v9995_v20  ;;  %v1551_v17 = vcombine.high %v10759_v27, %v10759_v27  ;;  %v1689_v50 = vrot.slane %v1431_v34, %v9995_v20  ;;  %v6327_v28 = vcombine.low %v8917_v42, %v8918_v12 }
 0x124   : > { %12299 = vst [vmem:[#allocation26_spill] sm:$0xff] %v10779_v57  ;;  %v1430_v62 = vpack.c.bf16 %v1424_v45, %v10767_v21  ;;  %v8607_v6 = vpack.c.bf16 %v1424_v45, %v1424_v45  ;;  %v6328_v15 = vcombine.low %v10721_v29, %v10771_v4  ;;  %v10795_v5 = vrot.slane %v10759_v27, %v9995_v20 }
 0x125   : > { %12300 = vst [vmem:[#allocation27_spill] sm:$0xff] %v10783_v23  ;;  %v6329_v55 = vcombine.low %v10776_v40, %v10682_v9  ;;  %v6336_v19 = vrot.slane %v6326_v11, %v9995_v20  ;;  %v6343_v63 = vrot.slane %v6327_v28, %v9995_v20  ;;  %v10802_v2 = vrot.slane %v1600_v51, %v9995_v20  ;;  %v9794_v9 = vld [vmem:[%s12182_s3 + $0xd0] sm:$0xff]  }
 0x126   : > { %12301 = vst [vmem:[#allocation28_spill] sm:$0xff] %v10795_v5  ;;  %v10805_v34 = vrot.slane %v1601_v61, %v9995_v20  ;;  %v10809_v12 = vrot.slane %v10764_v38, %v9995_v20  ;;  %v1648_v27 = vrot.slane %v8607_v6, %v9995_v20  ;;  %v1696_v21 = vrot.slane %v1689_v50, %v9995_v20 }
 0x127   : > { %12302 = vst [vmem:[#allocation29_spill] sm:$0xff] %v10802_v2  ;;  %v6350_v45 = vrot.slane %v6328_v15, %v9995_v20  ;;  %v6357_v11 = vrot.slane %v6329_v55, %v9995_v20  ;;  %v6358_v28 = vcombine.low %v6336_v19, %v6343_v63  ;;  %v1718_v47 = vunpack.i.h.s16 %v10692_v26  ;;  %v10826_v19 = vpop.permute.xlu1 %2687 }
 0x128   : > { %12303 = vst [vmem:[#allocation30_spill] sm:$0xff] %v10805_v34  ;;  %12304 = vst [vmem:[#allocation31_spill] sm:$0xff] %v10809_v12  ;;  %v1650_v35 = vcombine.high %v1648_v27, %v1648_v27  ;;  %v10816_v51 = vrot.slane %v1648_v27, %v9995_v20 }
 0x129   : > { %v9382_v42 = vpop.f32.mrb[12].mxu1  ;;  %v6359_v43 = vcombine.low %v6350_v45, %v6357_v11  ;;  %v6366_v15 = vrot.slane %v6358_v28, %v9995_v20 }
 0x12a   : > { %12305 = vst [vmem:[#allocation32_spill] sm:$0xff] %v10816_v51  ;;  %v2578_v61 = vpop.f32.mrb[13].mxu1  ;;  %v2625_v22 = vmul.f32 %v9382_v42, %v10647_v14  ;;  %v10824_v55 = vrot.slane %v1650_v35, %v9995_v20  ;;  %v10830_v63 = vcombine.high %v10816_v51, %v10816_v51  ;;  %v1720_v42 = vunpack.i.h.s16 %v10751_v53 }
 0x12b   : > { %v2623_v6 = vmul.f32 %v10647_v14, %v2578_v61  ;;  %v9383_v50 = vpop.f32.mrb[14].mxu1  ;;  %v10838_v35 = vrot.slane %v6359_v43, %v9995_v20 }
 0x12c   : > { %12306 = vst [vmem:[#allocation33_spill] sm:$0xff] %v10824_v55  ;;  %12307 = vst [vmem:[#allocation34_spill] sm:$0xff] %v10830_v63  ;;  %v2626_v27 = vmul.f32 %v9383_v50, %v10647_v14  ;;  %v2581_v25 = vpop.f32.mrb[15].mxu1  ;;  %v2635_v61 = vadd.f32 %v10652_v16, %v2625_v22  ;;  %v1682_v28 = vcombine.high %v10824_v55, %v10824_v55  ;;  %v1774_v51 = vunpack.i.h.s16 %v10830_v63 }
 0x12d   : > { %v2633_v45 = vadd.f32 %v10652_v16, %v2623_v6  ;;  %v2624_v11 = vmul.f32 %v10647_v14, %v2581_v25  ;;  %12308 = vst [vmem:[#allocation35_spill] sm:$0xff] %v10838_v35  ;;  %v1722_v50 = vunpack.i.h.s16 %v10685_v24  ;;  %v6374_v6 = vcombine.low %v6366_v15, %v10838_v35 }
 0x12e   : > { %v2636_v56 = vadd.f32 %v10652_v16, %v2626_v27  ;;  %v2645_v33 = vmax.f32 %v2635_v61, 0.0  ;;  %v10848_v25 = vrot.slane %v1551_v17, %v9995_v20  ;;  %v1776_v43 = vunpack.i.h.s16 %v1682_v28 }
 0x12f   : > { %v2643_v30 = vmax.f32 %v2633_v45, 0.0  ;;  %v2634_v22 = vadd.f32 %v10652_v16, %v2624_v11  ;;  %v10850_v0 = vpack.i.b16 %v1682_v28, %v1774_v51  ;;  %v1730_v55 = vunpack.i.h.s16 %v10795_v5  ;;  %9512 = vmatprep.mubr.bf16.mxu0 %v6374_v6  ;;  %v2668_v45 = vpop.permute.xlu1 %2667 }
 0x130   : > { %12309 = vst [vmem:[#allocation36_spill] sm:$0xff] %v10848_v25  ;;  %v2646_v18 = vmax.f32 %v2636_v56, 0.0  ;;  %v1641_v63 = vrot.slane %v1430_v62, %v9995_v20  ;;  %v2721_v27 = vmul.f32 %v10658_v60, %v2645_v33  ;;  %v10855_v61 = vpack.i.b16 %v1696_v21, %v1776_v43 }
 0x131   : > { %12310 = vst [vmem:[#allocation37_spill] sm:$0xff] %v10850_v0  ;;  %v2644_v31 = vmax.f32 %v2634_v22, 0.0  ;;  %v8919_v15 = vpack.i.b16 %v10692_v26, %v1716_v59  ;;  %v8921_v17 = vpack.i.b16 %v10685_v24, %v1720_v42  ;;  %v2719_v35 = vmul.f32 %v2668_v45, %v2643_v30 }
 0x132   : > { %12311 = vst [vmem:[#allocation38_spill] sm:$0xff] %v10855_v61  ;;  %v2722_v11 = vmul.f32 %v2683_v37, %v2646_v18  ;;  %v8920_v56 = vpack.i.b16 %v10751_v53, %v1718_v47  ;;  %v8922_v28 = vpack.i.b16 %v10714_v41, %v1722_v50  ;;  %v12312_v60 = vcombine.high %v10764_v38, %v10764_v38 }
 0x133   : > { %v2720_v51 = vmul.f32 %v10642_v13, %v2644_v31  ;;  %v6378_v13 = vcombine.low %v10795_v5, %v10848_v25  ;;  %v10873_v47 = vpack.i.b16 %v10848_v25, %v1730_v55  ;;  %v1649_v42 = vcombine.high %v1641_v63, %v1641_v63 }
 0x134   : > { %v10866_v33 = vrot.slane %v12312_v60, %v9995_v20  ;;  %v2730_v62 = vpack.c.bf16 %v2722_v11, %v2721_v27  ;;  %v8679_v59 = vpack.c.bf16 %v2722_v11, %v2722_v11  ;;  %v6376_v30 = vcombine.low %v8921_v17, %v8922_v28 }
 0x135   : > { %v2729_v37 = vpack.c.bf16 %v2720_v51, %v2719_v35  ;;  %v8678_v21 = vpack.c.bf16 %v2720_v51, %v2720_v51  ;;  %v9386_v31 = vpop.f32.mrb[16].mxu1  ;;  %12314 = vst [vmem:[#allocation40_spill] sm:$0xff] %v10873_v47  ;;  %v6375_v35 = vcombine.low %v8919_v15, %v8920_v56  ;;  %v8931_v27 = vcombine.high %v10685_v24, %v10714_v41 }
 0x136   : > { %12313 = vst [vmem:[#allocation39_spill] sm:$0xff] %v10866_v33  ;;  %v2795_v38 = vrot.slane %v2730_v62, %v9995_v20  ;;  %v2802_v50 = vrot.slane %v8679_v59, %v9995_v20  ;;  %v2594_v22 = vpop.f32.mrb[17].mxu1  ;;  %v10882_v11 = vrot.slane %v1641_v63, %v9995_v20  ;;  %v6392_v59 = vrot.slane %v6376_v30, %v9995_v20 }
 0x137   : > { %v2746_v6 = vrot.slane %v2729_v37, %v9995_v20  ;;  %v2753_v43 = vrot.slane %v8678_v21, %v9995_v20  ;;  %v9387_v45 = vpop.f32.mrb[18].mxu1  ;;  %v6406_v15 = vrot.slane %v6378_v13, %v9995_v20  ;;  %v10891_v56 = vrot.slane %v1649_v42, %v9995_v20 }
 0x138   : > { %12315 = vst [vmem:[#allocation41_spill] sm:$0xff] %v10882_v11  ;;  %v2803_v55 = vcombine.high %v2795_v38, %v2795_v38  ;;  %v2804_v17 = vcombine.high %v2802_v50, %v2802_v50  ;;  %v2818_v51 = vrot.slane %v2802_v50, %v9995_v20  ;;  %v2597_v28 = vpop.f32.mrb[19].mxu1  ;;  %v10886_v60 = vrot.slane %v2795_v38, %v9995_v20 }
 0x139   : > { %v2754_v62 = vcombine.high %v2746_v6, %v2746_v6  ;;  %12316 = vst [vmem:[#allocation42_spill] sm:$0xff] %v10891_v56  ;;  %v2755_v63 = vcombine.high %v2753_v43, %v2753_v43  ;;  %v10895_v21 = vrot.slane %v2753_v43, %v9995_v20  ;;  %v6385_v38 = vrot.slane %v6375_v35, %v9995_v20 }
 0x13a   : > { %v2825_v37 = vrot.slane %v2803_v55, %v9995_v20  ;;  %v10898_v50 = vrot.slane %v2804_v17, %v9995_v20  ;;  %v6399_v18 = vrot.slane %v8931_v27, %v9995_v20  ;;  %v2629_v30 = vmul.f32 %v9386_v31, %v10647_v14 }
 0x13b   : > { %v10903_v61 = vcombine.high %v2818_v51, %v2818_v51  ;;  %v10906_v42 = vrot.slane %v2746_v6, %v9995_v20  ;;  %v2627_v55 = vmul.f32 %v10647_v14, %v2594_v22  ;;  %v2833_v43 = vcombine.high %v10886_v60, %v10886_v60 }
 0x13c   : > { %v2835_v13 = vcombine.high %v2825_v37, %v2825_v37  ;;  %v10912_v17 = vrot.slane %v2754_v62, %v9995_v20  ;;  %v6407_v0 = vcombine.low %v6385_v38, %v6392_v59  ;;  %v6408_v35 = vcombine.low %v6399_v18, %v6406_v15 }
 0x13d   : > { %v10917_v31 = vrot.slane %v2755_v63, %v9995_v20  ;;  %v10921_v27 = vcombine.high %v10895_v21, %v10895_v21  ;;  %v10926_v26 = vcombine.high %v10898_v50, %v10898_v50  ;;  %v3008_v15 = vunpack.i.h.s16 %v10898_v50  ;;  %v9792_v50 = vld [vmem:[%s12182_s3 + $0xc8] sm:$0xff]  }
 0x13e   : > { %v10914_v47 = vcombine.low %v2835_v13, %v2818_v51  ;;  %v10929_v62 = vrot.slane %v6407_v0, %v9995_v20  ;;  %v10932_v18 = vrot.slane %v6408_v35, %v9995_v20  ;;  %v2639_v51 = vadd.f32 %v10652_v16, %v2629_v30 }
 0x13f   : > { %v9390_v22 = vpop.f32.mrb[20].mxu1  ;;  %v3010_v63 = vunpack.i.h.s16 %v10903_v61  ;;  %v2637_v38 = vadd.f32 %v10652_v16, %v2627_v55  ;;  %v2630_v13 = vmul.f32 %v9387_v45, %v10647_v14  ;;  %v2628_v35 = vmul.f32 %v10647_v14, %v2597_v28 }
 0x140   : > { %12317 = vst [vmem:[#allocation43_spill] sm:$0xff] %v10929_v62  ;;  %12318 = vst [vmem:[#allocation44_spill] sm:$0xff] %v10932_v18  ;;  %v10935_v59 = vpop.f32.mrb[21].mxu1  ;;  %v6423_v0 = vcombine.low %v10929_v62, %v10932_v18  ;;  %v2649_v6 = vmax.f32 %v2639_v51, 0.0  ;;  %v1581_v30 = vcombine.high %v10795_v5, %v10795_v5  ;;  %v10951_v24 = vcombine.low %v2825_v37, %v2833_v43  ;;  %v2698_v51 = vpop.permute.xlu1 %2697 }
 0x141   : > { %v9391_v22 = vpop.f32.mrb[22].mxu1  ;;  %v2647_v55 = vmax.f32 %v2637_v38, 0.0  ;;  %v2640_v45 = vadd.f32 %v10652_v16, %v2630_v13  ;;  %v2638_v28 = vadd.f32 %v10652_v16, %v2628_v35  ;;  %v10959_v62 = vcombine.high %v10809_v12, %v10809_v12 }
 0x142   : > { %v10946_v53 = vpop.f32.mrb[23].mxu1  ;;  %v1583_v22 = vcombine.high %v10848_v25, %v10848_v25  ;;  %9513 = vmatmul.mubr.bf16.vlgmr.msra.gmra.mrb[0].mxu0 %v6423_v0  ;;  %v10963_v5 = vcombine.high %v10866_v33, %v10866_v33  ;;  %v10967_v37 = vcombine.high %v10779_v57, %v10779_v57  ;;  %v2725_v43 = vmul.f32 %v2698_v51, %v2649_v6 }
 0x143   : > { %12319 = vst [vmem:[#allocation45_spill] sm:$0xff] %v10959_v62  ;;  %v2650_v38 = vmax.f32 %v2640_v45, 0.0  ;;  %v1734_v13 = vunpack.i.h.s16 %v1581_v30  ;;  %9521 = vmatpush3.bf16.msra.mxu0 %v10635_v10  ;;  %v2648_v0 = vmax.f32 %v2638_v28, 0.0  ;;  %v1738_v35 = vunpack.i.h.s16 %v10809_v12 }
 0x144   : > { %12320 = vst [vmem:[#allocation46_spill] sm:$0xff] %v10963_v5  ;;  %12321 = vst [vmem:[#allocation47_spill] sm:$0xff] %v10967_v37  ;;  %v1736_v25 = vunpack.i.h.s16 %v1583_v22  ;;  %v1740_v41 = vunpack.i.h.s16 %v10866_v33  ;;  %v6426_v32 = vcombine.low %v10963_v5, %v10779_v57  ;;  %9522 = vmatprep.subr.bf16.mxu0 %v9792_v50  ;;  %v6427_v10 = vcombine.low %v10802_v2, %v10967_v37 }
 0x145   : > { %v2726_v6 = vmul.f32 %v10679_v1, %v2650_v38  ;;  %v8923_v45 = vpack.i.b16 %v1583_v22, %v1734_v13  ;;  %v2723_v51 = vmul.f32 %v10826_v19, %v2647_v55  ;;  %v2724_v28 = vmul.f32 %v10668_v36, %v2648_v0  ;;  %v9796_v36 = vld [vmem:[%s12182_s3 + $0xd8] sm:$0xff]  }
 0x146   : > { %v8924_v30 = vpack.i.b16 %v10809_v12, %v1736_v25  ;;  %v8925_v58 = vpack.i.b16 %v10866_v33, %v1738_v35  ;;  %v8926_v57 = vpack.i.b16 %v10959_v62, %v1740_v41  ;;  %v10986_v5 = vpack.i.b16 %v10903_v61, %v3008_v15 }
 0x147   : > { %v2732_v40 = vpack.c.bf16 %v2726_v6, %v2725_v43  ;;  %v8681_v4 = vpack.c.bf16 %v2726_v6, %v2726_v6  ;;  %9523 = vmatpush3.bf16.msra.mxu0 %v9792_v50  ;;  %v10989_v25 = vpack.i.b16 %v10926_v26, %v3010_v63  ;;  %v2731_v22 = vpack.c.bf16 %v2724_v28, %v2723_v51  ;;  %v9798_v6 = vld [vmem:[%s12182_s3 + $0xe0] sm:$0xff]  }
 0x148   : > { %v6424_v1 = vcombine.low %v8923_v45, %v8924_v30  ;;  %v8680_v38 = vpack.c.bf16 %v2724_v28, %v2724_v28  ;;  %v6425_v13 = vcombine.low %v8925_v58, %v8926_v57  ;;  %9524 = vmatprep.subr.bf16.mxu0 %v9794_v9  ;;  %v6448_v61 = vrot.slane %v6426_v32, %v9995_v20 }
 0x149   : > { %v2893_v41 = vrot.slane %v2732_v40, %v9995_v20  ;;  %v2900_v19 = vrot.slane %v8681_v4, %v9995_v20  ;;  %v6455_v15 = vrot.slane %v6427_v10, %v9995_v20  ;;  %v3012_v50 = vunpack.i.h.s16 %v10926_v26 }
 0x14a   : > { %v2844_v55 = vrot.slane %v2731_v22, %v9995_v20  ;;  %v11002_v58 = vrot.slane %v8680_v38, %v9995_v20  ;;  %v6434_v40 = vrot.slane %v6424_v1, %v9995_v20  ;;  %v6441_v4 = vrot.slane %v6425_v13, %v9995_v20 }
 0x14b   : > { %v2901_v43 = vcombine.high %v2893_v41, %v2893_v41  ;;  %9525 = vmatpush3.bf16.msra.mxu0 %v9794_v9  ;;  %v2902_v32 = vcombine.high %v2900_v19, %v2900_v19  ;;  %v11009_v0 = vrot.slane %v2893_v41, %v9995_v20  ;;  %v6457_v9 = vcombine.low %v6448_v61, %v6455_v15 }
 0x14c   : > { %v2852_v26 = vcombine.high %v2844_v55, %v2844_v55  ;;  %v11012_v35 = vrot.slane %v2844_v55, %v9995_v20  ;;  %9526 = vmatprep.subr.bf16.mxu0 %v9796_v36  ;;  %v11023_v10 = vcombine.high %v10802_v2, %v10802_v2  ;;  %v11026_v51 = vrot.slane %v2900_v19, %v9995_v20 }
 0x14d   : > { %v11035_v22 = vcombine.high %v10783_v23, %v10783_v23  ;;  %v11039_v13 = vrot.slane %v11002_v58, %v9995_v20  ;;  %v6456_v61 = vcombine.low %v6434_v40, %v6441_v4  ;;  %v11046_v55 = vrot.slane %v2901_v43, %v9995_v20 }
 0x14e   : > { %12322 = vst [vmem:[#allocation48_spill] sm:$0xff] %v11023_v10  ;;  %v11031_v1 = vrot.slane %v2852_v26, %v9995_v20  ;;  %v3014_v41 = vunpack.i.h.s16 %v11012_v35  ;;  %v11043_v19 = vpack.i.b16 %v11012_v35, %v3012_v50  ;;  %v11049_v26 = vrot.slane %v2902_v32, %v9995_v20  ;;  %v9800_v50 = vld [vmem:[%s12182_s3 + $0xe8] sm:$0xff]  }
 0x14f   : > { %12323 = vst [vmem:[#allocation49_spill] sm:$0xff] %v11035_v22  ;;  %9527 = vmatpush3.bf16.msra.mxu0 %v9796_v36  ;;  %v11055_v30 = vcombine.high %v10805_v34, %v10805_v34  ;;  %v11064_v43 = vrot.slane %v6456_v61, %v9995_v20  ;;  %v11067_v40 = vrot.slane %v6457_v9, %v9995_v20  ;;  %v1752_v4 = vunpack.i.h.s16 %v11023_v10 }
 0x150   : > { %v9410_v38 = vpop.f32.mrb[24].mxu1  ;;  %9528 = vmatprep.subr.bf16.mxu0 %v9798_v6  ;;  %v11061_v36 = vpack.i.b16 %v11031_v1, %v3014_v41  ;;  %v1754_v57 = vunpack.i.h.s16 %v10783_v23  ;;  %v1756_v63 = vunpack.i.h.s16 %v10805_v34  ;;  %v1758_v28 = vunpack.i.h.s16 %v11035_v22  ;;  %v9802_v41 = vld [vmem:[%s12182_s3 + $0xf0] sm:$0xff]  }
 0x151   : > { %v3856_v15 = vpop.f32.mrb[25].mxu1  ;;  %12324 = vst [vmem:[#allocation50_spill] sm:$0xff] %v11055_v30  ;;  %12325 = vst [vmem:[#allocation51_spill] sm:$0xff] %v11064_v43  ;;  %v6475_v12 = vcombine.low %v10882_v11, %v10891_v56  ;;  %v6472_v61 = vcombine.low %v11064_v43, %v11067_v40  ;;  %v8927_v10 = vpack.i.b16 %v10783_v23, %v1752_v4 }
 0x152   : > { %v9411_v45 = vpop.f32.mrb[26].mxu1  ;;  %12326 = vst [vmem:[#allocation52_spill] sm:$0xff] %v11067_v40  ;;  %v8928_v33 = vpack.i.b16 %v10805_v34, %v1754_v57  ;;  %v8929_v37 = vpack.i.b16 %v11035_v22, %v1756_v63  ;;  %v8930_v2 = vpack.i.b16 %v11055_v30, %v1758_v28  ;;  %v8932_v62 = vcombine.high %v10882_v11, %v10891_v56 }
 0x153   : > { %v3859_v32 = vpop.f32.mrb[27].mxu1  ;;  %9529 = vmatpush3.bf16.msra.mxu0 %v9798_v6  ;;  %9516 = vmatprep.mubr.bf16.mxu0 %v6472_v61  ;;  %v6497_v9 = vrot.slane %v6475_v12, %v9995_v20  ;;  %v2631_v6 = vmul.f32 %v10647_v14, %v10935_v59  ;;  %v2632_v57 = vmul.f32 %v10647_v14, %v10946_v53 }
 0x154   : > { %9530 = vmatprep.subr.bf16.mxu0 %v9800_v50  ;;  %v3903_v63 = vmul.f32 %v9410_v38, %v10647_v14  ;;  %v6473_v28 = vcombine.low %v8927_v10, %v8928_v33  ;;  %v6474_v4 = vcombine.low %v8929_v37, %v8930_v2  ;;  %v6504_v43 = vrot.slane %v8932_v62, %v9995_v20  ;;  %v9804_v33 = vld [vmem:[%s12182_s3 + $0xf8] sm:$0xff]  }
 0x155   : > { %v3901_v18 = vmul.f32 %v10647_v14, %v3856_v15  ;;  %v2641_v40 = vadd.f32 %v10652_v16, %v2631_v6  ;;  %v2642_v61 = vadd.f32 %v10652_v16, %v2632_v57  ;;  %v3904_v34 = vmul.f32 %v9411_v45, %v10647_v14  ;;  %v2713_v6 = vpop.permute.xlu1 %2712 }
 0x156   : > { %v3913_v12 = vadd.f32 %v10652_v16, %v3903_v63  ;;  %v6483_v59 = vrot.slane %v6473_v28, %v9995_v20  ;;  %v6490_v53 = vrot.slane %v6474_v4, %v9995_v20  ;;  %v6506_v38 = vcombine.low %v6497_v9, %v6504_v43 }
 0x157   : > { %9531 = vmatpush3.bf16.msra.mxu0 %v9800_v50  ;;  %v3911_v2 = vadd.f32 %v10652_v16, %v3901_v18  ;;  %v2651_v62 = vmax.f32 %v2641_v40, 0.0  ;;  %v2652_v37 = vmax.f32 %v2642_v61, 0.0  ;;  %v3914_v15 = vadd.f32 %v10652_v16, %v3904_v34 }
 0x158   : > { %9532 = vmatprep.subr.bf16.mxu0 %v9802_v41  ;;  %v3923_v10 = vmax.f32 %v3913_v12, 0.0  ;;  %v6505_v50 = vcombine.low %v6483_v59, %v6490_v53  ;;  %v11112_v57 = vrot.slane %v6506_v38, %v9995_v20  ;;  %v3902_v18 = vmul.f32 %v10647_v14, %v3859_v32 }
 0x159   : > { %v12328_v40 = vcombine.high %v11002_v58, %v11002_v58  ;;  %v2727_v34 = vmul.f32 %v10711_v39, %v2651_v62  ;;  %v11124_v63 = vmul.f32 %v2713_v6, %v2652_v37  ;;  %v3924_v28 = vmax.f32 %v3914_v15, 0.0 }
 0x15a   : > { %12327 = vst [vmem:[#allocation53_spill] sm:$0xff] %v11112_v57  ;;  %v11129_v61 = vrot.slane %v6505_v50, %v9995_v20  ;;  %v3921_v32 = vmax.f32 %v3911_v2, 0.0  ;;  %v3912_v12 = vadd.f32 %v10652_v16, %v3902_v18  ;;  %v2787_v59 = vcombine.high %v10917_v31, %v10917_v31  ;;  %v11146_v2 = vld [vmem:[%s12182_s3 + $0x100] sm:$0xff]  }
 0x15b   : > { %v11115_v43 = vpop.f32.mrb[28].mxu1  ;;  %v11121_v9 = vrot.slane %v12328_v40, %v9995_v20  ;;  %12329 = vst [vmem:[#allocation54_spill] sm:$0xff] %v11124_v63  ;;  %9533 = vmatpush3.bf16.msra.mxu0 %v9802_v41  ;;  %v2883_v39 = vcombine.high %v11039_v13, %v11039_v13  ;;  %v2733_v53 = vpack.c.bf16 %v11124_v63, %v2727_v34 }
 0x15c   : > { %v11126_v4 = vpop.f32.mrb[29].mxu1  ;;  %12330 = vst [vmem:[#allocation55_spill] sm:$0xff] %v11129_v61  ;;  %9534 = vmatprep.subr.bf16.mxu0 %v9804_v33  ;;  %v3999_v38 = vmul.f32 %v10580_v48, %v3923_v10  ;;  %v4000_v41 = vmul.f32 %v10613_v44, %v3924_v28  ;;  %v2934_v37 = vcombine.high %v11049_v26, %v11049_v26  ;;  %v3922_v6 = vmax.f32 %v3912_v12, 0.0 }
 0x15d   : > { %v11134_v58 = vpop.f32.mrb[30].mxu1  ;;  %v6521_v15 = vcombine.low %v11129_v61, %v11112_v57  ;;  %v2998_v50 = vunpack.i.h.s16 %v2787_v59  ;;  %v2942_v18 = vrot.slane %v2733_v53, %v9995_v20  ;;  %v2994_v44 = vunpack.i.h.s16 %v10917_v31 }
 0x15e   : > { %v11141_v62 = vpop.f32.mrb[31].mxu1  ;;  %v4008_v48 = vpack.c.bf16 %v4000_v41, %v3999_v38  ;;  %v8754_v10 = vpack.c.bf16 %v4000_v41, %v4000_v41  ;;  %v3997_v34 = vmul.f32 %v10627_v8, %v3921_v32  ;;  %v3998_v28 = vmul.f32 %v10575_v46, %v3922_v6 }
 0x15f   : > { %9535 = vmatpush3.bf16.msra.mxu0 %v9804_v33  ;;  %v8850_v45 = vpack.i.b16 %v10886_v60, %v2998_v50  ;;  %v11160_v12 = vcombine.high %v11121_v9, %v11121_v9  ;;  %v11162_v57 = vunpack.i.h.s16 %v2883_v39  ;;  %v2950_v53 = vcombine.high %v2942_v18, %v2942_v18 }
 0x160   : > { %9517 = vmatmul.mubr.bf16.gmra.mrb[4].mxu0 %v6521_v15  ;;  %v11165_v38 = vrot.slane %v2942_v18, %v9995_v20  ;;  %9544 = vmatprep.subr.bf16.mxu0 %v11146_v2  ;;  %v4073_v33 = vrot.slane %v4008_v48, %v9995_v20  ;;  %v4080_v8 = vrot.slane %v8754_v10, %v9995_v20  ;;  %v11170_v41 = vunpack.i.h.s16 %v2934_v37 }
 0x161   : > { %v4007_v32 = vpack.c.bf16 %v3998_v28, %v3997_v34  ;;  %v8753_v46 = vpack.c.bf16 %v3998_v28, %v3998_v28  ;;  %v12331_v60 = vunpack.i.h.s16 %v10895_v21  ;;  %v8848_v39 = vpack.i.b16 %v10921_v27, %v2994_v44 }
 0x162   : > { %v12332_v6 = vunpack.i.h.s16 %v10921_v27  ;;  %v4081_v40 = vcombine.high %v4073_v33, %v4073_v33  ;;  %v4082_v61 = vcombine.high %v4080_v8, %v4080_v8  ;;  %v11179_v48 = vrot.slane %v4073_v33, %v9995_v20 }
 0x163   : > { %v8847_v15 = vpack.i.b16 %v10917_v31, %v12331_v60  ;;  %v11182_v10 = vrot.slane %v4080_v8, %v9995_v20  ;;  %v11187_v21 = vrot.slane %v2950_v53, %v9995_v20  ;;  %v11191_v31 = vcombine.high %v11165_v38, %v11165_v38 }
 0x164   : > { %v8849_v50 = vpack.i.b16 %v2787_v59, %v12332_v6  ;;  %12333 = vst [vmem:[#allocation56_spill] sm:$0xff] %v11179_v48  ;;  %v4024_v27 = vrot.slane %v4007_v32, %v9995_v20  ;;  %v4031_v59 = vrot.slane %v8753_v46, %v9995_v20  ;;  %v11197_v28 = vrot.slane %v4081_v40, %v9995_v20 }
 0x165   : > { %v9418_v18 = vpop.f32.mrb[32].mxu1  ;;  %v11200_v33 = vrot.slane %v4082_v61, %v9995_v20  ;;  %v11204_v53 = vcombine.high %v11179_v48, %v11179_v48  ;;  %v5619_v32 = vcombine.low %v10906_v42, %v10912_v17  ;;  %v8863_v46 = vcombine.high %v10906_v42, %v10912_v17 }
 0x166   : > { %v11184_v37 = vpop.f32.mrb[33].mxu1  ;;  %v4032_v60 = vcombine.high %v4024_v27, %v4024_v27  ;;  %v4033_v6 = vcombine.high %v4031_v59, %v4031_v59  ;;  %v11214_v40 = vcombine.high %v11182_v10, %v11182_v10  ;;  %v4256_v18 = vunpack.i.h.s16 %v11197_v28 }
 0x167   : > { %v9419_v44 = vpop.f32.mrb[34].mxu1  ;;  %v11218_v61 = vcombine.high %v11200_v33, %v11200_v33  ;;  %v11226_v34 = vcombine.high %v11197_v28, %v11197_v28  ;;  %v11231_v17 = vrot.slane %v4031_v59, %v9995_v20  ;;  %v5621_v42 = vcombine.low %v8847_v15, %v8848_v39 }
 0x168   : > { %v11206_v8 = vpop.f32.mrb[35].mxu1  ;;  %v11222_v44 = vrot.slane %v4024_v27, %v9995_v20  ;;  %v11237_v30 = vpack.i.b16 %v11204_v53, %v4256_v18  ;;  %v11240_v27 = vrot.slane %v4032_v60, %v9995_v20  ;;  %v11243_v56 = vrot.slane %v4033_v6, %v9995_v20 }
 0x169   : > { %12335 = vst [vmem:[#allocation58_spill] sm:$0xff] %v11231_v17  ;;  %v11247_v63 = vcombine.high %v11231_v17, %v11231_v17  ;;  %v5622_v22 = vcombine.low %v8849_v50, %v8850_v45  ;;  %v5629_v11 = vrot.slane %v5619_v32, %v9995_v20  ;;  %v5636_v23 = vrot.slane %v8863_v46, %v9995_v20 }
 0x16a   : > { %12334 = vst [vmem:[#allocation57_spill] sm:$0xff] %v11222_v44  ;;  %12336 = vst [vmem:[#allocation59_spill] sm:$0xff] %v11237_v30  ;;  %v3907_v18 = vmul.f32 %v11115_v43, %v10647_v14  ;;  %v5643_v60 = vrot.slane %v5621_v42, %v9995_v20  ;;  %v12340_v6 = vcombine.low %v10986_v5, %v10989_v25 }
 0x16b   : > { %12337 = vst [vmem:[#allocation60_spill] sm:$0xff] %v11240_v27  ;;  %12338 = vst [vmem:[#allocation61_spill] sm:$0xff] %v11243_v56  ;;  %v12341_v59 = vcombine.low %v11043_v19, %v11061_v36  ;;  %v12342_v45 = vrot.slane %v10914_v47, %v9995_v20  ;;  %v12343_v39 = vrot.slane %v10951_v24, %v9995_v20 }
 0x16c   : > { %12339 = vst [vmem:[#allocation62_spill] sm:$0xff] %v11247_v63  ;;  %v5692_v30 = vrot.slane %v12340_v6, %v9995_v20  ;;  %v5650_v43 = vrot.slane %v5622_v22, %v9995_v20  ;;  %v5651_v32 = vcombine.low %v5629_v11, %v5636_v23  ;;  %v3917_v46 = vadd.f32 %v10652_v16, %v3907_v18 }
 0x16d   : > { %v5699_v15 = vrot.slane %v12341_v59, %v9995_v20  ;;  %v5700_v50 = vcombine.low %v12343_v39, %v12342_v45  ;;  %v3905_v5 = vmul.f32 %v10647_v14, %v11126_v4  ;;  %v3908_v19 = vmul.f32 %v11134_v58, %v10647_v14 }
 0x16e   : > { %v3906_v47 = vmul.f32 %v10647_v14, %v11141_v62  ;;  %v5652_v24 = vcombine.low %v5643_v60, %v5650_v43  ;;  %v5659_v36 = vrot.slane %v5651_v32, %v9995_v20  ;;  %v3927_v22 = vmax.f32 %v3917_v46, 0.0 }
 0x16f   : > { %v5701_v25 = vcombine.low %v5692_v30, %v5699_v15  ;;  %v11274_v42 = vrot.slane %v5700_v50, %v9995_v20  ;;  %v3915_v23 = vadd.f32 %v10652_v16, %v3905_v5  ;;  %v3918_v30 = vadd.f32 %v10652_v16, %v3908_v19 }
 0x170   : > { %v3916_v4 = vadd.f32 %v10652_v16, %v3906_v47  ;;  %v3026_v59 = vunpack.i.h.s16 %v11160_v12  ;;  %v11289_v58 = vrot.slane %v5652_v24, %v9995_v20  ;;  %v4003_v14 = vmul.f32 %v10640_v3, %v3927_v22 }
 0x171   : > { %12344 = vst [vmem:[#allocation63_spill] sm:$0xff] %v11274_v42  ;;  %v11283_v11 = vrot.slane %v5701_v25, %v9995_v20  ;;  %v3925_v62 = vmax.f32 %v3915_v23, 0.0  ;;  %v3030_v18 = vunpack.i.h.s16 %v11046_v55  ;;  %v3928_v6 = vmax.f32 %v3918_v30, 0.0 }
 0x172   : > { %12346 = vst [vmem:[#allocation65_spill] sm:$0xff] %v11289_v58  ;;  %v3926_v15 = vmax.f32 %v3916_v4, 0.0  ;;  %v8855_v45 = vpack.i.b16 %v11160_v12, %v11162_v57  ;;  %v5667_v16 = vcombine.low %v5659_v36, %v11289_v58  ;;  %v8856_v50 = vpack.i.b16 %v11009_v0, %v3026_v59  ;;  %v9791_v57 = vld [vmem:[%s12182_s3 + $0x8] sm:$0xff]  }
 0x173   : > { %12345 = vst [vmem:[#allocation64_spill] sm:$0xff] %v11283_v11  ;;  %v5716_v60 = vcombine.low %v11274_v42, %v11283_v11  ;;  %v4001_v39 = vmul.f32 %v10620_v7, %v3925_v62  ;;  %v12347_v43 = vunpack.i.h.s16 %v11009_v0  ;;  %v4004_v46 = vmul.f32 %v10587_v52, %v3928_v6 }
 0x174   : > { %v4002_v5 = vmul.f32 %v10585_v49, %v3926_v15  ;;  %v12348_v12 = vcombine.high %v11009_v0, %v11009_v0  ;;  %v8864_v25 = vcombine.high %v11012_v35, %v11031_v1  ;;  %9464 = vmatprep.mubr.bf16.mxu1 %v5667_v16  ;;  %v5718_v47 = vcombine.low %v11039_v13, %v11121_v9  ;;  %v11322_v49 = vld [vmem:[%s12184_s5] ss:$0 sm:$0xff] }
 0x175   : > { %v8857_v3 = vpack.i.b16 %v11046_v55, %v12347_v43  ;;  %v5719_v52 = vcombine.low %v8855_v45, %v8856_v50  ;;  %v3909_v24 = vmul.f32 %v11322_v49, %v11184_v37  ;;  %v2933_v0 = vcombine.high %v11046_v55, %v11046_v55  ;;  %9465 = vmatmul.mubr.bf16.vlgmr.msra.gmra.mrb[48].mxu1 %v5716_v60  ;;  %v9862_v9 = vld [vmem:[%s12182_s3] sm:$0xff]   ;;  %v9793_v60 = vld [vmem:[%s12182_s3 + $0x10] sm:$0xff]  }
 0x176   : > { %v11303_v32 = vpop.f32.mrb[36].mxu1  ;;  %v8858_v7 = vpack.i.b16 %v12348_v12, %v3030_v18  ;;  %v4010_v35 = vpack.c.bf16 %v4004_v46, %v4003_v14  ;;  %v8756_v1 = vpack.c.bf16 %v4004_v46, %v4004_v46  ;;  %v4009_v22 = vpack.c.bf16 %v4002_v5, %v4001_v39  ;;  %9473 = vmatpush3.bf16.msra.mxu1 %v9862_v9  ;;  %v11349_v45 = vld [vmem:[%s12185_s6] ss:$0 sm:$0xff] }
 0x177   : > { %v11315_v19 = vpop.f32.mrb[37].mxu1  ;;  %v8755_v23 = vpack.c.bf16 %v4002_v5, %v4002_v5  ;;  %v5727_v37 = vrot.slane %v8864_v25, %v9995_v20  ;;  %v5734_v4 = vrot.slane %v5718_v47, %v9995_v20  ;;  %v5741_v55 = vrot.slane %v5719_v52, %v9995_v20  ;;  %9474 = vmatprep.subr.bf16.mxu1 %v9791_v57 }
 0x178   : > { %v11328_v36 = vpop.f32.mrb[38].mxu1  ;;  %v5720_v30 = vcombine.low %v8857_v3, %v8858_v7  ;;  %v4171_v59 = vrot.slane %v4010_v35, %v9995_v20  ;;  %v4178_v14 = vrot.slane %v8756_v1, %v9995_v20  ;;  %v4122_v62 = vrot.slane %v4009_v22, %v9995_v20  ;;  %v9795_v1 = vld [vmem:[%s12182_s3 + $0x18] sm:$0xff]  }
 0x179   : > { %v11330_v13 = vpop.f32.mrb[39].mxu1  ;;  %v4129_v18 = vrot.slane %v8755_v23, %v9995_v20  ;;  %v5749_v15 = vcombine.low %v5727_v37, %v5734_v4  ;;  %v3919_v16 = vadd.f32 %v11349_v45, %v3909_v24  ;;  %v2982_v39 = vcombine.high %v11187_v21, %v11187_v21 }
 0x17a   : > { %v5748_v6 = vrot.slane %v5720_v30, %v9995_v20  ;;  %v4179_v50 = vcombine.high %v4171_v59, %v4171_v59  ;;  %v4180_v43 = vcombine.high %v4178_v14, %v4178_v14  ;;  %v11355_v3 = vrot.slane %v4171_v59, %v9995_v20  ;;  %9475 = vmatpush3.bf16.msra.mxu1 %v9791_v57 }
 0x17b   : > { %v11358_v46 = vrot.slane %v4178_v14, %v9995_v20  ;;  %v4130_v5 = vcombine.high %v4122_v62, %v4122_v62  ;;  %v4131_v12 = vcombine.high %v4129_v18, %v4129_v18  ;;  %v11361_v7 = vrot.slane %v4122_v62, %v9995_v20  ;;  %9476 = vmatprep.subr.bf16.mxu1 %v9793_v60 }
 0x17c   : > { %12349 = vst [vmem:[#allocation66_spill] sm:$0xff] %v11355_v3  ;;  %v11364_v25 = vrot.slane %v4129_v18, %v9995_v20  ;;  %v11367_v47 = vrot.slane %v4179_v50, %v9995_v20  ;;  %v11370_v52 = vrot.slane %v4180_v43, %v9995_v20  ;;  %v5750_v24 = vcombine.low %v5741_v55, %v5748_v6 }
 0x17d   : > { %v11373_v35 = vrot.slane %v5749_v15, %v9995_v20  ;;  %v11379_v22 = vrot.slane %v4130_v5, %v9995_v20  ;;  %v11382_v57 = vrot.slane %v4131_v12, %v9995_v20  ;;  %v4270_v23 = vunpack.i.h.s16 %v11361_v7 }
 0x17e   : > { %v3929_v9 = vmax.f32 %v3919_v16, 0.0  ;;  %v11386_v30 = vrot.slane %v5750_v24, %v9995_v20  ;;  %v3044_v4 = vunpack.i.h.s16 %v11187_v21  ;;  %v3046_v55 = vunpack.i.h.s16 %v11191_v31  ;;  %9477 = vmatpush3.bf16.msra.mxu1 %v9793_v60 }
 0x17f   : > { %12350 = vst [vmem:[#allocation67_spill] sm:$0xff] %v11373_v35  ;;  %12351 = vst [vmem:[#allocation68_spill] sm:$0xff] %v11382_v57  ;;  %v11393_v59 = vpack.i.b16 %v11379_v22, %v4270_v23  ;;  %v8859_v62 = vpack.i.b16 %v11165_v38, %v11170_v41  ;;  %v12353_v18 = vunpack.i.h.s16 %v11165_v38  ;;  %v5766_v60 = vcombine.low %v2933_v0, %v11026_v51  ;;  %v12355_v23 = vld [vmem:[#allocation24_spill] sm:$0xff] }
 0x180   : > { %12352 = vst [vmem:[#allocation69_spill] sm:$0xff] %v11386_v30  ;;  %v11396_v14 = vmul.f32 %v10591_v54, %v3929_v9  ;;  %v5765_v16 = vcombine.low %v11373_v35, %v11386_v30  ;;  %v8861_v50 = vpack.i.b16 %v11191_v31, %v3044_v4  ;;  %v8862_v43 = vpack.i.b16 %v2982_v39, %v3046_v55  ;;  %v9797_v54 = vld [vmem:[%s12182_s3 + $0x20] sm:$0xff]   ;;  %v12356_v4 = vld [vmem:[#allocation25_spill] sm:$0xff] }
 0x181   : > { %v8860_v6 = vpack.i.b16 %v11187_v21, %v12353_v18  ;;  %v11403_v15 = vpop.f32.mrb[40].mxu1  ;;  %9478 = vmatprep.subr.bf16.mxu1 %v9795_v1  ;;  %v12354_v38 = vcombine.high %v11026_v51, %v11026_v51  ;;  %v3910_v12 = vmul.f32 %v11322_v49, %v11206_v8  ;;  %v1708_v31 = vunpack.i.h.s16 %v10721_v29  ;;  %v12360_v35 = vld [vmem:[#allocation17_spill] sm:$0xff] }
 0x182   : > { %v11412_v41 = vpop.f32.mrb[41].mxu1  ;;  %9468 = vmatprep.mubr.bf16.mxu1 %v5765_v16  ;;  %v5769_v0 = vcombine.low %v8861_v50, %v8862_v43  ;;  %v5776_v24 = vrot.slane %v5766_v60, %v9995_v20  ;;  %v1710_v9 = vunpack.i.h.s16 %v12355_v23  ;;  %v1712_v55 = vunpack.i.h.s16 %v12356_v4  ;;  %9479 = vmatpush3.bf16.msra.mxu1 %v9795_v1  ;;  %v12359_v60 = vld [vmem:[#allocation10_spill] sm:$0xff] }
 0x183   : > { %v5767_v21 = vcombine.low %v11049_v26, %v12354_v38  ;;  %v5768_v5 = vcombine.low %v8859_v62, %v8860_v6  ;;  %v11421_v39 = vpop.f32.mrb[42].mxu1  ;;  %v3920_v8 = vadd.f32 %v11349_v45, %v3910_v12  ;;  %v12357_v62 = vld [vmem:[#allocation14_spill] sm:$0xff]  ;;  %v8874_v50 = vpack.i.b16 %v12355_v23, %v1708_v31  ;;  %9480 = vmatprep.subr.bf16.mxu1 %v9797_v54 }
 0x184   : > { %v11426_v18 = vpop.f32.mrb[43].mxu1  ;;  %v12358_v6 = vunpack.i.h.s16 %v12357_v62  ;;  %v5797_v16 = vrot.slane %v5769_v0, %v9995_v20  ;;  %v8875_v43 = vpack.i.b16 %v12356_v4, %v1710_v9  ;;  %v8876_v37 = vpack.i.b16 %v12359_v60, %v1712_v55  ;;  %v12361_v62 = vld [vmem:[#allocation16_spill] sm:$0xff]  ;;  %v12363_v4 = vld [vmem:[#allocation7_spill] sm:$0xff] }
 0x185   : > { %v5783_v51 = vrot.slane %v5767_v21, %v9995_v20  ;;  %v5790_v26 = vrot.slane %v5768_v5, %v9995_v20  ;;  %v9799_v21 = vld [vmem:[%s12182_s3 + $0x28] sm:$0xff]   ;;  %v3930_v12 = vmax.f32 %v3920_v8, 0.0  ;;  %v5964_v11 = vcombine.low %v12361_v62, %v12360_v35 }
 0x186   : > { %v8873_v38 = vpack.i.b16 %v10721_v29, %v12358_v6  ;;  %v8889_v29 = vcombine.high %v12361_v62, %v12360_v35  ;;  %v5967_v31 = vcombine.low %v8875_v43, %v8876_v37  ;;  %v5156_v23 = vmul.f32 %v11322_v49, %v11303_v32  ;;  %9481 = vmatpush3.bf16.msra.mxu1 %v9797_v54  ;;  %v9801_v32 = vld [vmem:[%s12182_s3 + $0x30] sm:$0xff]  }
 0x187   : > { %v5798_v5 = vcombine.low %v5776_v24, %v5783_v51  ;;  %v5799_v1 = vcombine.low %v5790_v26, %v5797_v16  ;;  %v4006_v55 = vmul.f32 %v12363_v4, %v3930_v12  ;;  %v5974_v24 = vrot.slane %v5964_v11, %v9995_v20  ;;  %9482 = vmatprep.subr.bf16.mxu1 %v9799_v21  ;;  %v9803_v4 = vld [vmem:[%s12182_s3 + $0x38] sm:$0xff]  }
 0x188   : > { %v5966_v0 = vcombine.low %v8873_v38, %v8874_v50  ;;  %v5981_v51 = vrot.slane %v8889_v29, %v9995_v20  ;;  %v5995_v37 = vrot.slane %v5967_v31, %v9995_v20  ;;  %v5166_v26 = vadd.f32 %v11349_v45, %v5156_v23  ;;  %v12366_v31 = vld [vmem:[#allocation3_spill] sm:$0xff] }
 0x189   : > { %v11448_v9 = vrot.slane %v5798_v5, %v9995_v20  ;;  %v11454_v8 = vrot.slane %v5799_v1, %v9995_v20  ;;  %v4011_v11 = vpack.c.bf16 %v4006_v55, %v11396_v14  ;;  %v5154_v54 = vmul.f32 %v11322_v49, %v11315_v19 }
 0x18a   : > { %v5988_v35 = vrot.slane %v5966_v0, %v9995_v20  ;;  %v5996_v38 = vcombine.low %v5974_v24, %v5981_v51  ;;  %v5157_v16 = vmul.f32 %v11322_v49, %v11328_v36  ;;  %v5176_v5 = vmax.f32 %v5166_v26, 0.0  ;;  %9483 = vmatpush3.bf16.msra.mxu1 %v9799_v21 }
 0x18b   : > { %12362 = vst [vmem:[#allocation24_spill] sm:$0xff] %v11448_v9  ;;  %12364 = vst [vmem:[#allocation25_spill] sm:$0xff] %v11454_v8  ;;  %v9446_v6 = vpop.f32.mrb[44].mxu1  ;;  %v5814_v43 = vcombine.low %v11448_v9, %v11454_v8  ;;  %v5155_v12 = vmul.f32 %v11322_v49, %v11330_v13  ;;  %v4219_v14 = vrot.slane %v4011_v11, %v9995_v20  ;;  %9484 = vmatprep.subr.bf16.mxu1 %v9801_v32 }
 0x18c   : > { %v11467_v50 = vpop.f32.mrb[45].mxu1  ;;  %v5997_v60 = vcombine.low %v5988_v35, %v5995_v37  ;;  %v6004_v29 = vrot.slane %v5996_v38, %v9995_v20  ;;  %v5164_v19 = vadd.f32 %v11349_v45, %v5154_v54  ;;  %v5167_v36 = vadd.f32 %v11349_v45, %v5157_v16  ;;  %v12368_v54 = vld [vmem:[#allocation15_spill] sm:$0xff] }
 0x18d   : > { %v9447_v62 = vpop.f32.mrb[46].mxu1  ;;  %9469 = vmatmul.mubr.bf16.gmra.mrb[52].mxu1 %v5814_v43  ;;  %v5252_v23 = vmul.f32 %v12366_v31, %v5176_v5  ;;  %v5165_v13 = vadd.f32 %v11349_v45, %v5155_v12  ;;  %v4248_v21 = vunpack.i.h.s16 %v11243_v56  ;;  %v4220_v55 = vcombine.high %v4219_v14, %v4219_v14  ;;  %v12369_v43 = vld [vmem:[#allocation8_spill] sm:$0xff] }
 0x18e   : > { %v11477_v1 = vpop.f32.mrb[47].mxu1  ;;  %v11480_v0 = vrot.slane %v5997_v60, %v9995_v20  ;;  %v11489_v24 = vrot.slane %v4219_v14, %v9995_v20  ;;  %v5174_v51 = vmax.f32 %v5164_v19, 0.0  ;;  %v5177_v35 = vmax.f32 %v5167_v36, 0.0  ;;  %9485 = vmatpush3.bf16.msra.mxu1 %v9801_v32  ;;  %v12371_v62 = vld [vmem:[#allocation2_spill] sm:$0xff] }
 0x18f   : > { %v5175_v26 = vmax.f32 %v5165_v13, 0.0  ;;  %v11494_v6 = vcombine.high %v11243_v56, %v11243_v56  ;;  %v4250_v11 = vunpack.i.h.s16 %v11247_v63  ;;  %v11498_v38 = vrot.slane %v4220_v55, %v9995_v20  ;;  %9486 = vmatprep.subr.bf16.mxu1 %v9803_v4 }
 0x190   : > { %12365 = vst [vmem:[#allocation14_spill] sm:$0xff] %v11480_v0  ;;  %v6012_v37 = vcombine.low %v6004_v29, %v11480_v0  ;;  %v5250_v16 = vmul.f32 %v12368_v54, %v5174_v51  ;;  %v5253_v60 = vmul.f32 %v12369_v43, %v5177_v35  ;;  %v12370_v5 = vunpack.i.h.s16 %v11231_v17 }
 0x191   : > { %12367 = vst [vmem:[#allocation10_spill] sm:$0xff] %v11494_v6  ;;  %v5251_v14 = vmul.f32 %v12371_v62, %v5175_v26  ;;  %v4252_v29 = vunpack.i.h.s16 %v11494_v6  ;;  %v8958_v19 = vpack.i.b16 %v11247_v63, %v4248_v21  ;;  %v8959_v36 = vpack.i.b16 %v11494_v6, %v4250_v11  ;;  %v12383_v6 = vld [vmem:[#allocation13_spill] sm:$0xff] }
 0x192   : > { %v8957_v12 = vpack.i.b16 %v11243_v56, %v12370_v5  ;;  %9488 = vmatprep.mubr.bf16.mxu1 %v6012_v37  ;;  %v5261_v31 = vpack.c.bf16 %v5253_v60, %v5252_v23  ;;  %v8828_v32 = vpack.c.bf16 %v5253_v60, %v5253_v60  ;;  %v6696_v13 = vcombine.low %v11222_v44, %v11240_v27  ;;  %v12385_v56 = vld [vmem:[#allocation40_spill] sm:$0xff] }
 0x193   : > { %v8973_v55 = vcombine.high %v11222_v44, %v11240_v27  ;;  %v5260_v51 = vpack.c.bf16 %v5251_v14, %v5250_v16  ;;  %v8827_v35 = vpack.c.bf16 %v5251_v14, %v5251_v14  ;;  %v8960_v37 = vpack.i.b16 %v11179_v48, %v4252_v29  ;;  %9487 = vmatpush3.bf16.msra.mxu1 %v9803_v4  ;;  %v12392_v44 = vld [vmem:[#allocation39_spill] sm:$0xff] }
 0x194   : > { %v6698_v26 = vcombine.low %v8957_v12, %v8958_v19  ;;  %v5326_v54 = vrot.slane %v5261_v31, %v9995_v20  ;;  %v5333_v43 = vrot.slane %v8828_v32, %v9995_v20  ;;  %v6706_v21 = vrot.slane %v6696_v13, %v9995_v20 }
 0x195   : > { %v6713_v23 = vrot.slane %v8973_v55, %v9995_v20  ;;  %v5277_v11 = vrot.slane %v5260_v51, %v9995_v20  ;;  %v5284_v60 = vrot.slane %v8827_v35, %v9995_v20  ;;  %v6699_v5 = vcombine.low %v8959_v36, %v8960_v37 }
 0x196   : > { %v6720_v16 = vrot.slane %v6698_v26, %v9995_v20  ;;  %v5334_v62 = vcombine.high %v5326_v54, %v5326_v54  ;;  %v5335_v14 = vcombine.high %v5333_v43, %v5333_v43  ;;  %v11522_v12 = vrot.slane %v5326_v54, %v9995_v20 }
 0x197   : > { %v5349_v29 = vrot.slane %v5333_v43, %v9995_v20  ;;  %v5285_v19 = vcombine.high %v5277_v11, %v5277_v11  ;;  %v5286_v4 = vcombine.high %v5284_v60, %v5284_v60  ;;  %v11526_v31 = vrot.slane %v5277_v11, %v9995_v20 }
 0x198   : > { %v11529_v32 = vrot.slane %v5284_v60, %v9995_v20  ;;  %v5356_v13 = vrot.slane %v5334_v62, %v9995_v20  ;;  %v5363_v36 = vrot.slane %v5335_v14, %v9995_v20  ;;  %v5364_v55 = vcombine.high %v11522_v12, %v11522_v12 }
 0x199   : > { %v5365_v51 = vcombine.high %v5349_v29, %v5349_v29  ;;  %v11536_v35 = vrot.slane %v5285_v19, %v9995_v20  ;;  %v11539_v37 = vrot.slane %v5286_v4, %v9995_v20  ;;  %v6727_v19 = vrot.slane %v6699_v5, %v9995_v20  ;;  %v12375_v5 = vld [vmem:[#allocation18_spill] sm:$0xff] }
 0x19a   : > { %v11543_v26 = vcombine.high %v11529_v32, %v11529_v32  ;;  %v5366_v43 = vcombine.high %v5356_v13, %v5356_v13  ;;  %v11546_v11 = vcombine.high %v5363_v36, %v5363_v36  ;;  %v5514_v60 = vunpack.i.h.s16 %v5363_v36  ;;  %v12381_v36 = vld [vmem:[#allocation22_spill] sm:$0xff] }
 0x19b   : > { %v5516_v62 = vunpack.i.h.s16 %v5365_v51  ;;  %v11548_v14 = vcombine.low %v5356_v13, %v5364_v55  ;;  %v6728_v30 = vcombine.low %v6706_v21, %v6713_v23  ;;  %v6729_v42 = vcombine.low %v6720_v16, %v6727_v19  ;;  %v12374_v55 = vld [vmem:[#allocation19_spill] sm:$0xff]  ;;  %v12382_v21 = vld [vmem:[#allocation12_spill] sm:$0xff] }
 0x19c   : > { %v11553_v9 = vpack.i.b16 %v5365_v51, %v5514_v60  ;;  %v11558_v54 = vcombine.low %v5366_v43, %v5349_v29  ;;  %v1726_v8 = vunpack.i.h.s16 %v12374_v55  ;;  %v12376_v51 = vunpack.i.h.s16 %v12375_v5  ;;  %v12377_v29 = vld [vmem:[#allocation21_spill] sm:$0xff]  ;;  %v12380_v19 = vld [vmem:[#allocation11_spill] sm:$0xff] }
 0x19d   : > { %12372 = vst [vmem:[#allocation17_spill] sm:$0xff] %v11548_v14  ;;  %v11556_v58 = vpack.i.b16 %v11546_v11, %v5516_v62  ;;  %v6736_v13 = vrot.slane %v6728_v30, %v9995_v20  ;;  %v12378_v43 = vunpack.i.h.s16 %v12377_v29  ;;  %v12379_v62 = vld [vmem:[#allocation28_spill] sm:$0xff]  ;;  %v6743_v16 = vrot.slane %v6729_v42, %v9995_v20 }
 0x19e   : > { %12373 = vst [vmem:[#allocation16_spill] sm:$0xff] %v11558_v54  ;;  %v8877_v60 = vpack.i.b16 %v12374_v55, %v12376_v51  ;;  %v8878_v30 = vpack.i.b16 %v12377_v29, %v1726_v8  ;;  %v6014_v0 = vcombine.low %v12381_v36, %v12380_v19  ;;  %v12384_v48 = vcombine.low %v12382_v21, %v12383_v6  ;;  %v12386_v51 = vld [vmem:[#allocation45_spill] sm:$0xff]  ;;  %v12388_v29 = vld [vmem:[#allocation26_spill] sm:$0xff] }
 0x19f   : > { %v8879_v4 = vpack.i.b16 %v12379_v62, %v12378_v43  ;;  %v5160_v55 = vmul.f32 %v11322_v49, %v11403_v15  ;;  %v1742_v63 = vunpack.i.h.s16 %v12386_v51  ;;  %v12387_v43 = vld [vmem:[#allocation46_spill] sm:$0xff]  ;;  %v6744_v42 = vcombine.low %v6736_v13, %v6743_v16 }
 0x1a0   : > { %v6023_v23 = vrot.slane %v12384_v48, %v9995_v20  ;;  %v1744_v17 = vunpack.i.h.s16 %v12387_v43  ;;  %v6015_v27 = vcombine.low %v8877_v60, %v8878_v30  ;;  %v6030_v8 = vrot.slane %v6014_v0, %v9995_v20  ;;  %v12389_v48 = vld [vmem:[#allocation29_spill] sm:$0xff]  ;;  %v12390_v0 = vld [vmem:[#allocation47_spill] sm:$0xff]  ;;  %v12391_v30 = vld [vmem:[#allocation36_spill] sm:$0xff] }
 0x1a1   : > { %v6016_v5 = vcombine.low %v8879_v4, %v12385_v56  ;;  %v1746_v36 = vunpack.i.h.s16 %v12388_v29  ;;  %v5170_v6 = vadd.f32 %v11349_v45, %v5160_v55  ;;  %v1748_v21 = vunpack.i.h.s16 %v12389_v48  ;;  %9536 = vmatprep.mubr.bf16.mxu0 %v6744_v42  ;;  %v12393_v55 = vld [vmem:[#allocation31_spill] sm:$0xff] }
 0x1a2   : > { %v8881_v56 = vpack.i.b16 %v12387_v43, %v1742_v63  ;;  %v6037_v15 = vrot.slane %v6015_v27, %v9995_v20  ;;  %v6045_v4 = vcombine.low %v6023_v23, %v6030_v8  ;;  %v8882_v51 = vpack.i.b16 %v12388_v29, %v1744_v17  ;;  %v12395_v23 = vld [vmem:[#allocation20_spill] sm:$0xff] }
 0x1a3   : > { %v6044_v19 = vrot.slane %v6016_v5, %v9995_v20  ;;  %v8883_v13 = vpack.i.b16 %v12389_v48, %v1746_v36  ;;  %v5180_v60 = vmax.f32 %v5170_v6, 0.0  ;;  %v8884_v16 = vpack.i.b16 %v12390_v0, %v1748_v21 }
 0x1a4   : > { %v8890_v5 = vcombine.high %v12379_v62, %v12391_v30  ;;  %v6063_v14 = vcombine.low %v12393_v55, %v12392_v44  ;;  %v11602_v63 = vrot.slane %v6045_v4, %v9995_v20  ;;  %v6064_v43 = vcombine.low %v8881_v56, %v8882_v51 }
 0x1a5   : > { %v6046_v54 = vcombine.low %v6037_v15, %v6044_v19  ;;  %v4266_v27 = vunpack.i.h.s16 %v11214_v40  ;;  %v11606_v17 = vmul.f32 %v12395_v23, %v5180_v60  ;;  %v6065_v42 = vcombine.low %v8883_v13, %v8884_v16 }
 0x1a6   : > { %12394 = vst [vmem:[#allocation7_spill] sm:$0xff] %v11602_v63  ;;  %v6072_v8 = vrot.slane %v8890_v5, %v9995_v20  ;;  %v6079_v29 = vrot.slane %v6063_v14, %v9995_v20  ;;  %v6086_v44 = vrot.slane %v6064_v43, %v9995_v20  ;;  %v12397_v36 = vunpack.i.h.s16 %v11200_v33  ;;  %v12410_v43 = vld [vmem:[#allocation42_spill] sm:$0xff] }
 0x1a7   : > { %v11611_v62 = vrot.slane %v6046_v54, %v9995_v20  ;;  %v8962_v6 = vpack.i.b16 %v11218_v61, %v4266_v27  ;;  %v6093_v48 = vrot.slane %v6065_v42, %v9995_v20  ;;  %v12398_v56 = vunpack.i.h.s16 %v11218_v61 }
 0x1a8   : > { %v8961_v19 = vpack.i.b16 %v11214_v40, %v12397_v36  ;;  %v6094_v21 = vcombine.low %v6072_v8, %v6079_v29  ;;  %v6746_v14 = vcombine.low %v11226_v34, %v11182_v10  ;;  %v12399_v40 = vcombine.low %v11197_v28, %v11204_v53 }
 0x1a9   : > { %12396 = vst [vmem:[#allocation3_spill] sm:$0xff] %v11611_v62  ;;  %v8963_v15 = vpack.i.b16 %v11361_v7, %v12398_v56  ;;  %v6061_v54 = vcombine.low %v11602_v63, %v11611_v62  ;;  %v5158_v13 = vmul.f32 %v11322_v49, %v11412_v41  ;;  %v6095_v60 = vcombine.low %v6086_v44, %v6093_v48 }
 0x1aa   : > { %v6747_v4 = vcombine.low %v8961_v19, %v8962_v6  ;;  %v6755_v51 = vrot.slane %v12399_v40, %v9995_v20  ;;  %v11633_v61 = vrot.slane %v6094_v21, %v9995_v20  ;;  %v6762_v16 = vrot.slane %v6746_v14, %v9995_v20  ;;  %v12404_v19 = vld [vmem:[#allocation9_spill] sm:$0xff] }
 0x1ab   : > { %v6748_v0 = vcombine.low %v8963_v15, %v11393_v59  ;;  %9489 = vmatmul.mubr.bf16.vlgmr.msra.gmra.mrb[48].mxu1 %v6061_v54  ;;  %v5168_v5 = vadd.f32 %v11349_v45, %v5158_v13  ;;  %v5161_v28 = vmul.f32 %v11322_v49, %v11421_v39  ;;  %v5159_v55 = vmul.f32 %v11322_v49, %v11426_v18  ;;  %v12406_v40 = vld [vmem:[#allocation5_spill] sm:$0xff]  ;;  %v12407_v13 = vld [vmem:[#allocation4_spill] sm:$0xff] }
 0x1ac   : > { %12400 = vst [vmem:[#allocation15_spill] sm:$0xff] %v11633_v61  ;;  %v6769_v30 = vrot.slane %v6747_v4, %v9995_v20  ;;  %v11644_v41 = vrot.slane %v6095_v60, %v9995_v20  ;;  %v6777_v27 = vcombine.low %v6755_v51, %v6762_v16  ;;  %v11653_v39 = vcombine.high %v11364_v25, %v11364_v25 }
 0x1ad   : > { %v6776_v59 = vrot.slane %v6748_v0, %v9995_v20  ;;  %v5178_v23 = vmax.f32 %v5168_v5, 0.0  ;;  %v5171_v42 = vadd.f32 %v11349_v45, %v5161_v28  ;;  %v5169_v8 = vadd.f32 %v11349_v45, %v5159_v55  ;;  %v9806_v5 = vld [vmem:[%s12182_s3 + $0x108] sm:$0xff]  }
 0x1ae   : > { %12401 = vst [vmem:[#allocation8_spill] sm:$0xff] %v11644_v41  ;;  %12402 = vst [vmem:[#allocation2_spill] sm:$0xff] %v11653_v39  ;;  %v6110_v18 = vcombine.low %v11633_v61, %v11644_v41  ;;  %v6785_v44 = vrot.slane %v6777_v27, %v9995_v20  ;;  %v11660_v36 = vcombine.high %v11382_v57, %v11382_v57  ;;  %v4282_v14 = vunpack.i.h.s16 %v11653_v39 }
 0x1af   : > { %v6778_v29 = vcombine.low %v6769_v30, %v6776_v59  ;;  %v5254_v6 = vmul.f32 %v12404_v19, %v5178_v23  ;;  %v5181_v48 = vmax.f32 %v5171_v42, 0.0  ;;  %v5179_v21 = vmax.f32 %v5169_v8, 0.0 }
 0x1b0   : > { %12403 = vst [vmem:[#allocation19_spill] sm:$0xff] %v11660_v36  ;;  %v11665_v56 = vcombine.high %v11355_v3, %v11355_v3  ;;  %9492 = vmatprep.mubr.bf16.mxu1 %v6110_v18  ;;  %v4284_v54 = vunpack.i.h.s16 %v11660_v36  ;;  %v4286_v4 = vunpack.i.h.s16 %v11355_v3  ;;  %v4288_v0 = vunpack.i.h.s16 %v11367_v47 }
 0x1b1   : > { %v6792_v15 = vrot.slane %v6778_v29, %v9995_v20  ;;  %v5257_v51 = vmul.f32 %v12406_v40, %v5181_v48  ;;  %v5255_v60 = vmul.f32 %v12407_v13, %v5179_v21  ;;  %v8974_v16 = vcombine.high %v11361_v7, %v11379_v22 }
 0x1b2   : > { %12405 = vst [vmem:[#allocation18_spill] sm:$0xff] %v11665_v56  ;;  %v8965_v28 = vpack.i.b16 %v11660_v36, %v4282_v14  ;;  %v8966_v55 = vpack.i.b16 %v11355_v3, %v4284_v54  ;;  %v8967_v59 = vpack.i.b16 %v11367_v47, %v4286_v4  ;;  %v8968_v18 = vpack.i.b16 %v11665_v56, %v4288_v0  ;;  %v12408_v4 = vld [vmem:[#allocation41_spill] sm:$0xff]  ;;  %v12415_v36 = vld [vmem:[#allocation30_spill] sm:$0xff] }
 0x1b3   : > { %v6793_v30 = vcombine.low %v6785_v44, %v6792_v15  ;;  %v5263_v27 = vpack.c.bf16 %v5257_v51, %v11606_v17  ;;  %v8830_v23 = vpack.c.bf16 %v5257_v51, %v5257_v51  ;;  %v5262_v42 = vpack.c.bf16 %v5255_v60, %v5254_v6  ;;  %v12414_v56 = vld [vmem:[#allocation49_spill] sm:$0xff] }
 0x1b4   : > { %v8829_v8 = vpack.c.bf16 %v5255_v60, %v5255_v60  ;;  %v6795_v29 = vcombine.low %v11364_v25, %v11382_v57  ;;  %v6796_v44 = vcombine.low %v8965_v28, %v8966_v55  ;;  %v6804_v19 = vrot.slane %v8974_v16, %v9995_v20 }
 0x1b5   : > { %9537 = vmatmul.mubr.bf16.vlgmr.msra.gmra.mrb[0].mxu0 %v6793_v30  ;;  %v5424_v48 = vrot.slane %v5263_v27, %v9995_v20  ;;  %v5431_v21 = vrot.slane %v8830_v23, %v9995_v20  ;;  %v5375_v17 = vrot.slane %v5262_v42, %v9995_v20  ;;  %v6797_v15 = vcombine.low %v8967_v59, %v8968_v18 }
 0x1b6   : > { %9545 = vmatpush3.bf16.msra.mxu0 %v11146_v2  ;;  %v5382_v6 = vrot.slane %v8829_v8, %v9995_v20  ;;  %v6811_v14 = vrot.slane %v6795_v29, %v9995_v20  ;;  %v6818_v54 = vrot.slane %v6796_v44, %v9995_v20  ;;  %v1679_v40 = vcombine.high %v12408_v4, %v12408_v4  ;;  %v9807_v2 = vld [vmem:[%s12182_s3 + $0x110] sm:$0xff]  }
 0x1b7   : > { %9546 = vmatprep.subr.bf16.mxu0 %v9806_v5  ;;  %v5432_v51 = vcombine.high %v5424_v48, %v5424_v48  ;;  %v5433_v13 = vcombine.high %v5431_v21, %v5431_v21  ;;  %v11700_v60 = vrot.slane %v5424_v48, %v9995_v20  ;;  %v11703_v0 = vrot.slane %v5431_v21, %v9995_v20  ;;  %v9808_v48 = vld [vmem:[%s12182_s3 + $0x118] sm:$0xff]  }
 0x1b8   : > { %v5383_v16 = vcombine.high %v5375_v17, %v5375_v17  ;;  %v5384_v30 = vcombine.high %v5382_v6, %v5382_v6  ;;  %v11706_v28 = vrot.slane %v5375_v17, %v9995_v20  ;;  %v11709_v55 = vrot.slane %v5382_v6, %v9995_v20 }
 0x1b9   : > { %v11712_v59 = vrot.slane %v5432_v51, %v9995_v20  ;;  %v11715_v27 = vrot.slane %v5433_v13, %v9995_v20  ;;  %v12409_v17 = vunpack.i.h.s16 %v11546_v11  ;;  %v6825_v51 = vrot.slane %v6797_v15, %v9995_v20 }
 0x1ba   : > { %9547 = vmatpush3.bf16.msra.mxu0 %v9806_v5  ;;  %v11723_v18 = vrot.slane %v5383_v16, %v9995_v20  ;;  %v11726_v29 = vrot.slane %v5384_v30, %v9995_v20  ;;  %v5414_v44 = vcombine.high %v11709_v55, %v11709_v55  ;;  %v5520_v5 = vunpack.i.h.s16 %v11706_v28 }
 0x1bb   : > { %9548 = vmatprep.subr.bf16.mxu0 %v9807_v2  ;;  %v5465_v21 = vcombine.high %v11715_v27, %v11715_v27  ;;  %v11739_v6 = vpack.i.b16 %v11706_v28, %v12409_v17  ;;  %v6826_v30 = vcombine.low %v6804_v19, %v6811_v14  ;;  %v1681_v42 = vcombine.high %v12410_v43, %v12410_v43  ;;  %v12411_v17 = vld [vmem:[#allocation50_spill] sm:$0xff] }
 0x1bc   : > { %v11744_v13 = vcombine.high %v11726_v29, %v11726_v29  ;;  %v11746_v16 = vunpack.i.h.s16 %v5414_v44  ;;  %v11753_v8 = vpack.i.b16 %v11723_v18, %v5520_v5  ;;  %v6827_v11 = vcombine.low %v6818_v54, %v6825_v51  ;;  %v9809_v19 = vld [vmem:[%s12182_s3 + $0x120] sm:$0xff]   ;;  %v12413_v5 = vld [vmem:[#allocation48_spill] sm:$0xff] }
 0x1bd   : > { %v11750_v23 = vunpack.i.h.s16 %v5465_v21  ;;  %v1760_v61 = vunpack.i.h.s16 %v12411_v17  ;;  %v6834_v15 = vrot.slane %v6826_v30, %v9995_v20  ;;  %v1762_v62 = vunpack.i.h.s16 %v12408_v4 }
 0x1be   : > { %9549 = vmatpush3.bf16.msra.mxu0 %v9807_v2  ;;  %v1764_v44 = vunpack.i.h.s16 %v12410_v43  ;;  %v1766_v41 = vunpack.i.h.s16 %v1679_v40  ;;  %v6841_v54 = vrot.slane %v6827_v11, %v9995_v20  ;;  %v12412_v2 = vld [vmem:[#allocation27_spill] sm:$0xff]  ;;  %v6112_v3 = vcombine.low %v12415_v36, %v12414_v56 }
 0x1bf   : > { %9550 = vmatprep.subr.bf16.mxu0 %v9808_v48  ;;  %v8885_v21 = vpack.i.b16 %v12408_v4, %v1760_v61  ;;  %v6111_v51 = vcombine.low %v12413_v5, %v12412_v2  ;;  %v8886_v30 = vpack.i.b16 %v12410_v43, %v1762_v62  ;;  %v5162_v14 = vmul.f32 %v11322_v49, %v11467_v50  ;;  %v9810_v43 = vld [vmem:[%s12182_s3 + $0x128] sm:$0xff]  }
 0x1c0   : > { %v8887_v17 = vpack.i.b16 %v1679_v40, %v1764_v44  ;;  %v8888_v63 = vpack.i.b16 %v1681_v42, %v1766_v41  ;;  %v6842_v39 = vcombine.low %v6834_v15, %v6841_v54  ;;  %v11776_v11 = vcombine.high %v11358_v46, %v11358_v46 }
 0x1c1   : > { %v6121_v57 = vrot.slane %v6111_v51, %v9995_v20  ;;  %v6113_v61 = vcombine.low %v8885_v21, %v8886_v30  ;;  %v6128_v62 = vrot.slane %v6112_v3, %v9995_v20  ;;  %v11781_v41 = vcombine.high %v11367_v47, %v11367_v47  ;;  %v12416_v51 = vld [vmem:[#allocation6_spill] sm:$0xff] }
 0x1c2   : > { %9551 = vmatpush3.bf16.msra.mxu0 %v9808_v48  ;;  %v6114_v4 = vcombine.low %v8887_v17, %v8888_v63  ;;  %9540 = vmatprep.mubr.bf16.mxu0 %v6842_v39  ;;  %v5172_v50 = vadd.f32 %v11349_v45, %v5162_v14  ;;  %v11789_v36 = vcombine.high %v11370_v52, %v11370_v52  ;;  %v4302_v48 = vunpack.i.h.s16 %v11489_v24 }
 0x1c3   : > { %9552 = vmatprep.subr.bf16.mxu0 %v9809_v19  ;;  %v4235_v63 = vcombine.high %v11489_v24, %v11489_v24  ;;  %v4236_v3 = vcombine.high %v11498_v38, %v11498_v38  ;;  %v6135_v56 = vrot.slane %v6113_v61, %v9995_v20  ;;  %v6143_v42 = vcombine.low %v6121_v57, %v6128_v62  ;;  %v9811_v57 = vld [vmem:[%s12182_s3 + $0x130] sm:$0xff]  }
 0x1c4   : > { %v6142_v40 = vrot.slane %v6114_v4, %v9995_v20  ;;  %v5182_v39 = vmax.f32 %v5172_v50, 0.0  ;;  %v4300_v15 = vunpack.i.h.s16 %v11789_v36  ;;  %v4304_v44 = vunpack.i.h.s16 %v11498_v38 }
 0x1c5   : > { %v4306_v14 = vunpack.i.h.s16 %v4235_v63  ;;  %v11801_v21 = vrot.slane %v6143_v42, %v9995_v20  ;;  %v8970_v2 = vpack.i.b16 %v11498_v38, %v4302_v48  ;;  %v6843_v5 = vcombine.low %v11781_v41, %v11358_v46 }
 0x1c6   : > { %9553 = vmatpush3.bf16.msra.mxu0 %v9809_v19  ;;  %v6144_v54 = vcombine.low %v6135_v56, %v6142_v40  ;;  %v5258_v30 = vmul.f32 %v12416_v51, %v5182_v39  ;;  %v8969_v17 = vpack.i.b16 %v11489_v24, %v4300_v15  ;;  %v8971_v61 = vpack.i.b16 %v4235_v63, %v4304_v44 }
 0x1c7   : > { %9554 = vmatprep.subr.bf16.mxu0 %v9810_v43  ;;  %v8972_v19 = vpack.i.b16 %v4236_v3, %v4306_v14  ;;  %v6844_v62 = vcombine.low %v11370_v52, %v11776_v11  ;;  %v6853_v50 = vrot.slane %v6843_v5, %v9995_v20  ;;  %v5163_v56 = vmul.f32 %v11322_v49, %v11477_v1  ;;  %v9812_v49 = vld [vmem:[%s12182_s3 + $0x138] sm:$0xff]  }
 0x1c8   : > { %v11812_v4 = vrot.slane %v6144_v54, %v9995_v20  ;;  %v6845_v40 = vcombine.low %v8969_v17, %v8970_v2  ;;  %v5318_v48 = vcombine.high %v11539_v37, %v11539_v37  ;;  %v5500_v63 = vunpack.i.h.s16 %v11539_v37 }
 0x1c9   : > { %v6846_v42 = vcombine.low %v8971_v61, %v8972_v19  ;;  %v6860_v39 = vrot.slane %v6844_v62, %v9995_v20  ;;  %v5173_v15 = vadd.f32 %v11349_v45, %v5163_v56  ;;  %v12417_v1 = vunpack.i.h.s16 %v11529_v32 }
 0x1ca   : > { %9555 = vmatpush3.bf16.msra.mxu0 %v9810_v43  ;;  %v6159_v3 = vcombine.low %v11801_v21, %v11812_v4  ;;  %v6867_v44 = vrot.slane %v6845_v40, %v9995_v20  ;;  %v5504_v54 = vunpack.i.h.s16 %v5318_v48  ;;  %v9000_v2 = vpack.i.b16 %v11543_v26, %v5500_v63  ;;  %v12419_v40 = vld [vmem:[#allocation23_spill] sm:$0xff] }
 0x1cb   : > { %9556 = vmatprep.subr.bf16.mxu0 %v9811_v57  ;;  %v8999_v43 = vpack.i.b16 %v11539_v37, %v12417_v1  ;;  %v6874_v14 = vrot.slane %v6846_v42, %v9995_v20  ;;  %v6875_v5 = vcombine.low %v6853_v50, %v6860_v39  ;;  %v5183_v51 = vmax.f32 %v5173_v15, 0.0  ;;  %v12422_v1 = vld [vmem:[#allocation16_spill] sm:$0xff] }
 0x1cc   : > { %9493 = vmatmul.mubr.bf16.gmra.mrb[52].mxu1 %v6159_v3  ;;  %v12418_v45 = vunpack.i.h.s16 %v11543_v26  ;;  %v7066_v61 = vcombine.low %v11526_v31, %v11536_v35  ;;  %v9002_v32 = vpack.i.b16 %v11522_v12, %v5504_v54  ;;  %v9015_v37 = vcombine.high %v11526_v31, %v11536_v35  ;;  %v9813_v26 = vld [vmem:[%s12182_s3 + $0x140] sm:$0xff]  }
 0x1cd   : > { %v6876_v19 = vcombine.low %v6867_v44, %v6874_v14  ;;  %v7068_v62 = vcombine.low %v8999_v43, %v9000_v2  ;;  %v6883_v56 = vrot.slane %v6875_v5, %v9995_v20  ;;  %v5259_v42 = vmul.f32 %v12419_v40, %v5183_v51  ;;  %v12424_v44 = vld [vmem:[#allocation17_spill] sm:$0xff] }
 0x1ce   : > { %v9001_v17 = vpack.i.b16 %v5318_v48, %v12418_v45  ;;  %9557 = vmatpush3.bf16.msra.mxu0 %v9811_v57  ;;  %v7076_v50 = vrot.slane %v7066_v61, %v9995_v20  ;;  %v12420_v57 = vcombine.low %v11553_v9, %v11556_v58  ;;  %v7083_v35 = vrot.slane %v9015_v37, %v9995_v20 }
 0x1cf   : > { %9558 = vmatprep.subr.bf16.mxu0 %v9812_v49  ;;  %v6890_v48 = vrot.slane %v6876_v19, %v9995_v20  ;;  %v7090_v63 = vrot.slane %v7068_v62, %v9995_v20  ;;  %v5264_v3 = vpack.c.bf16 %v5259_v42, %v5258_v30  ;;  %v12421_v39 = vcombine.low %v11739_v6, %v11753_v8 }
 0x1d0   : > { %v7139_v12 = vrot.slane %v12420_v57, %v9995_v20  ;;  %v7069_v31 = vcombine.low %v9001_v17, %v9002_v32  ;;  %v12423_v43 = vrot.slane %v12422_v1, %v9995_v20  ;;  %v12425_v58 = vrot.slane %v12424_v44, %v9995_v20 }
 0x1d1   : > { %v7146_v15 = vrot.slane %v12421_v39, %v9995_v20  ;;  %v5532_v14 = vunpack.i.h.s16 %v11744_v13  ;;  %v6891_v54 = vcombine.low %v6883_v56, %v6890_v48  ;;  %v7098_v5 = vcombine.low %v7076_v50, %v7083_v35 }
 0x1d2   : > { %v7147_v9 = vcombine.low %v12425_v58, %v12423_v43  ;;  %9559 = vmatpush3.bf16.msra.mxu0 %v9812_v49  ;;  %v7097_v2 = vrot.slane %v7069_v31, %v9995_v20  ;;  %v5536_v30 = vunpack.i.h.s16 %v11712_v59  ;;  %v5472_v51 = vrot.slane %v5264_v3, %v9995_v20 }
 0x1d3   : > { %9568 = vmatprep.subr.bf16.mxu0 %v9813_v26  ;;  %v7148_v8 = vcombine.low %v7139_v12, %v7146_v15  ;;  %v9007_v45 = vpack.i.b16 %v11744_v13, %v11746_v16  ;;  %9541 = vmatmul.mubr.bf16.gmra.mrb[4].mxu0 %v6891_v54  ;;  %v7106_v61 = vrot.slane %v7098_v5, %v9995_v20  ;;  %v12426_v19 = vunpack.i.h.s16 %v11700_v60 }
 0x1d4   : > { %v7155_v6 = vrot.slane %v7147_v9, %v9995_v20  ;;  %v7099_v17 = vcombine.low %v7090_v63, %v7097_v2  ;;  %v9008_v49 = vpack.i.b16 %v11700_v60, %v5532_v14  ;;  %v5473_v37 = vcombine.high %v5472_v51, %v5472_v51 }
 0x1d5   : > { %v9009_v32 = vpack.i.b16 %v11712_v59, %v12426_v19  ;;  %v5480_v62 = vrot.slane %v5472_v51, %v9995_v20  ;;  %v7162_v56 = vrot.slane %v7148_v8, %v9995_v20  ;;  %v12427_v40 = vcombine.high %v11700_v60, %v11700_v60  ;;  %v12429_v8 = vld [vmem:[#allocation57_spill] sm:$0xff] }
 0x1d6   : > { %v7113_v13 = vrot.slane %v7099_v17, %v9995_v20  ;;  %v9016_v16 = vcombine.high %v11706_v28, %v11723_v18  ;;  %v7165_v50 = vcombine.low %v11709_v55, %v11726_v29  ;;  %v7166_v57 = vcombine.low %v9007_v45, %v9008_v49  ;;  %v9814_v55 = vld [vmem:[%s12182_s3 + $0x148] sm:$0xff]  }
 0x1d7   : > { %v9010_v42 = vpack.i.b16 %v12427_v40, %v5536_v30  ;;  %v5487_v12 = vrot.slane %v5473_v37, %v9995_v20  ;;  %v5488_v48 = vcombine.high %v5480_v62, %v5480_v62  ;;  %v5548_v31 = vunpack.i.h.s16 %v5480_v62 }
 0x1d8   : > { %v7163_v35 = vcombine.low %v7155_v6, %v7162_v56  ;;  %v7114_v63 = vcombine.low %v7106_v61, %v7113_v13  ;;  %v7174_v39 = vrot.slane %v9016_v16, %v9995_v20  ;;  %v7181_v60 = vrot.slane %v7165_v50, %v9995_v20  ;;  %v12430_v61 = vld [vmem:[#allocation60_spill] sm:$0xff] }
 0x1d9   : > { %v7167_v3 = vcombine.low %v9009_v32, %v9010_v42  ;;  %v7188_v15 = vrot.slane %v7166_v57, %v9995_v20  ;;  %v5464_v28 = vcombine.high %v11712_v59, %v11712_v59  ;;  %v5489_v18 = vcombine.high %v5487_v12, %v5487_v12 }
 0x1da   : > { %v5550_v1 = vunpack.i.h.s16 %v5487_v12  ;;  %9560 = vmatprep.mubr.bf16.mxu0 %v7114_v63  ;;  %v7196_v43 = vcombine.low %v7174_v39, %v7181_v60  ;;  %v5552_v44 = vunpack.i.h.s16 %v5488_v48  ;;  %v9011_v58 = vpack.i.b16 %v5480_v62, %v11750_v23  ;;  %v12433_v63 = vld [vmem:[#allocation61_spill] sm:$0xff] }
 0x1db   : > { %v7195_v29 = vrot.slane %v7167_v3, %v9995_v20  ;;  %v9012_v9 = vpack.i.b16 %v5487_v12, %v5548_v31  ;;  %v7213_v54 = vcombine.low %v5464_v28, %v11703_v0  ;;  %v12428_v59 = vcombine.high %v11703_v0, %v11703_v0  ;;  %9561 = vmatmul.mubr.bf16.vlgmr.msra.gmra.mrb[0].mxu0 %v7163_v35  ;;  %v12432_v35 = vld [vmem:[#allocation62_spill] sm:$0xff]  ;;  %v9816_v60 = vld [vmem:[%s12182_s3 + $0x158] sm:$0xff]   ;;  %v12434_v28 = vld [vmem:[#allocation56_spill] sm:$0xff] }
 0x1dc   : > { %v9013_v14 = vpack.i.b16 %v5488_v48, %v5550_v1  ;;  %v7204_v30 = vrot.slane %v7196_v43, %v9995_v20  ;;  %v9014_v51 = vpack.i.b16 %v5489_v18, %v5552_v44  ;;  %v4062_v6 = vcombine.high %v12429_v8, %v12429_v8  ;;  %9569 = vmatpush3.bf16.msra.mxu0 %v9813_v26  ;;  %v12431_v48 = vld [vmem:[#allocation58_spill] sm:$0xff] }
 0x1dd   : > { %v7214_v2 = vcombine.low %v11715_v27, %v12428_v59  ;;  %v7197_v5 = vcombine.low %v7188_v15, %v7195_v29  ;;  %v7215_v45 = vcombine.low %v9011_v58, %v9012_v9  ;;  %v7223_v23 = vrot.slane %v7213_v54, %v9995_v20  ;;  %9570 = vmatprep.subr.bf16.mxu0 %v9814_v55  ;;  %v9815_v27 = vld [vmem:[%s12182_s3 + $0x150] sm:$0xff]   ;;  %v12435_v18 = vld [vmem:[#allocation10_spill] sm:$0xff] }
 0x1de   : > { %v4064_v49 = vcombine.high %v12430_v61, %v12430_v61  ;;  %v7216_v19 = vcombine.low %v9013_v14, %v9014_v51  ;;  %v4238_v32 = vunpack.i.h.s16 %v12429_v8  ;;  %v4240_v26 = vunpack.i.h.s16 %v12430_v61  ;;  %v9817_v8 = vld [vmem:[%s12182_s3 + $0x160] sm:$0xff]  }
 0x1df   : > { %v7230_v17 = vrot.slane %v7214_v2, %v9995_v20  ;;  %v7211_v0 = vrot.slane %v7197_v5, %v9995_v20  ;;  %v7237_v37 = vrot.slane %v7215_v45, %v9995_v20  ;;  %v4242_v56 = vunpack.i.h.s16 %v4062_v6 }
 0x1e0   : > { %v4244_v40 = vunpack.i.h.s16 %v4064_v49  ;;  %v7244_v13 = vrot.slane %v7216_v19, %v9995_v20  ;;  %v9041_v16 = vpack.i.b16 %v12430_v61, %v4238_v32  ;;  %v9042_v50 = vpack.i.b16 %v4062_v6, %v4240_v26  ;;  %9571 = vmatpush3.bf16.msra.mxu0 %v9814_v55 }
 0x1e1   : > { %v7245_v62 = vcombine.low %v7223_v23, %v7230_v17  ;;  %v7212_v42 = vcombine.low %v7204_v30, %v7211_v0  ;;  %v4260_v57 = vunpack.i.h.s16 %v11226_v34  ;;  %v9043_v12 = vpack.i.b16 %v4064_v49, %v4242_v56  ;;  %9572 = vmatprep.subr.bf16.mxu0 %v9815_v27 }
 0x1e2   : > { %v9044_v31 = vpack.i.b16 %v12431_v48, %v4244_v40  ;;  %v7438_v3 = vcombine.low %v12433_v63, %v12432_v35  ;;  %v7246_v39 = vcombine.low %v7237_v37, %v7244_v13  ;;  %v7436_v15 = vcombine.low %v9041_v16, %v9042_v50  ;;  %v12439_v40 = vld [vmem:[#allocation2_spill] sm:$0xff]  ;;  %v12441_v16 = vld [vmem:[#allocation19_spill] sm:$0xff] }
 0x1e3   : > { %9564 = vmatprep.mubr.bf16.mxu0 %v7212_v42  ;;  %v7439_v1 = vcombine.low %v12435_v18, %v12434_v28  ;;  %v4262_v29 = vunpack.i.h.s16 %v11182_v10  ;;  %v12436_v43 = vunpack.i.h.s16 %v11204_v53  ;;  %v7253_v58 = vrot.slane %v7245_v62, %v9995_v20  ;;  %v12437_v53 = vld [vmem:[#allocation59_spill] sm:$0xff]  ;;  %v12440_v13 = vld [vmem:[#allocation66_spill] sm:$0xff] }
 0x1e4   : > { %v7437_v55 = vcombine.low %v9043_v12, %v9044_v31  ;;  %v7260_v9 = vrot.slane %v7246_v39, %v9995_v20  ;;  %v7460_v14 = vrot.slane %v7438_v3, %v9995_v20  ;;  %9573 = vmatpush3.bf16.msra.mxu0 %v9815_v27  ;;  %v7446_v59 = vrot.slane %v7436_v15, %v9995_v20  ;;  %v12438_v27 = vld [vmem:[#allocation68_spill] sm:$0xff]  ;;  %v12442_v31 = vld [vmem:[#allocation18_spill] sm:$0xff] }
 0x1e5   : > { %v11932_v44 = vpack.i.b16 %v11226_v34, %v12436_v43  ;;  %v7467_v54 = vrot.slane %v7439_v1, %v9995_v20  ;;  %v9047_v5 = vpack.i.b16 %v11182_v10, %v4260_v57  ;;  %9574 = vmatprep.subr.bf16.mxu0 %v9816_v60  ;;  %v4160_v6 = vcombine.high %v11361_v7, %v11361_v7 }
 0x1e6   : > { %v7453_v2 = vrot.slane %v7437_v55, %v9995_v20  ;;  %v7261_v34 = vcombine.low %v7253_v58, %v7260_v9  ;;  %v4278_v45 = vunpack.i.h.s16 %v11364_v25  ;;  %v9048_v23 = vpack.i.b16 %v11200_v33, %v4262_v29 }
 0x1e7   : > { %v7485_v30 = vcombine.low %v12437_v53, %v11932_v44  ;;  %v7469_v51 = vcombine.low %v7460_v14, %v7467_v54  ;;  %v9057_v61 = vcombine.high %v11182_v10, %v11200_v33  ;;  %v4162_v49 = vcombine.high %v11379_v22, %v11379_v22  ;;  %v9818_v10 = vld [vmem:[%s12182_s3 + $0x168] sm:$0xff]  }
 0x1e8   : > { %v7468_v17 = vcombine.low %v7446_v59, %v7453_v2  ;;  %9565 = vmatmul.mubr.bf16.gmra.mrb[4].mxu0 %v7261_v34  ;;  %v4274_v0 = vunpack.i.h.s16 %v4160_v6  ;;  %v4280_v19 = vunpack.i.h.s16 %v12438_v27  ;;  %v7486_v37 = vcombine.low %v9047_v5, %v9048_v23 }
 0x1e9   : > { %v7483_v26 = vrot.slane %v7469_v51, %v9995_v20  ;;  %9575 = vmatpush3.bf16.msra.mxu0 %v9816_v60  ;;  %v7488_v62 = vcombine.low %v11361_v7, %v11379_v22  ;;  %v4276_v33 = vunpack.i.h.s16 %v4162_v49  ;;  %v9051_v56 = vpack.i.b16 %v12438_v27, %v4278_v45  ;;  %v12444_v51 = vld [vmem:[#allocation32_spill] sm:$0xff]  ;;  %v9821_v27 = vld [vmem:[%s12182_s3 + $0x180] sm:$0xff]  }
 0x1ea   : > { %v7476_v32 = vrot.slane %v7468_v17, %v9995_v20  ;;  %9576 = vmatprep.subr.bf16.mxu0 %v9817_v8  ;;  %v9052_v42 = vpack.i.b16 %v12439_v40, %v4280_v19  ;;  %v7536_v50 = vcombine.low %v12441_v16, %v12440_v13  ;;  %v7509_v12 = vrot.slane %v9057_v61, %v9995_v20  ;;  %v9822_v16 = vld [vmem:[%s12182_s3 + $0x188] sm:$0xff]  }
 0x1eb   : > { %v9049_v48 = vpack.i.b16 %v4162_v49, %v4274_v0  ;;  %v7537_v7 = vcombine.low %v11367_v47, %v12442_v31  ;;  %v9050_v22 = vpack.i.b16 %v11364_v25, %v4276_v33  ;;  %v4292_v3 = vunpack.i.h.s16 %v11781_v41  ;;  %v9819_v25 = vld [vmem:[%s12182_s3 + $0x170] sm:$0xff]  }
 0x1ec   : > { %v7484_v57 = vcombine.low %v7476_v32, %v7483_v26  ;;  %v7535_v35 = vcombine.low %v9051_v56, %v9052_v42  ;;  %v7558_v63 = vrot.slane %v7536_v50, %v9995_v20  ;;  %v7516_v39 = vrot.slane %v7488_v62, %v9995_v20 }
 0x1ed   : > { %9577 = vmatpush3.bf16.msra.mxu0 %v9817_v8  ;;  %v7565_v60 = vrot.slane %v7537_v7, %v9995_v20  ;;  %v4294_v15 = vunpack.i.h.s16 %v11358_v46  ;;  %v4296_v28 = vunpack.i.h.s16 %v11370_v52  ;;  %v7502_v47 = vrot.slane %v7486_v37, %v9995_v20  ;;  %v12446_v7 = vld [vmem:[#allocation37_spill] sm:$0xff] }
 0x1ee   : > { %9584 = vmatprep.mubr.bf16.mxu0 %v7484_v57  ;;  %9578 = vmatprep.subr.bf16.mxu0 %v9818_v10  ;;  %v7534_v18 = vcombine.low %v9049_v48, %v9050_v22  ;;  %v4298_v41 = vunpack.i.h.s16 %v11776_v11  ;;  %v9053_v1 = vpack.i.b16 %v11358_v46, %v4292_v3  ;;  %v7585_v44 = vcombine.low %v11489_v24, %v11498_v38  ;;  %v12445_v57 = vld [vmem:[#allocation34_spill] sm:$0xff]  ;;  %v9823_v3 = vld [vmem:[%s12182_s3 + $0x190] sm:$0xff]  }
 0x1ef   : > { %v7567_v29 = vcombine.low %v7558_v63, %v7565_v60  ;;  %v9054_v55 = vpack.i.b16 %v11370_v52, %v4294_v15  ;;  %v9055_v43 = vpack.i.b16 %v11776_v11, %v4296_v28  ;;  %v7551_v9 = vrot.slane %v7535_v35, %v9995_v20  ;;  %v9820_v11 = vld [vmem:[%s12182_s3 + $0x178] sm:$0xff]   ;;  %v12447_v22 = vld [vmem:[#allocation38_spill] sm:$0xff]  ;;  %v12449_v15 = vld [vmem:[#allocation7_spill] sm:$0xff] }
 0x1f0   : > { %v7544_v58 = vrot.slane %v7534_v18, %v9995_v20  ;;  %v9056_v14 = vpack.i.b16 %v11789_v36, %v4298_v41  ;;  %v9058_v54 = vcombine.high %v11489_v24, %v11498_v38  ;;  %v7495_v46 = vrot.slane %v7485_v30, %v9995_v20  ;;  %v12443_v36 = vld [vmem:[#allocation33_spill] sm:$0xff]  ;;  %v12450_v28 = vld [vmem:[#allocation14_spill] sm:$0xff]  ;;  %v9826_v18 = vld [vmem:[%s12182_s3 + $0x1a8] sm:$0xff]  }
 0x1f1   : > { %9579 = vmatpush3.bf16.msra.mxu0 %v9818_v10  ;;  %v7518_v59 = vcombine.low %v7509_v12, %v7516_v39  ;;  %v7583_v2 = vcombine.low %v9053_v1, %v9054_v55  ;;  %v7607_v52 = vrot.slane %v7585_v44, %v9995_v20  ;;  %v7781_v8 = vcombine.low %v12444_v51, %v12443_v36  ;;  %v9824_v60 = vld [vmem:[%s12182_s3 + $0x198] sm:$0xff]   ;;  %v9827_v41 = vld [vmem:[%s12182_s3 + $0x1b0] sm:$0xff]   ;;  %v9830_v55 = vld [vmem:[%s12182_s3 + $0x1c8] sm:$0xff]  }
 0x1f2   : > { %9580 = vmatprep.subr.bf16.mxu0 %v9819_v25  ;;  %v7566_v5 = vcombine.low %v7544_v58, %v7551_v9  ;;  %v7584_v53 = vcombine.low %v9055_v43, %v9056_v14  ;;  %v7614_v34 = vrot.slane %v9058_v54, %v9995_v20  ;;  %v7517_v24 = vcombine.low %v7495_v46, %v7502_v47  ;;  %v9825_v47 = vld [vmem:[%s12182_s3 + $0x1a0] sm:$0xff]   ;;  %v9828_v1 = vld [vmem:[%s12182_s3 + $0x1b8] sm:$0xff]   ;;  %v12451_v43 = vld [vmem:[#allocation8_spill] sm:$0xff] }
 0x1f3   : > { %v7581_v38 = vrot.slane %v7567_v29, %v9995_v20  ;;  %v7593_v30 = vrot.slane %v7583_v2, %v9995_v20  ;;  %v9083_v6 = vcombine.high %v12444_v51, %v12443_v36  ;;  %v7789_v61 = vrot.slane %v7781_v8, %v9995_v20  ;;  %v9829_v29 = vld [vmem:[%s12182_s3 + $0x1c0] sm:$0xff]   ;;  %v12452_v58 = vld [vmem:[#allocation3_spill] sm:$0xff]  ;;  %v9831_v54 = vld [vmem:[%s12182_s3 + $0x1d0] sm:$0xff]  }
 0x1f4   : > { %v7574_v45 = vrot.slane %v7566_v5, %v9995_v20  ;;  %v7600_v23 = vrot.slane %v7584_v53, %v9995_v20  ;;  %v7616_v17 = vcombine.low %v7607_v52, %v7614_v34  ;;  %v7532_v0 = vrot.slane %v7518_v59, %v9995_v20  ;;  %v12453_v9 = vld [vmem:[#allocation15_spill] sm:$0xff]  ;;  %v9832_v46 = vld [vmem:[%s12182_s3 + $0x1d8] sm:$0xff]   ;;  %v9845_v52 = vld [vmem:[%s12183_s4] sm:$0xff]  }
 0x1f5   : > { %9581 = vmatpush3.bf16.msra.mxu0 %v9819_v25  ;;  %v7796_v49 = vrot.slane %v9083_v6, %v9995_v20  ;;  %v1770_v62 = vunpack.i.h.s16 %v12444_v51  ;;  %v7525_v10 = vrot.slane %v7517_v24, %v9995_v20  ;;  %v1772_v56 = vunpack.i.h.s16 %v12443_v36  ;;  %v12455_v59 = vld [vmem:[#allocation63_spill] sm:$0xff]  ;;  %v12456_v2 = vld [vmem:[#allocation65_spill] sm:$0xff]  ;;  %v9833_v34 = vld [vmem:[%s12182_s3 + $0x1e0] sm:$0xff]   ;;  %9664 = vmatprep.subr.bf16.mxu1 %v9845_v52 }
 0x1f6   : > { %9582 = vmatprep.subr.bf16.mxu0 %v9820_v11  ;;  %v7582_v19 = vcombine.low %v7574_v45, %v7581_v38  ;;  %v7615_v32 = vcombine.low %v7593_v30, %v7600_v23  ;;  %v7630_v26 = vrot.slane %v7616_v17, %v9995_v20  ;;  %v12448_v35 = vcombine.low %v12446_v7, %v12447_v22  ;;  %v9846_v53 = vld [vmem:[%s12183_s4 + $0x8] sm:$0xff]   ;;  %v9847_v51 = vld [vmem:[%s12183_s4 + $0x10] sm:$0xff]   ;;  %v9848_v38 = vld [vmem:[%s12183_s4 + $0x18] sm:$0xff]  }
 0x1f7   : > { %v7797_v37 = vcombine.low %v7789_v61, %v7796_v49  ;;  %v9133_v42 = vpack.i.b16 %v12443_v36, %v1770_v62  ;;  %v7533_v13 = vcombine.low %v7525_v10, %v7532_v0  ;;  %v9134_v12 = vpack.i.b16 %v12445_v57, %v1772_v56  ;;  %9665 = vmatpush3.bf16.msra.mxu1 %v9845_v52  ;;  %v9834_v8 = vld [vmem:[%s12182_s3 + $0x1e8] sm:$0xff]   ;;  %v9835_v30 = vld [vmem:[%s12182_s3 + $0x1f0] sm:$0xff]   ;;  %v9849_v45 = vld [vmem:[%s12183_s4 + $0x20] sm:$0xff]  }
 0x1f8   : > { %v7623_v33 = vrot.slane %v7615_v32, %v9995_v20  ;;  %v12027_v63 = vrot.slane %v12448_v35, %v9995_v20  ;;  %v7778_v25 = vcombine.low %v12450_v28, %v12449_v15  ;;  %v7780_v44 = vcombine.low %v12451_v43, %v11801_v21  ;;  %9666 = vmatprep.subr.bf16.mxu1 %v9846_v53  ;;  %v9836_v17 = vld [vmem:[%s12182_s3 + $0x1f8] sm:$0xff]   ;;  %v9837_v0 = vld [vmem:[%s12182_s3 + $0x200] sm:$0xff]   ;;  %v9838_v32 = vld [vmem:[%s12182_s3 + $0x208] sm:$0xff]  }
 0x1f9   : > { %9583 = vmatpush3.bf16.msra.mxu0 %v9820_v11  ;;  %v7804_v40 = vrot.slane %v7797_v37, %v9995_v20  ;;  %v8129_v31 = vcombine.low %v9133_v42, %v9134_v12  ;;  %v12454_v14 = vcombine.low %v12452_v58, %v12453_v9  ;;  %v7952_v21 = vcombine.low %v12456_v2, %v12455_v59  ;;  %v12457_v11 = vld [vmem:[#allocation54_spill] sm:$0xff]  ;;  %v12459_v37 = vld [vmem:[#allocation69_spill] sm:$0xff]  ;;  %v12460_v10 = vld [vmem:[#allocation64_spill] sm:$0xff] }
 0x1fa   : > { %9592 = vmatprep.subr.bf16.mxu0 %v9821_v27  ;;  %v7631_v50 = vcombine.low %v7623_v33, %v7630_v26  ;;  %v8682_v5 = vpack.c.bf16 %v12457_v11, %v12457_v11  ;;  %v12458_v26 = vld [vmem:[#allocation24_spill] sm:$0xff]  ;;  %v12461_v33 = vld [vmem:[#allocation67_spill] sm:$0xff]  ;;  %v9840_v57 = vld [vmem:[%s12182_s3 + $0x218] sm:$0xff]  }
 0x1fb   : > { %v7805_v48 = vcombine.low %v11812_v4, %v7804_v40  ;;  %v12033_v39 = vrot.slane %v8129_v31, %v9995_v20  ;;  %9667 = vmatpush3.bf16.msra.mxu1 %v9846_v53  ;;  %v7954_v62 = vcombine.low %v12459_v37, %v12458_v26  ;;  %v12462_v56 = vcombine.low %v12460_v10, %v12461_v33  ;;  %v9839_v42 = vld [vmem:[%s12182_s3 + $0x210] sm:$0xff]   ;;  %v12464_v12 = vld [vmem:[#allocation43_spill] sm:$0xff]  ;;  %v9841_v7 = vld [vmem:[%s12182_s3 + $0x220] sm:$0xff]  }
 0x1fc   : > { %9585 = vmatmul.mubr.bf16.vlgmr.msra.gmra.mrb[0].mxu0 %v7533_v13  ;;  %v2949_v36 = vrot.slane %v8682_v5, %v9995_v20  ;;  %9668 = vmatprep.subr.bf16.mxu1 %v9847_v51  ;;  %v9842_v22 = vld [vmem:[%s12182_s3 + $0x228] sm:$0xff]   ;;  %v9843_v35 = vld [vmem:[%s12182_s3 + $0x230] sm:$0xff]   ;;  %v9146_v52 = vld [vmem:[%s12187_s8] ss:$0 sm:$0xff] }
 0x1fd   : > { %9588 = vmatprep.mubr.bf16.mxu0 %v7582_v19  ;;  %9593 = vmatpush3.bf16.msra.mxu0 %v9821_v27  ;;  %v8145_v4 = vcombine.low %v12033_v39, %v12027_v63  ;;  %v12467_v15 = vld [vmem:[#allocation52_spill] sm:$0xff]  ;;  %v9850_v59 = vld [vmem:[%s12183_s4 + $0x28] sm:$0xff]  }
 0x1fe   : > { %9594 = vmatprep.subr.bf16.mxu0 %v9822_v16  ;;  %v2951_v24 = vcombine.high %v2949_v36, %v2949_v36  ;;  %v2965_v23 = vrot.slane %v2949_v36, %v9995_v20  ;;  %v9851_v63 = vld [vmem:[%s12183_s4 + $0x30] sm:$0xff]  }
 0x1ff   : > { %9669 = vmatpush3.bf16.msra.mxu1 %v9847_v51 }
 0x200   : > { %v2979_v6 = vrot.slane %v2951_v24, %v9995_v20  ;;  %9670 = vmatprep.subr.bf16.mxu1 %v9848_v38 }
 0x201   : > { %9595 = vmatpush3.bf16.msra.mxu0 %v9822_v16  ;;  %v12463_v16 = vld [vmem:[#allocation25_spill] sm:$0xff] }
 0x202   : > { %9596 = vmatprep.subr.bf16.mxu0 %v9823_v3  ;;  %v7955_v61 = vcombine.low %v2965_v23, %v2979_v6  ;;  %v9108_v49 = vcombine.high %v2965_v23, %v2979_v6 }
 0x203   : > { %9671 = vmatpush3.bf16.msra.mxu1 %v9848_v38 }
 0x204   : > { %9589 = vmatmul.mubr.bf16.gmra.mrb[4].mxu0 %v7631_v50  ;;  %9672 = vmatprep.subr.bf16.mxu1 %v9849_v45  ;;  %v7963_v27 = vrot.slane %v7955_v61, %v9995_v20  ;;  %v7970_v19 = vrot.slane %v9108_v49, %v9995_v20 }
 0x205   : > { %9597 = vmatpush3.bf16.msra.mxu0 %v9823_v3  ;;  %9608 = vmatprep.mubr.bf16.mxu0 %v7778_v25  ;;  %v9844_v3 = vld [vmem:[%s12182_s3 + $0x238] sm:$0xff]   ;;  %v12468_v25 = vld [vmem:[#allocation44_spill] sm:$0xff] }
 0x206   : > { %9598 = vmatprep.subr.bf16.mxu0 %v9824_v60  ;;  %v7971_v40 = vcombine.low %v7963_v27, %v7970_v19 }
 0x207   : > { %9673 = vmatpush3.bf16.msra.mxu1 %v9849_v45 }
 0x208   : > { %v7978_v13 = vrot.slane %v7971_v40, %v9995_v20  ;;  %9674 = vmatprep.subr.bf16.mxu1 %v9850_v59 }
 0x209   : > { %9599 = vmatpush3.bf16.msra.mxu0 %v9824_v60  ;;  %v12466_v60 = vld [vmem:[#allocation55_spill] sm:$0xff] }
 0x20a   : > { %9600 = vmatprep.subr.bf16.mxu0 %v9825_v47  ;;  %v7979_v50 = vcombine.low %v12463_v16, %v7978_v13  ;;  %v8128_v28 = vcombine.low %v12467_v15, %v12466_v60 }
 0x20b   : > { %9675 = vmatpush3.bf16.msra.mxu1 %v9850_v59 }
 0x20c   : > { %9676 = vmatprep.subr.bf16.mxu1 %v9851_v63 }
 0x20d   : > { %9601 = vmatpush3.bf16.msra.mxu0 %v9825_v47  ;;  %v12469_v47 = vld [vmem:[#allocation51_spill] sm:$0xff] }
 0x20e   : > { %9602 = vmatprep.subr.bf16.mxu0 %v9826_v18 }
 0x20f   : > { %9677 = vmatpush3.bf16.msra.mxu1 %v9851_v63 }
 0x211   : > { %9603 = vmatpush3.bf16.msra.mxu0 %v9826_v18  ;;  %v12470_v18 = vcombine.low %v12468_v25, %v12469_v47  ;;  %v9156_v47 = vld [vmem:[%s12189_s10] ss:$0 sm:$0xff] }
 0x212   : > { %9604 = vmatprep.subr.bf16.mxu0 %v9827_v41 }
 0x215   : > { %9605 = vmatpush3.bf16.msra.mxu0 %v9827_v41  ;;  %v8152_v41 = vrot.slane %v8145_v4, %v9995_v20  ;;  %v9852_v20 = vld [vmem:[%s12183_s4 + $0x38] sm:$0xff]   ;;  %v9145_v4 = vld [vmem:[%s12186_s7] ss:$0 sm:$0xff] }
 0x216   : > { %9606 = vmatprep.subr.bf16.mxu0 %v9828_v1  ;;  %9678 = vmatprep.subr.bf16.mxu1 %v9852_v20 }
 0x217   : > { %9679 = vmatpush3.bf16.msra.mxu1 %v9852_v20 }
 0x219   : > { %9607 = vmatpush3.bf16.msra.mxu0 %v9828_v1  ;;  %v12471_v1 = vld [vmem:[#allocation53_spill] sm:$0xff] }
 0x21a   : > { %9616 = vmatprep.subr.bf16.mxu0 %v9829_v29 }
 0x21c   : > { %9609 = vmatmul.mubr.bf16.vlgmr.msra.gmra.mrb[0].mxu0 %v12454_v14 }
 0x21d   : > { %9612 = vmatprep.mubr.bf16.mxu0 %v7780_v44  ;;  %9617 = vmatpush3.bf16.msra.mxu0 %v9829_v29  ;;  %v8153_v29 = vcombine.low %v12471_v1, %v8152_v41 }
 0x21e   : > { %9618 = vmatprep.subr.bf16.mxu0 %v9830_v55 }
 0x221   : > { %9619 = vmatpush3.bf16.msra.mxu0 %v9830_v55 }
 0x222   : > { %9620 = vmatprep.subr.bf16.mxu0 %v9831_v54 }
 0x224   : > { %9613 = vmatmul.mubr.bf16.gmra.mrb[4].mxu0 %v7805_v48  ;;  %v12465_v48 = vld [vmem:[#allocation35_spill] sm:$0xff] }
 0x225   : > { %9621 = vmatpush3.bf16.msra.mxu0 %v9831_v54  ;;  %9632 = vmatprep.mubr.bf16.mxu0 %v7952_v21  ;;  %v8126_v31 = vcombine.low %v12465_v48, %v12464_v12 }
 0x226   : > { %9622 = vmatprep.subr.bf16.mxu0 %v9832_v46 }
 0x229   : > { %9623 = vmatpush3.bf16.msra.mxu0 %v9832_v46 }
 0x22a   : > { %9624 = vmatprep.subr.bf16.mxu0 %v9833_v34 }
 0x22d   : > { %9625 = vmatpush3.bf16.msra.mxu0 %v9833_v34 }
 0x22e   : > { %9626 = vmatprep.subr.bf16.mxu0 %v9834_v8 }
 0x231   : > { %9627 = vmatpush3.bf16.msra.mxu0 %v9834_v8 }
 0x232   : > { %9628 = vmatprep.subr.bf16.mxu0 %v9835_v30 }
 0x235   : > { %9629 = vmatpush3.bf16.msra.mxu0 %v9835_v30 }
 0x236   : > { %9630 = vmatprep.subr.bf16.mxu0 %v9836_v17 }
 0x239   : > { %9631 = vmatpush3.bf16.msra.mxu0 %v9836_v17 }
 0x23a   : > { %9640 = vmatprep.subr.bf16.mxu0 %v9837_v0 }
 0x23c   : > { %9633 = vmatmul.mubr.bf16.vlgmr.msra.gmra.mrb[0].mxu0 %v12462_v56 }
 0x23d   : > { %9636 = vmatprep.mubr.bf16.mxu0 %v7954_v62  ;;  %9641 = vmatpush3.bf16.msra.mxu0 %v9837_v0 }
 0x23e   : > { %9642 = vmatprep.subr.bf16.mxu0 %v9838_v32 }
 0x241   : > { %9643 = vmatpush3.bf16.msra.mxu0 %v9838_v32 }
 0x242   : > { %9644 = vmatprep.subr.bf16.mxu0 %v9839_v42 }
 0x244   : > { %9637 = vmatmul.mubr.bf16.gmra.mrb[4].mxu0 %v7979_v50 }
 0x245   : > { %9645 = vmatpush3.bf16.msra.mxu0 %v9839_v42  ;;  %9656 = vmatprep.mubr.bf16.mxu0 %v8126_v31 }
 0x246   : > { %9646 = vmatprep.subr.bf16.mxu0 %v9840_v57 }
 0x249   : > { %9647 = vmatpush3.bf16.msra.mxu0 %v9840_v57 }
 0x24a   : > { %9648 = vmatprep.subr.bf16.mxu0 %v9841_v7 }
 0x24d   : > { %9649 = vmatpush3.bf16.msra.mxu0 %v9841_v7 }
 0x24e   : > { %9650 = vmatprep.subr.bf16.mxu0 %v9842_v22 }
 0x251   : > { %9651 = vmatpush3.bf16.msra.mxu0 %v9842_v22 }
 0x252   : > { %9652 = vmatprep.subr.bf16.mxu0 %v9843_v35 }
 0x255   : > { %9653 = vmatpush3.bf16.msra.mxu0 %v9843_v35 }
 0x256   : > { %9654 = vmatprep.subr.bf16.mxu0 %v9844_v3 }
 0x259   : > { %9655 = vmatpush3.bf16.msra.mxu0 %v9844_v3 }
 0x25c   : > { %9657 = vmatmul.mubr.bf16.vlgmr.msra.gmra.mrb[0].mxu0 %v12470_v18 }
 0x25d   : > { %9660 = vmatprep.mubr.bf16.mxu0 %v8128_v28  ;;  %v9155_v28 = vld [vmem:[%s12188_s9] ss:$0 sm:$0xff] }
 0x264   : > { %9661 = vmatmul.mubr.bf16.gmra.mrb[4].mxu0 %v8153_v29 }
 0x27e   : > { %v9490_v55 = vpop.f32.mrb[48].mxu1 }
 0x27f   : > { %v6246_v43 = vpop.f32.mrb[49].mxu1 }
 0x280   : > { %v9491_v44 = vpop.f32.mrb[50].mxu1 }
 0x281   : > { %v6249_v58 = vpop.f32.mrb[51].mxu1 }
 0x29f   : > { %v9494_v9 = vpop.f32.mrb[52].mxu1 }
 0x2a0   : > { %v6262_v14 = vpop.f32.mrb[53].mxu1 }
 0x2a1   : > { %v9495_v54 = vpop.f32.mrb[54].mxu1 }
 0x2a2   : > { %v6265_v46 = vpop.f32.mrb[55].mxu1 }
 0x32f   : > { %v9658_v39 = vpop.f32.mrb[0].mxu0 }
 0x330   : > { %v9688_v2 = vadd.f32 %v9658_v39, %v9490_v55  ;;  %v8240_v21 = vpop.f32.mrb[1].mxu0 }
 0x331   : > { %v9689_v11 = vadd.f32 %v8240_v21, %v6246_v43  ;;  %v9659_v5 = vpop.f32.mrb[2].mxu0 }
 0x332   : > { %v8288_v53 = vmul.f32 %v9688_v2, %v9145_v4  ;;  %v9690_v34 = vadd.f32 %v9659_v5, %v9491_v44  ;;  %v8243_v36 = vpop.f32.mrb[3].mxu0 }
 0x333   : > { %v8286_v51 = vmul.f32 %v9689_v11, %v9145_v4  ;;  %v9691_v8 = vadd.f32 %v8243_v36, %v6249_v58 }
 0x334   : > { %v8303_v24 = vadd.f32 %v9146_v52, %v8288_v53  ;;  %v8289_v38 = vmul.f32 %v9690_v34, %v9145_v4 }
 0x335   : > { %v8301_v30 = vadd.f32 %v9146_v52, %v8286_v51  ;;  %v8287_v6 = vmul.f32 %v9691_v8, %v9145_v4 }
 0x336   : > { %v8304_v45 = vadd.f32 %v9146_v52, %v8289_v38  ;;  %v8311_v61 = vmax.f32 %v8303_v24, 0.0 }
 0x337   : > { %v8302_v23 = vadd.f32 %v9146_v52, %v8287_v6  ;;  %v9662_v17 = vpop.f32.mrb[4].mxu0  ;;  %v8309_v19 = vmax.f32 %v8301_v30, 0.0 }
 0x338   : > { %v8312_v49 = vmax.f32 %v8304_v45, 0.0  ;;  %v9692_v0 = vadd.f32 %v9662_v17, %v9494_v9  ;;  %v8256_v27 = vpop.f32.mrb[5].mxu0 }
 0x339   : > { %v8310_v32 = vmax.f32 %v8302_v23, 0.0  ;;  %v9693_v26 = vadd.f32 %v8256_v27, %v6262_v14  ;;  %v9663_v37 = vpop.f32.mrb[6].mxu0 }
 0x33a   : > { %v8318_v62 = vpack.c.bf16 %v8312_v49, %v8311_v61  ;;  %v8292_v10 = vmul.f32 %v9692_v0, %v9145_v4  ;;  %v9694_v33 = vadd.f32 %v9663_v37, %v9495_v54  ;;  %v8259_v56 = vpop.f32.mrb[7].mxu0 }
 0x33b   : > { %v8290_v40 = vmul.f32 %v9693_v26, %v9145_v4  ;;  %v9695_v42 = vadd.f32 %v8259_v56, %v6265_v46  ;;  %v8317_v13 = vpack.c.bf16 %v8310_v32, %v8309_v19 }
 0x33c   : > { %v8307_v16 = vadd.f32 %v9146_v52, %v8292_v10  ;;  %v8293_v50 = vmul.f32 %v9694_v33, %v9145_v4 }
 0x33d   : > { %v8305_v57 = vadd.f32 %v9146_v52, %v8290_v40  ;;  %v8291_v12 = vmul.f32 %v9695_v42, %v9145_v4  ;;  %9680 = vmatprep.mubr.bf16.mxu1 %v8317_v13 }
 0x33e   : > { %v8308_v48 = vadd.f32 %v9146_v52, %v8293_v50  ;;  %9681 = vmatmul.mubr.bf16.vlgmr.msra.gmra.mrb[56].mxu1 %v8318_v62  ;;  %v8315_v7 = vmax.f32 %v8307_v16, 0.0 }
 0x33f   : > { %v8306_v31 = vadd.f32 %v9146_v52, %v8291_v12  ;;  %v8313_v35 = vmax.f32 %v8305_v57, 0.0 }
 0x340   : > { %v8316_v22 = vmax.f32 %v8308_v48, 0.0 }
 0x341   : > { %v8314_v3 = vmax.f32 %v8306_v31, 0.0 }
 0x342   : > { %v8320_v60 = vpack.c.bf16 %v8316_v22, %v8315_v7 }
 0x343   : > { %v8319_v15 = vpack.c.bf16 %v8314_v3, %v8313_v35 }
 0x345   : > { %9684 = vmatprep.mubr.bf16.mxu1 %v8319_v15 }
 0x346   : > { %9685 = vmatmul.mubr.bf16.gmra.mrb[60].mxu1 %v8320_v60 }
 0x411   : > { %v9682_v25 = vpop.f32.mrb[56].mxu1 }
 0x412   : > { %v8459_v18 = vmul.f32 %v9682_v25, %v9155_v28  ;;  %v8419_v41 = vpop.f32.mrb[57].mxu1 }
 0x413   : > { %v8457_v1 = vmul.f32 %v9155_v28, %v8419_v41  ;;  %v9683_v29 = vpop.f32.mrb[58].mxu1 }
 0x414   : > { %v8474_v55 = vadd.f32 %v9156_v47, %v8459_v18  ;;  %v8460_v43 = vmul.f32 %v9683_v29, %v9155_v28  ;;  %v8422_v44 = vpop.f32.mrb[59].mxu1 }
 0x415   : > { %v8472_v58 = vadd.f32 %v9156_v47, %v8457_v1  ;;  %v8458_v9 = vmul.f32 %v9155_v28, %v8422_v44 }
 0x416   : > { %8482 = vst [vmem:[%s391_s19 + $0x10] sm:$0xff] %v8474_v55  ;;  %v8475_v14 = vadd.f32 %v9156_v47, %v8460_v43 }
 0x417   : > { %8480 = vst [vmem:[%s391_s19] sm:$0xff] %v8472_v58  ;;  %v8473_v54 = vadd.f32 %v9156_v47, %v8458_v9 }
 0x418   : > { %8483 = vst [vmem:[%s391_s19 + $0x18] sm:$0xff] %v8475_v14 }
 0x419   : > { %8481 = vst [vmem:[%s391_s19 + $0x8] sm:$0xff] %v8473_v54  ;;  %v9686_v46 = vpop.f32.mrb[60].mxu1 }
 0x41a   : > { %v8463_v59 = vmul.f32 %v9686_v46, %v9155_v28  ;;  %v8435_v63 = vpop.f32.mrb[61].mxu1 }
 0x41b   : > { %v8461_v20 = vmul.f32 %v9155_v28, %v8435_v63  ;;  %v9687_v39 = vpop.f32.mrb[62].mxu1 }
 0x41c   : > { %v8478_v4 = vadd.f32 %v9156_v47, %v8463_v59  ;;  %v8464_v2 = vmul.f32 %v9687_v39, %v9155_v28  ;;  %v8438_v21 = vpop.f32.mrb[63].mxu1 }
 0x41d   : > { %v8476_v52 = vadd.f32 %v9156_v47, %v8461_v20  ;;  %v8462_v11 = vmul.f32 %v9155_v28, %v8438_v21 }
 0x41e   : > { %8486 = vst [vmem:[%s391_s19 + $0x30] sm:$0xff] %v8478_v4  ;;  %v8479_v5 = vadd.f32 %v9156_v47, %v8464_v2 }
 0x41f   : > { %8484 = vst [vmem:[%s391_s19 + $0x20] sm:$0xff] %v8476_v52  ;;  %v8477_v53 = vadd.f32 %v9156_v47, %v8462_v11 }
 0x420   : > { %8487 = vst [vmem:[%s391_s19 + $0x38] sm:$0xff] %v8479_v5 }
 0x421   : > { %8485 = vst [vmem:[%s391_s19 + $0x28] sm:$0xff] %v8477_v53 }
 0x422 PF: > { %s21_s17 = sadd.s32 1, %s9870_s17  }
 0x423   : > { %p18_p5 = scmp.ge.s32.totalorder %s21_s17, 4  }
 0x425   :  { %20 = sbr.rel (!%p18_p5) target bundleno = 1 (0x1), region = 108 }

</bundles_post_ra>
